<compile_context>
chip_gen: v7x
topology: tpu7x:2x2x1
jax: 0.10.0
libtpu: 0.0.40
codegen_flags: <defaults>
</compile_context>

<pallas_src>
import functools

import jax
import jax.numpy as jnp
from jax.experimental import pallas as pl
from jax.experimental.pallas import tpu as pltpu

# ----------------------------- synthetic config ------------------------------
VOCAB = 100
HIDDEN = 128          # hidden -> 128 lanes (lane-dense)
N_HEADS = 2
HEAD_DIM = HIDDEN // N_HEADS
FFN = 256             # multiple of 128 -> unmasked stores
N_LAYERS = 2
MAX_POS = 16
TYPE_VOCAB = 2
MAX_LEN = 128         # args.max_len -> output dim of the final linear head (lane-dense)
LN_EPS = 1e-12

_MM_DTYPE = jnp.bfloat16      # MXU input dtype; accumulation is always f32


# --------------------------- in-kernel helper math ----------------------------
def _mm(a, b):
    """bf16-input matmul with f32 accumulation (MXU)."""
    return jnp.dot(a.astype(_MM_DTYPE), b.astype(_MM_DTYPE),
                   preferred_element_type=jnp.float32)


def _ln(x, g, b):
    mean = jnp.mean(x, axis=-1, keepdims=True)
    var = jnp.mean((x - mean) ** 2, axis=-1, keepdims=True)
    return (x - mean) * jax.lax.rsqrt(var + LN_EPS) * g + b


def _gelu(x):
    # tanh-approx GELU (EUP tanh; close to HF BERT's erf gelu)
    return 0.5 * x * (1.0 + jnp.tanh(0.7978845608028654 * (x + 0.044715 * x * x * x)))


# ------------------------------- Pallas kernels -------------------------------
def _layernorm_kernel(x_ref, g_ref, b_ref, o_ref):
    o_ref[...] = _ln(x_ref[...].astype(jnp.float32),
                     g_ref[...], b_ref[...]).astype(o_ref.dtype)


def layernorm(x, gamma, beta):
    M, H = x.shape
    return pl.pallas_call(
        _layernorm_kernel,
        out_shape=jax.ShapeDtypeStruct((M, H), x.dtype),
        grid=(1,),
        in_specs=[
            pl.BlockSpec((M, H), lambda i: (0, 0)),
            pl.BlockSpec((1, H), lambda i: (0, 0)),
            pl.BlockSpec((1, H), lambda i: (0, 0)),
        ],
        out_specs=pl.BlockSpec((M, H), lambda i: (0, 0)),
        compiler_params=pltpu.CompilerParams(dimension_semantics=("arbitrary",)),
    )(x, gamma.reshape(1, H), beta.reshape(1, H))


def _encoder_layer_kernel(x_ref, mask_ref,
                          wqkv_ref, bqkv_ref, wo_ref, bo_ref,
                          ln1_g_ref, ln1_b_ref,
                          w1_ref, b1_ref, w2_ref, b2_ref,
                          ln2_g_ref, ln2_b_ref,
                          o_ref, *, n_heads, head_dim):
    """One full BERT encoder layer for one batch element (grid axis = batch)."""
    x = x_ref[0].astype(jnp.float32)          # (S, H)
    mask = mask_ref[0]                        # (1, S) additive key mask
    scale = 1.0 / (head_dim ** 0.5)
    hidden = n_heads * head_dim

    # Fused QKV projection: one matmul against the concatenated (H, 3H) weight.
    qkv = _mm(x, wqkv_ref[...]) + bqkv_ref[...]                     # (S, 3H)
    q = qkv[:, :hidden]
    k = qkv[:, hidden:2 * hidden]
    v = qkv[:, 2 * hidden:]

    # Multi-head attention; head split via static column slices (no transposes).
    ctx_heads = []
    for h in range(n_heads):                  # static unroll, n_heads is tiny
        sl = slice(h * head_dim, (h + 1) * head_dim)
        qh, kh, vh = q[:, sl], k[:, sl], v[:, sl]
        s = jnp.einsum("qd,kd->qk", qh.astype(_MM_DTYPE), kh.astype(_MM_DTYPE),
                       preferred_element_type=jnp.float32) * scale
        s = s + mask                                                # broadcast over queries
        s = s - jnp.max(s, axis=-1, keepdims=True)
        p = jnp.exp(s)
        p = p * pl.reciprocal(jnp.sum(p, axis=-1, keepdims=True), approx=True)
        ctx_heads.append(_mm(p, vh))                                # (S, Dh)
    ctx = jnp.concatenate(ctx_heads, axis=-1)                       # (S, H)

    # Output projection + residual + LN1
    attn_out = _mm(ctx, wo_ref[...]) + bo_ref[...]
    x1 = _ln(x + attn_out, ln1_g_ref[...], ln1_b_ref[...])

    # FFN + residual + LN2
    h1 = _gelu(_mm(x1, w1_ref[...]) + b1_ref[...])
    ffn_out = _mm(h1, w2_ref[...]) + b2_ref[...]
    x2 = _ln(x1 + ffn_out, ln2_g_ref[...], ln2_b_ref[...])

    o_ref[0] = x2.astype(o_ref.dtype)


def encoder_layer(x, mask_add, p):
    B, S, H = x.shape
    rep = lambda b: (0, 0)        # weights resident across the batch grid axis
    return pl.pallas_call(
        functools.partial(_encoder_layer_kernel, n_heads=N_HEADS, head_dim=HEAD_DIM),
        out_shape=jax.ShapeDtypeStruct((B, S, H), x.dtype),
        grid=(B,),
        in_specs=[
            pl.BlockSpec((1, S, H), lambda b: (b, 0, 0)),   # x
            pl.BlockSpec((1, 1, S), lambda b: (b, 0, 0)),   # additive mask
            pl.BlockSpec((H, 3 * H), rep),                  # wqkv
            pl.BlockSpec((1, 3 * H), rep),                  # bqkv
            pl.BlockSpec((H, H), rep),                      # wo
            pl.BlockSpec((1, H), rep),                      # bo
            pl.BlockSpec((1, H), rep),                      # ln1_g
            pl.BlockSpec((1, H), rep),                      # ln1_b
            pl.BlockSpec((H, FFN), rep),                    # w1
            pl.BlockSpec((1, FFN), rep),                    # b1
            pl.BlockSpec((FFN, H), rep),                    # w2
            pl.BlockSpec((1, H), rep),                      # b2
            pl.BlockSpec((1, H), rep),                      # ln2_g
            pl.BlockSpec((1, H), rep),                      # ln2_b
        ],
        out_specs=pl.BlockSpec((1, S, H), lambda b: (b, 0, 0)),
        compiler_params=pltpu.CompilerParams(
            dimension_semantics=("parallel",),              # shard batch over TCs (v7x)
            vmem_limit_bytes=32 * 1024 * 1024,
        ),
    )(x, mask_add,
      p["wqkv"], p["bqkv"].reshape(1, -1),
      p["wo"], p["bo"].reshape(1, -1),
      p["ln1_g"].reshape(1, -1), p["ln1_b"].reshape(1, -1),
      p["w1"], p["b1"].reshape(1, -1),
      p["w2"], p["b2"].reshape(1, -1),
      p["ln2_g"].reshape(1, -1), p["ln2_b"].reshape(1, -1))


def _pooler_head_kernel(x_ref, wp_ref, bp_ref, wl_ref, bl_ref, o_ref):
    """embedding = (tanh(cls @ Wp + bp)) @ Wl + bl  (BERT pooler + linear head, fused)."""
    pooled = jnp.tanh(_mm(x_ref[...].astype(jnp.float32), wp_ref[...]) + bp_ref[...])
    o_ref[...] = (_mm(pooled, wl_ref[...]) + bl_ref[...]).astype(o_ref.dtype)


def pooler_head(cls_feats, wp, bp, wl, bl):
    B, H = cls_feats.shape
    _, N = wl.shape
    return pl.pallas_call(
        _pooler_head_kernel,
        out_shape=jax.ShapeDtypeStruct((B, N), cls_feats.dtype),
        grid=(1,),
        in_specs=[
            pl.BlockSpec((B, H), lambda i: (0, 0)),
            pl.BlockSpec((H, H), lambda i: (0, 0)),
            pl.BlockSpec((1, H), lambda i: (0, 0)),
            pl.BlockSpec((H, N), lambda i: (0, 0)),
            pl.BlockSpec((1, N), lambda i: (0, 0)),
        ],
        out_specs=pl.BlockSpec((B, N), lambda i: (0, 0)),
        compiler_params=pltpu.CompilerParams(dimension_semantics=("arbitrary",)),
    )(cls_feats, wp, bp.reshape(1, H), wl, bl.reshape(1, N))


# ------------------------------- model (glue) ---------------------------------
def arbert_revdict_forward(params, input_ids, token_type_ids, attention_mask):
    B, S = input_ids.shape

    # BERT embeddings (gather is glue; normalization in-kernel)
    emb = (
        params["tok_emb"][input_ids]
        + params["pos_emb"][jnp.arange(S)][None, :, :]
        + params["type_emb"][token_type_ids]
    )
    x = layernorm(emb.reshape(B * S, HIDDEN), params["emb_ln_g"], params["emb_ln_b"])
    x = x.reshape(B, S, HIDDEN)

    # additive attention mask: 0 where attended, -1e9 where padded; (B, 1, S)
    mask_add = ((1.0 - attention_mask.astype(jnp.float32)) * -1e9).reshape(B, 1, S)

    for p in params["layers"]:
        x = encoder_layer(x, mask_add, p)

    # pooler_output = tanh(W_p @ CLS + b_p), then nn.Linear(hidden, max_len)
    cls = x[:, 0, :]
    return pooler_head(
        cls, params["pooler_w"], params["pooler_b"], params["head_w"], params["head_b"]
    )


# ------------------------------ param init ------------------------------------
def init_params(key):
    def nrm(k, shape, scale=0.02):
        return (scale * jax.random.normal(k, shape)).astype(jnp.float32)

    keys = iter(jax.random.split(key, 16 + N_LAYERS * 8))
    params = {
        "tok_emb": nrm(next(keys), (VOCAB, HIDDEN)),
        "pos_emb": nrm(next(keys), (MAX_POS, HIDDEN)),
        "type_emb": nrm(next(keys), (TYPE_VOCAB, HIDDEN)),
        "emb_ln_g": jnp.ones((HIDDEN,), jnp.float32),
        "emb_ln_b": jnp.zeros((HIDDEN,), jnp.float32),
        "pooler_w": nrm(next(keys), (HIDDEN, HIDDEN)),
        "pooler_b": jnp.zeros((HIDDEN,), jnp.float32),
        "head_w": nrm(next(keys), (HIDDEN, MAX_LEN)),
        "head_b": jnp.zeros((MAX_LEN,), jnp.float32),
        "layers": [],
    }
    for _ in range(N_LAYERS):
        layer = {
            # Q|K|V fused into one (H, 3H) weight / (3H,) bias
            "wqkv": nrm(next(keys), (HIDDEN, 3 * HIDDEN)),
            "bqkv": jnp.zeros((3 * HIDDEN,), jnp.float32),
            "wo": nrm(next(keys), (HIDDEN, HIDDEN)), "bo": jnp.zeros((HIDDEN,), jnp.float32),
            "w1": nrm(next(keys), (HIDDEN, FFN)),    "b1": jnp.zeros((FFN,), jnp.float32),
            "w2": nrm(next(keys), (FFN, HIDDEN)),    "b2": jnp.zeros((HIDDEN,), jnp.float32),
            "ln1_g": jnp.ones((HIDDEN,), jnp.float32), "ln1_b": jnp.zeros((HIDDEN,), jnp.float32),
            "ln2_g": jnp.ones((HIDDEN,), jnp.float32), "ln2_b": jnp.zeros((HIDDEN,), jnp.float32),
        }
        params["layers"].append(layer)
    return params


# ---------------------------------- main ---------------------------------------
if __name__ == "__main__":
    B, S = 2, 8
    root = jax.random.PRNGKey(0)
    k_ids, k_params = jax.random.split(root)

    input_ids = jax.random.randint(k_ids, (B, S), 0, VOCAB, dtype=jnp.int32)
    token_type_ids = jnp.zeros((B, S), jnp.int32)
    attention_mask = jnp.ones((B, S), jnp.int32)
    attention_mask = attention_mask.at[1, 6:].set(0)   # exercise the padding mask

    params = init_params(k_params)

    fwd = jax.jit(arbert_revdict_forward)
    out = fwd(params, input_ids, token_type_ids, attention_mask)
    out = jax.block_until_ready(out)

    assert out.shape == (B, MAX_LEN), out.shape
    assert out.dtype == jnp.float32
    assert bool(jnp.all(jnp.isfinite(out)))
    print("KERNEL_OK")
</pallas_src>

<mosaic_0001>
module attributes {stable_mosaic.version = 11 : i64} {
  func.func @_encoder_layer_kernel(%arg0: i32, %arg1: memref<1x8x128xf32, #tpu.memory_space<vmem>>, %arg2: memref<1x1x8xf32, #tpu.memory_space<vmem>>, %arg3: memref<128x384xf32, #tpu.memory_space<vmem>>, %arg4: memref<1x384xf32, #tpu.memory_space<vmem>>, %arg5: memref<128x128xf32, #tpu.memory_space<vmem>>, %arg6: memref<1x128xf32, #tpu.memory_space<vmem>>, %arg7: memref<1x128xf32, #tpu.memory_space<vmem>>, %arg8: memref<1x128xf32, #tpu.memory_space<vmem>>, %arg9: memref<128x256xf32, #tpu.memory_space<vmem>>, %arg10: memref<1x256xf32, #tpu.memory_space<vmem>>, %arg11: memref<256x128xf32, #tpu.memory_space<vmem>>, %arg12: memref<1x128xf32, #tpu.memory_space<vmem>>, %arg13: memref<1x128xf32, #tpu.memory_space<vmem>>, %arg14: memref<1x128xf32, #tpu.memory_space<vmem>>, %arg15: memref<1x8x128xf32, #tpu.memory_space<vmem>>) attributes {dimension_semantics = [#tpu.dimension_semantics<parallel>], iteration_bounds = array<i64: 2>, scalar_prefetch = 0 : i64, scratch_operands = 0 : i64, tpu.core_type = #tpu.core_type<tc>, window_params = [{transform_indices = @transform_0, window_bounds = array<i64: 1, 8, 128>}, {transform_indices = @transform_1, window_bounds = array<i64: 1, 1, 8>}, {pipeline_mode = #tpu.pipeline_mode<synchronous>, transform_indices = @transform_2, window_bounds = array<i64: 128, 384>}, {pipeline_mode = #tpu.pipeline_mode<synchronous>, transform_indices = @transform_3, window_bounds = array<i64: 1, 384>}, {pipeline_mode = #tpu.pipeline_mode<synchronous>, transform_indices = @transform_4, window_bounds = array<i64: 128, 128>}, {pipeline_mode = #tpu.pipeline_mode<synchronous>, transform_indices = @transform_5, window_bounds = array<i64: 1, 128>}, {pipeline_mode = #tpu.pipeline_mode<synchronous>, transform_indices = @transform_6, window_bounds = array<i64: 1, 128>}, {pipeline_mode = #tpu.pipeline_mode<synchronous>, transform_indices = @transform_7, window_bounds = array<i64: 1, 128>}, {pipeline_mode = #tpu.pipeline_mode<synchronous>, transform_indices = @transform_8, window_bounds = array<i64: 128, 256>}, {pipeline_mode = #tpu.pipeline_mode<synchronous>, transform_indices = @transform_9, window_bounds = array<i64: 1, 256>}, {pipeline_mode = #tpu.pipeline_mode<synchronous>, transform_indices = @transform_10, window_bounds = array<i64: 256, 128>}, {pipeline_mode = #tpu.pipeline_mode<synchronous>, transform_indices = @transform_11, window_bounds = array<i64: 1, 128>}, {pipeline_mode = #tpu.pipeline_mode<synchronous>, transform_indices = @transform_12, window_bounds = array<i64: 1, 128>}, {pipeline_mode = #tpu.pipeline_mode<synchronous>, transform_indices = @transform_13, window_bounds = array<i64: 1, 128>}, {transform_indices = @transform_14, window_bounds = array<i64: 1, 8, 128>}]} {
    %c0 = arith.constant 0 : index
    %c0_0 = arith.constant 0 : index
    %c0_1 = arith.constant 0 : index
    %0 = vector.load %arg1[%c0, %c0_0, %c0_1] : memref<1x8x128xf32, #tpu.memory_space<vmem>>, vector<1x8x128xf32>
    %1 = vector.shape_cast %0 : vector<1x8x128xf32> to vector<8x128xf32>
    %c0_2 = arith.constant 0 : index
    %c0_3 = arith.constant 0 : index
    %c0_4 = arith.constant 0 : index
    %2 = vector.load %arg2[%c0_2, %c0_3, %c0_4] : memref<1x1x8xf32, #tpu.memory_space<vmem>>, vector<1x1x8xf32>
    %3 = vector.shape_cast %2 : vector<1x1x8xf32> to vector<1x8xf32>
    %c0_5 = arith.constant 0 : index
    %c0_6 = arith.constant 0 : index
    %4 = vector.load %arg3[%c0_5, %c0_6] : memref<128x384xf32, #tpu.memory_space<vmem>>, vector<128x384xf32>
    %5 = arith.truncf %1 : vector<8x128xf32> to vector<8x128xbf16>
    %6 = arith.truncf %4 : vector<128x384xf32> to vector<128x384xbf16>
    %cst = arith.constant dense<0.000000e+00> : vector<8x384xf32>
    %7 = tpu.matmul %5, %6, %cst {dimension_numbers = #tpu.dot_dimension_numbers<[1], [0], [0], [1], [0, 0, 1, 1], [], []>} : vector<8x128xbf16>, vector<128x384xbf16>, vector<8x384xf32> -> vector<8x384xf32>
    %c0_7 = arith.constant 0 : index
    %c0_8 = arith.constant 0 : index
    %8 = vector.load %arg4[%c0_7, %c0_8] : memref<1x384xf32, #tpu.memory_space<vmem>>, vector<1x384xf32>
    %9 = vector.broadcast %8 : vector<1x384xf32> to vector<8x384xf32>
    %10 = arith.addf %7, %9 : vector<8x384xf32>
    %11 = vector.extract_strided_slice %10 {offsets = [0, 0], sizes = [8, 128], strides = [1, 1]} : vector<8x384xf32> to vector<8x128xf32>
    %12 = vector.extract_strided_slice %10 {offsets = [0, 128], sizes = [8, 128], strides = [1, 1]} : vector<8x384xf32> to vector<8x128xf32>
    %13 = vector.extract_strided_slice %10 {offsets = [0, 256], sizes = [8, 128], strides = [1, 1]} : vector<8x384xf32> to vector<8x128xf32>
    %14 = vector.extract_strided_slice %11 {offsets = [0, 0], sizes = [8, 64], strides = [1, 1]} : vector<8x128xf32> to vector<8x64xf32>
    %15 = vector.extract_strided_slice %12 {offsets = [0, 0], sizes = [8, 64], strides = [1, 1]} : vector<8x128xf32> to vector<8x64xf32>
    %16 = vector.extract_strided_slice %13 {offsets = [0, 0], sizes = [8, 64], strides = [1, 1]} : vector<8x128xf32> to vector<8x64xf32>
    %17 = arith.truncf %14 : vector<8x64xf32> to vector<8x64xbf16>
    %18 = arith.truncf %15 : vector<8x64xf32> to vector<8x64xbf16>
    "tpu.trace_start"() <{level = 10 : i32, message = "qd,kd->qk"}> : () -> ()
    %cst_9 = arith.constant dense<0.000000e+00> : vector<8x8xf32>
    %19 = tpu.matmul %17, %18, %cst_9 {dimension_numbers = #tpu.dot_dimension_numbers<[1], [1], [0], [0], [0, 0, 1, 0], [], []>} : vector<8x64xbf16>, vector<8x64xbf16>, vector<8x8xf32> -> vector<8x8xf32>
    "tpu.trace_stop"() : () -> ()
    %cst_10 = arith.constant 1.250000e-01 : f32
    %20 = vector.broadcast %cst_10 : f32 to vector<8x8xf32>
    %21 = arith.mulf %19, %20 : vector<8x8xf32>
    %22 = vector.broadcast %3 : vector<1x8xf32> to vector<8x8xf32>
    %23 = arith.addf %21, %22 : vector<8x8xf32>
    %cst_11 = arith.constant dense<0xFF800000> : vector<8xf32>
    %24 = vector.multi_reduction <maximumf>, %23, %cst_11 [1] : vector<8x8xf32> to vector<8xf32>
    %25 = vector.shape_cast %24 : vector<8xf32> to vector<8x1xf32>
    %26 = vector.broadcast %25 : vector<8x1xf32> to vector<8x8xf32>
    %27 = arith.subf %23, %26 : vector<8x8xf32>
    %28 = math.exp %27 : vector<8x8xf32>
    %cst_12 = arith.constant dense<0.000000e+00> : vector<8xf32>
    %29 = vector.multi_reduction <add>, %28, %cst_12 [1] : vector<8x8xf32> to vector<8xf32>
    %30 = vector.shape_cast %29 : vector<8xf32> to vector<8x1xf32>
    %31 = tpu.reciprocal %30 {approx = true} : vector<8x1xf32> -> vector<8x1xf32>
    %32 = vector.broadcast %31 : vector<8x1xf32> to vector<8x8xf32>
    %33 = arith.mulf %28, %32 : vector<8x8xf32>
    %34 = arith.truncf %33 : vector<8x8xf32> to vector<8x8xbf16>
    %35 = arith.truncf %16 : vector<8x64xf32> to vector<8x64xbf16>
    %cst_13 = arith.constant dense<0.000000e+00> : vector<8x64xf32>
    %36 = tpu.matmul %34, %35, %cst_13 {dimension_numbers = #tpu.dot_dimension_numbers<[1], [0], [0], [1], [0, 0, 1, 1], [], []>} : vector<8x8xbf16>, vector<8x64xbf16>, vector<8x64xf32> -> vector<8x64xf32>
    %37 = vector.extract_strided_slice %11 {offsets = [0, 64], sizes = [8, 64], strides = [1, 1]} : vector<8x128xf32> to vector<8x64xf32>
    %38 = vector.extract_strided_slice %12 {offsets = [0, 64], sizes = [8, 64], strides = [1, 1]} : vector<8x128xf32> to vector<8x64xf32>
    %39 = vector.extract_strided_slice %13 {offsets = [0, 64], sizes = [8, 64], strides = [1, 1]} : vector<8x128xf32> to vector<8x64xf32>
    %40 = arith.truncf %37 : vector<8x64xf32> to vector<8x64xbf16>
    %41 = arith.truncf %38 : vector<8x64xf32> to vector<8x64xbf16>
    "tpu.trace_start"() <{level = 10 : i32, message = "qd,kd->qk"}> : () -> ()
    %cst_14 = arith.constant dense<0.000000e+00> : vector<8x8xf32>
    %42 = tpu.matmul %40, %41, %cst_14 {dimension_numbers = #tpu.dot_dimension_numbers<[1], [1], [0], [0], [0, 0, 1, 0], [], []>} : vector<8x64xbf16>, vector<8x64xbf16>, vector<8x8xf32> -> vector<8x8xf32>
    "tpu.trace_stop"() : () -> ()
    %cst_15 = arith.constant 1.250000e-01 : f32
    %43 = vector.broadcast %cst_15 : f32 to vector<8x8xf32>
    %44 = arith.mulf %42, %43 : vector<8x8xf32>
    %45 = vector.broadcast %3 : vector<1x8xf32> to vector<8x8xf32>
    %46 = arith.addf %44, %45 : vector<8x8xf32>
    %cst_16 = arith.constant dense<0xFF800000> : vector<8xf32>
    %47 = vector.multi_reduction <maximumf>, %46, %cst_16 [1] : vector<8x8xf32> to vector<8xf32>
    %48 = vector.shape_cast %47 : vector<8xf32> to vector<8x1xf32>
    %49 = vector.broadcast %48 : vector<8x1xf32> to vector<8x8xf32>
    %50 = arith.subf %46, %49 : vector<8x8xf32>
    %51 = math.exp %50 : vector<8x8xf32>
    %cst_17 = arith.constant dense<0.000000e+00> : vector<8xf32>
    %52 = vector.multi_reduction <add>, %51, %cst_17 [1] : vector<8x8xf32> to vector<8xf32>
    %53 = vector.shape_cast %52 : vector<8xf32> to vector<8x1xf32>
    %54 = tpu.reciprocal %53 {approx = true} : vector<8x1xf32> -> vector<8x1xf32>
    %55 = vector.broadcast %54 : vector<8x1xf32> to vector<8x8xf32>
    %56 = arith.mulf %51, %55 : vector<8x8xf32>
    %57 = arith.truncf %56 : vector<8x8xf32> to vector<8x8xbf16>
    %58 = arith.truncf %39 : vector<8x64xf32> to vector<8x64xbf16>
    %cst_18 = arith.constant dense<0.000000e+00> : vector<8x64xf32>
    %59 = tpu.matmul %57, %58, %cst_18 {dimension_numbers = #tpu.dot_dimension_numbers<[1], [0], [0], [1], [0, 0, 1, 1], [], []>} : vector<8x8xbf16>, vector<8x64xbf16>, vector<8x64xf32> -> vector<8x64xf32>
    %60 = tpu.concatenate %36, %59 in 1 : vector<8x64xf32>, vector<8x64xf32> -> vector<8x128xf32>
    %c0_19 = arith.constant 0 : index
    %c0_20 = arith.constant 0 : index
    %61 = vector.load %arg5[%c0_19, %c0_20] : memref<128x128xf32, #tpu.memory_space<vmem>>, vector<128x128xf32>
    %62 = arith.truncf %60 : vector<8x128xf32> to vector<8x128xbf16>
    %63 = arith.truncf %61 : vector<128x128xf32> to vector<128x128xbf16>
    %cst_21 = arith.constant dense<0.000000e+00> : vector<8x128xf32>
    %64 = tpu.matmul %62, %63, %cst_21 {dimension_numbers = #tpu.dot_dimension_numbers<[1], [0], [0], [1], [0, 0, 1, 1], [], []>} : vector<8x128xbf16>, vector<128x128xbf16>, vector<8x128xf32> -> vector<8x128xf32>
    %c0_22 = arith.constant 0 : index
    %c0_23 = arith.constant 0 : index
    %65 = vector.load %arg6[%c0_22, %c0_23] : memref<1x128xf32, #tpu.memory_space<vmem>>, vector<1x128xf32>
    %66 = vector.broadcast %65 : vector<1x128xf32> to vector<8x128xf32>
    %67 = arith.addf %64, %66 : vector<8x128xf32>
    %68 = arith.addf %1, %67 : vector<8x128xf32>
    %c0_24 = arith.constant 0 : index
    %c0_25 = arith.constant 0 : index
    %69 = vector.load %arg7[%c0_24, %c0_25] : memref<1x128xf32, #tpu.memory_space<vmem>>, vector<1x128xf32>
    %c0_26 = arith.constant 0 : index
    %c0_27 = arith.constant 0 : index
    %70 = vector.load %arg8[%c0_26, %c0_27] : memref<1x128xf32, #tpu.memory_space<vmem>>, vector<1x128xf32>
    %cst_28 = arith.constant dense<0.000000e+00> : vector<8xf32>
    %71 = vector.multi_reduction <add>, %68, %cst_28 [1] : vector<8x128xf32> to vector<8xf32>
    %72 = vector.shape_cast %71 : vector<8xf32> to vector<8x1xf32>
    %cst_29 = arith.constant 1.280000e+02 : f32
    %73 = vector.broadcast %cst_29 : f32 to vector<8x1xf32>
    %74 = arith.divf %72, %73 : vector<8x1xf32>
    %75 = vector.broadcast %74 : vector<8x1xf32> to vector<8x128xf32>
    %76 = arith.subf %68, %75 : vector<8x128xf32>
    %77 = arith.mulf %76, %76 : vector<8x128xf32>
    %cst_30 = arith.constant dense<0.000000e+00> : vector<8xf32>
    %78 = vector.multi_reduction <add>, %77, %cst_30 [1] : vector<8x128xf32> to vector<8xf32>
    %79 = vector.shape_cast %78 : vector<8xf32> to vector<8x1xf32>
    %cst_31 = arith.constant 1.280000e+02 : f32
    %80 = vector.broadcast %cst_31 : f32 to vector<8x1xf32>
    %81 = arith.divf %79, %80 : vector<8x1xf32>
    %82 = vector.broadcast %74 : vector<8x1xf32> to vector<8x128xf32>
    %83 = arith.subf %68, %82 : vector<8x128xf32>
    %cst_32 = arith.constant 9.99999996E-13 : f32
    %84 = vector.broadcast %cst_32 : f32 to vector<8x1xf32>
    %85 = arith.addf %81, %84 : vector<8x1xf32>
    %86 = math.rsqrt %85 : vector<8x1xf32>
    %87 = vector.broadcast %86 : vector<8x1xf32> to vector<8x128xf32>
    %88 = arith.mulf %83, %87 : vector<8x128xf32>
    %89 = vector.broadcast %69 : vector<1x128xf32> to vector<8x128xf32>
    %90 = arith.mulf %88, %89 : vector<8x128xf32>
    %91 = vector.broadcast %70 : vector<1x128xf32> to vector<8x128xf32>
    %92 = arith.addf %90, %91 : vector<8x128xf32>
    %c0_33 = arith.constant 0 : index
    %c0_34 = arith.constant 0 : index
    %93 = vector.load %arg9[%c0_33, %c0_34] : memref<128x256xf32, #tpu.memory_space<vmem>>, vector<128x256xf32>
    %94 = arith.truncf %92 : vector<8x128xf32> to vector<8x128xbf16>
    %95 = arith.truncf %93 : vector<128x256xf32> to vector<128x256xbf16>
    %cst_35 = arith.constant dense<0.000000e+00> : vector<8x256xf32>
    %96 = tpu.matmul %94, %95, %cst_35 {dimension_numbers = #tpu.dot_dimension_numbers<[1], [0], [0], [1], [0, 0, 1, 1], [], []>} : vector<8x128xbf16>, vector<128x256xbf16>, vector<8x256xf32> -> vector<8x256xf32>
    %c0_36 = arith.constant 0 : index
    %c0_37 = arith.constant 0 : index
    %97 = vector.load %arg10[%c0_36, %c0_37] : memref<1x256xf32, #tpu.memory_space<vmem>>, vector<1x256xf32>
    %98 = vector.broadcast %97 : vector<1x256xf32> to vector<8x256xf32>
    %99 = arith.addf %96, %98 : vector<8x256xf32>
    %cst_38 = arith.constant 5.000000e-01 : f32
    %100 = vector.broadcast %cst_38 : f32 to vector<8x256xf32>
    %101 = arith.mulf %100, %99 : vector<8x256xf32>
    %cst_39 = arith.constant 4.471500e-02 : f32
    %102 = vector.broadcast %cst_39 : f32 to vector<8x256xf32>
    %103 = arith.mulf %102, %99 : vector<8x256xf32>
    %104 = arith.mulf %103, %99 : vector<8x256xf32>
    %105 = arith.mulf %104, %99 : vector<8x256xf32>
    %106 = arith.addf %99, %105 : vector<8x256xf32>
    %cst_40 = arith.constant 0.797884583 : f32
    %107 = vector.broadcast %cst_40 : f32 to vector<8x256xf32>
    %108 = arith.mulf %107, %106 : vector<8x256xf32>
    %109 = math.tanh %108 : vector<8x256xf32>
    %cst_41 = arith.constant 1.000000e+00 : f32
    %110 = vector.broadcast %cst_41 : f32 to vector<8x256xf32>
    %111 = arith.addf %110, %109 : vector<8x256xf32>
    %112 = arith.mulf %101, %111 : vector<8x256xf32>
    %c0_42 = arith.constant 0 : index
    %c0_43 = arith.constant 0 : index
    %113 = vector.load %arg11[%c0_42, %c0_43] : memref<256x128xf32, #tpu.memory_space<vmem>>, vector<256x128xf32>
    %114 = arith.truncf %112 : vector<8x256xf32> to vector<8x256xbf16>
    %115 = arith.truncf %113 : vector<256x128xf32> to vector<256x128xbf16>
    %cst_44 = arith.constant dense<0.000000e+00> : vector<8x128xf32>
    %116 = tpu.matmul %114, %115, %cst_44 {dimension_numbers = #tpu.dot_dimension_numbers<[1], [0], [0], [1], [0, 0, 1, 1], [], []>} : vector<8x256xbf16>, vector<256x128xbf16>, vector<8x128xf32> -> vector<8x128xf32>
    %c0_45 = arith.constant 0 : index
    %c0_46 = arith.constant 0 : index
    %117 = vector.load %arg12[%c0_45, %c0_46] : memref<1x128xf32, #tpu.memory_space<vmem>>, vector<1x128xf32>
    %118 = vector.broadcast %117 : vector<1x128xf32> to vector<8x128xf32>
    %119 = arith.addf %116, %118 : vector<8x128xf32>
    %120 = arith.addf %92, %119 : vector<8x128xf32>
    %c0_47 = arith.constant 0 : index
    %c0_48 = arith.constant 0 : index
    %121 = vector.load %arg13[%c0_47, %c0_48] : memref<1x128xf32, #tpu.memory_space<vmem>>, vector<1x128xf32>
    %c0_49 = arith.constant 0 : index
    %c0_50 = arith.constant 0 : index
    %122 = vector.load %arg14[%c0_49, %c0_50] : memref<1x128xf32, #tpu.memory_space<vmem>>, vector<1x128xf32>
    %cst_51 = arith.constant dense<0.000000e+00> : vector<8xf32>
    %123 = vector.multi_reduction <add>, %120, %cst_51 [1] : vector<8x128xf32> to vector<8xf32>
    %124 = vector.shape_cast %123 : vector<8xf32> to vector<8x1xf32>
    %cst_52 = arith.constant 1.280000e+02 : f32
    %125 = vector.broadcast %cst_52 : f32 to vector<8x1xf32>
    %126 = arith.divf %124, %125 : vector<8x1xf32>
    %127 = vector.broadcast %126 : vector<8x1xf32> to vector<8x128xf32>
    %128 = arith.subf %120, %127 : vector<8x128xf32>
    %129 = arith.mulf %128, %128 : vector<8x128xf32>
    %cst_53 = arith.constant dense<0.000000e+00> : vector<8xf32>
    %130 = vector.multi_reduction <add>, %129, %cst_53 [1] : vector<8x128xf32> to vector<8xf32>
    %131 = vector.shape_cast %130 : vector<8xf32> to vector<8x1xf32>
    %cst_54 = arith.constant 1.280000e+02 : f32
    %132 = vector.broadcast %cst_54 : f32 to vector<8x1xf32>
    %133 = arith.divf %131, %132 : vector<8x1xf32>
    %134 = vector.broadcast %126 : vector<8x1xf32> to vector<8x128xf32>
    %135 = arith.subf %120, %134 : vector<8x128xf32>
    %cst_55 = arith.constant 9.99999996E-13 : f32
    %136 = vector.broadcast %cst_55 : f32 to vector<8x1xf32>
    %137 = arith.addf %133, %136 : vector<8x1xf32>
    %138 = math.rsqrt %137 : vector<8x1xf32>
    %139 = vector.broadcast %138 : vector<8x1xf32> to vector<8x128xf32>
    %140 = arith.mulf %135, %139 : vector<8x128xf32>
    %141 = vector.broadcast %121 : vector<1x128xf32> to vector<8x128xf32>
    %142 = arith.mulf %140, %141 : vector<8x128xf32>
    %143 = vector.broadcast %122 : vector<1x128xf32> to vector<8x128xf32>
    %144 = arith.addf %142, %143 : vector<8x128xf32>
    %c0_56 = arith.constant 0 : index
    %c0_57 = arith.constant 0 : index
    %c0_58 = arith.constant 0 : index
    %145 = vector.load %arg15[%c0_56, %c0_57, %c0_58] : memref<1x8x128xf32, #tpu.memory_space<vmem>>, vector<1x8x128xf32>
    %146 = vector.shape_cast %145 : vector<1x8x128xf32> to vector<8x128xf32>
    %147 = vector.shape_cast %144 : vector<8x128xf32> to vector<1x8x128xf32>
    tpu.vector_store %arg15[%c0_56, %c0_57, %c0_58], %147 {strides = array<i32>} : memref<1x8x128xf32, #tpu.memory_space<vmem>>, vector<1x8x128xf32>,
    return
  }
  func.func @transform_0(%arg0: i32) -> (i32, i32, i32) {
    %c0_i32 = arith.constant 0 : i32
    %c0_i32_0 = arith.constant 0 : i32
    %c0_i32_1 = arith.constant 0 : i32
    return %arg0, %c0_i32, %c0_i32_0 : i32, i32, i32
  }
  func.func @transform_1(%arg0: i32) -> (i32, i32, i32) {
    %c0_i32 = arith.constant 0 : i32
    %c0_i32_0 = arith.constant 0 : i32
    %c0_i32_1 = arith.constant 0 : i32
    return %arg0, %c0_i32, %c0_i32_0 : i32, i32, i32
  }
  func.func @transform_2(%arg0: i32) -> (i32, i32) {
    %c0_i32 = arith.constant 0 : i32
    %c0_i32_0 = arith.constant 0 : i32
    %c0_i32_1 = arith.constant 0 : i32
    return %c0_i32, %c0_i32_0 : i32, i32
  }
  func.func @transform_3(%arg0: i32) -> (i32, i32) {
    %c0_i32 = arith.constant 0 : i32
    %c0_i32_0 = arith.constant 0 : i32
    %c0_i32_1 = arith.constant 0 : i32
    return %c0_i32, %c0_i32_0 : i32, i32
  }
  func.func @transform_4(%arg0: i32) -> (i32, i32) {
    %c0_i32 = arith.constant 0 : i32
    %c0_i32_0 = arith.constant 0 : i32
    %c0_i32_1 = arith.constant 0 : i32
    return %c0_i32, %c0_i32_0 : i32, i32
  }
  func.func @transform_5(%arg0: i32) -> (i32, i32) {
    %c0_i32 = arith.constant 0 : i32
    %c0_i32_0 = arith.constant 0 : i32
    %c0_i32_1 = arith.constant 0 : i32
    return %c0_i32, %c0_i32_0 : i32, i32
  }
  func.func @transform_6(%arg0: i32) -> (i32, i32) {
    %c0_i32 = arith.constant 0 : i32
    %c0_i32_0 = arith.constant 0 : i32
    %c0_i32_1 = arith.constant 0 : i32
    return %c0_i32, %c0_i32_0 : i32, i32
  }
  func.func @transform_7(%arg0: i32) -> (i32, i32) {
    %c0_i32 = arith.constant 0 : i32
    %c0_i32_0 = arith.constant 0 : i32
    %c0_i32_1 = arith.constant 0 : i32
    return %c0_i32, %c0_i32_0 : i32, i32
  }
  func.func @transform_8(%arg0: i32) -> (i32, i32) {
    %c0_i32 = arith.constant 0 : i32
    %c0_i32_0 = arith.constant 0 : i32
    %c0_i32_1 = arith.constant 0 : i32
    return %c0_i32, %c0_i32_0 : i32, i32
  }
  func.func @transform_9(%arg0: i32) -> (i32, i32) {
    %c0_i32 = arith.constant 0 : i32
    %c0_i32_0 = arith.constant 0 : i32
    %c0_i32_1 = arith.constant 0 : i32
    return %c0_i32, %c0_i32_0 : i32, i32
  }
  func.func @transform_10(%arg0: i32) -> (i32, i32) {
    %c0_i32 = arith.constant 0 : i32
    %c0_i32_0 = arith.constant 0 : i32
    %c0_i32_1 = arith.constant 0 : i32
    return %c0_i32, %c0_i32_0 : i32, i32
  }
  func.func @transform_11(%arg0: i32) -> (i32, i32) {
    %c0_i32 = arith.constant 0 : i32
    %c0_i32_0 = arith.constant 0 : i32
    %c0_i32_1 = arith.constant 0 : i32
    return %c0_i32, %c0_i32_0 : i32, i32
  }
  func.func @transform_12(%arg0: i32) -> (i32, i32) {
    %c0_i32 = arith.constant 0 : i32
    %c0_i32_0 = arith.constant 0 : i32
    %c0_i32_1 = arith.constant 0 : i32
    return %c0_i32, %c0_i32_0 : i32, i32
  }
  func.func @transform_13(%arg0: i32) -> (i32, i32) {
    %c0_i32 = arith.constant 0 : i32
    %c0_i32_0 = arith.constant 0 : i32
    %c0_i32_1 = arith.constant 0 : i32
    return %c0_i32, %c0_i32_0 : i32, i32
  }
  func.func @transform_14(%arg0: i32) -> (i32, i32, i32) {
    %c0_i32 = arith.constant 0 : i32
    %c0_i32_0 = arith.constant 0 : i32
    %c0_i32_1 = arith.constant 0 : i32
    return %arg0, %c0_i32, %c0_i32_0 : i32, i32, i32
  }
}

module attributes {stable_mosaic.version = 11 : i64} {
  func.func @_pooler_head_kernel(%arg0: i32, %arg1: memref<2x128xf32, #tpu.memory_space<vmem>>, %arg2: memref<128x128xf32, #tpu.memory_space<vmem>>, %arg3: memref<1x128xf32, #tpu.memory_space<vmem>>, %arg4: memref<128x128xf32, #tpu.memory_space<vmem>>, %arg5: memref<1x128xf32, #tpu.memory_space<vmem>>, %arg6: memref<2x128xf32, #tpu.memory_space<vmem>>) attributes {dimension_semantics = [#tpu.dimension_semantics<arbitrary>], iteration_bounds = array<i64: 1>, scalar_prefetch = 0 : i64, scratch_operands = 0 : i64, tpu.core_type = #tpu.core_type<tc>, window_params = [{pipeline_mode = #tpu.pipeline_mode<synchronous>, transform_indices = @transform_0, window_bounds = array<i64: 2, 128>}, {pipeline_mode = #tpu.pipeline_mode<synchronous>, transform_indices = @transform_1, window_bounds = array<i64: 128, 128>}, {pipeline_mode = #tpu.pipeline_mode<synchronous>, transform_indices = @transform_2, window_bounds = array<i64: 1, 128>}, {pipeline_mode = #tpu.pipeline_mode<synchronous>, transform_indices = @transform_3, window_bounds = array<i64: 128, 128>}, {pipeline_mode = #tpu.pipeline_mode<synchronous>, transform_indices = @transform_4, window_bounds = array<i64: 1, 128>}, {pipeline_mode = #tpu.pipeline_mode<synchronous>, transform_indices = @transform_5, window_bounds = array<i64: 2, 128>}]} {
    %c0 = arith.constant 0 : index
    %c0_0 = arith.constant 0 : index
    %0 = vector.load %arg1[%c0, %c0_0] : memref<2x128xf32, #tpu.memory_space<vmem>>, vector<2x128xf32>
    %c0_1 = arith.constant 0 : index
    %c0_2 = arith.constant 0 : index
    %1 = vector.load %arg2[%c0_1, %c0_2] : memref<128x128xf32, #tpu.memory_space<vmem>>, vector<128x128xf32>
    %2 = arith.truncf %0 : vector<2x128xf32> to vector<2x128xbf16>
    %3 = arith.truncf %1 : vector<128x128xf32> to vector<128x128xbf16>
    %cst = arith.constant dense<0.000000e+00> : vector<2x128xf32>
    %4 = tpu.matmul %2, %3, %cst {dimension_numbers = #tpu.dot_dimension_numbers<[1], [0], [0], [1], [0, 0, 1, 1], [], []>} : vector<2x128xbf16>, vector<128x128xbf16>, vector<2x128xf32> -> vector<2x128xf32>
    %c0_3 = arith.constant 0 : index
    %c0_4 = arith.constant 0 : index
    %5 = vector.load %arg3[%c0_3, %c0_4] : memref<1x128xf32, #tpu.memory_space<vmem>>, vector<1x128xf32>
    %6 = vector.broadcast %5 : vector<1x128xf32> to vector<2x128xf32>
    %7 = arith.addf %4, %6 : vector<2x128xf32>
    %8 = math.tanh %7 : vector<2x128xf32>
    %c0_5 = arith.constant 0 : index
    %c0_6 = arith.constant 0 : index
    %9 = vector.load %arg4[%c0_5, %c0_6] : memref<128x128xf32, #tpu.memory_space<vmem>>, vector<128x128xf32>
    %10 = arith.truncf %8 : vector<2x128xf32> to vector<2x128xbf16>
    %11 = arith.truncf %9 : vector<128x128xf32> to vector<128x128xbf16>
    %cst_7 = arith.constant dense<0.000000e+00> : vector<2x128xf32>
    %12 = tpu.matmul %10, %11, %cst_7 {dimension_numbers = #tpu.dot_dimension_numbers<[1], [0], [0], [1], [0, 0, 1, 1], [], []>} : vector<2x128xbf16>, vector<128x128xbf16>, vector<2x128xf32> -> vector<2x128xf32>
    %c0_8 = arith.constant 0 : index
    %c0_9 = arith.constant 0 : index
    %13 = vector.load %arg5[%c0_8, %c0_9] : memref<1x128xf32, #tpu.memory_space<vmem>>, vector<1x128xf32>
    %14 = vector.broadcast %13 : vector<1x128xf32> to vector<2x128xf32>
    %15 = arith.addf %12, %14 : vector<2x128xf32>
    %c0_10 = arith.constant 0 : index
    %c0_11 = arith.constant 0 : index
    %16 = vector.load %arg6[%c0_10, %c0_11] : memref<2x128xf32, #tpu.memory_space<vmem>>, vector<2x128xf32>
    tpu.vector_store %arg6[%c0_10, %c0_11], %15 {strides = array<i32>} : memref<2x128xf32, #tpu.memory_space<vmem>>, vector<2x128xf32>,
    return
  }
  func.func @transform_0(%arg0: i32) -> (i32, i32) {
    %c0_i32 = arith.constant 0 : i32
    %c0_i32_0 = arith.constant 0 : i32
    %c0_i32_1 = arith.constant 0 : i32
    return %c0_i32, %c0_i32_0 : i32, i32
  }
  func.func @transform_1(%arg0: i32) -> (i32, i32) {
    %c0_i32 = arith.constant 0 : i32
    %c0_i32_0 = arith.constant 0 : i32
    %c0_i32_1 = arith.constant 0 : i32
    return %c0_i32, %c0_i32_0 : i32, i32
  }
  func.func @transform_2(%arg0: i32) -> (i32, i32) {
    %c0_i32 = arith.constant 0 : i32
    %c0_i32_0 = arith.constant 0 : i32
    %c0_i32_1 = arith.constant 0 : i32
    return %c0_i32, %c0_i32_0 : i32, i32
  }
  func.func @transform_3(%arg0: i32) -> (i32, i32) {
    %c0_i32 = arith.constant 0 : i32
    %c0_i32_0 = arith.constant 0 : i32
    %c0_i32_1 = arith.constant 0 : i32
    return %c0_i32, %c0_i32_0 : i32, i32
  }
  func.func @transform_4(%arg0: i32) -> (i32, i32) {
    %c0_i32 = arith.constant 0 : i32
    %c0_i32_0 = arith.constant 0 : i32
    %c0_i32_1 = arith.constant 0 : i32
    return %c0_i32, %c0_i32_0 : i32, i32
  }
  func.func @transform_5(%arg0: i32) -> (i32, i32) {
    %c0_i32 = arith.constant 0 : i32
    %c0_i32_0 = arith.constant 0 : i32
    %c0_i32_1 = arith.constant 0 : i32
    return %c0_i32, %c0_i32_0 : i32, i32
  }
}

module attributes {stable_mosaic.version = 11 : i64} {
  func.func @_layernorm_kernel(%arg0: i32, %arg1: memref<16x128xf32, #tpu.memory_space<vmem>>, %arg2: memref<1x128xf32, #tpu.memory_space<vmem>>, %arg3: memref<1x128xf32, #tpu.memory_space<vmem>>, %arg4: memref<16x128xf32, #tpu.memory_space<vmem>>) attributes {dimension_semantics = [#tpu.dimension_semantics<arbitrary>], iteration_bounds = array<i64: 1>, scalar_prefetch = 0 : i64, scratch_operands = 0 : i64, tpu.core_type = #tpu.core_type<tc>, window_params = [{pipeline_mode = #tpu.pipeline_mode<synchronous>, transform_indices = @transform_0, window_bounds = array<i64: 16, 128>}, {pipeline_mode = #tpu.pipeline_mode<synchronous>, transform_indices = @transform_1, window_bounds = array<i64: 1, 128>}, {pipeline_mode = #tpu.pipeline_mode<synchronous>, transform_indices = @transform_2, window_bounds = array<i64: 1, 128>}, {pipeline_mode = #tpu.pipeline_mode<synchronous>, transform_indices = @transform_3, window_bounds = array<i64: 16, 128>}]} {
    %c0 = arith.constant 0 : index
    %c0_0 = arith.constant 0 : index
    %0 = vector.load %arg1[%c0, %c0_0] : memref<16x128xf32, #tpu.memory_space<vmem>>, vector<16x128xf32>
    %c0_1 = arith.constant 0 : index
    %c0_2 = arith.constant 0 : index
    %1 = vector.load %arg2[%c0_1, %c0_2] : memref<1x128xf32, #tpu.memory_space<vmem>>, vector<1x128xf32>
    %c0_3 = arith.constant 0 : index
    %c0_4 = arith.constant 0 : index
    %2 = vector.load %arg3[%c0_3, %c0_4] : memref<1x128xf32, #tpu.memory_space<vmem>>, vector<1x128xf32>
    %cst = arith.constant dense<0.000000e+00> : vector<16xf32>
    %3 = vector.multi_reduction <add>, %0, %cst [1] : vector<16x128xf32> to vector<16xf32>
    %4 = vector.shape_cast %3 : vector<16xf32> to vector<16x1xf32>
    %cst_5 = arith.constant 1.280000e+02 : f32
    %5 = vector.broadcast %cst_5 : f32 to vector<16x1xf32>
    %6 = arith.divf %4, %5 : vector<16x1xf32>
    %7 = vector.broadcast %6 : vector<16x1xf32> to vector<16x128xf32>
    %8 = arith.subf %0, %7 : vector<16x128xf32>
    %9 = arith.mulf %8, %8 : vector<16x128xf32>
    %cst_6 = arith.constant dense<0.000000e+00> : vector<16xf32>
    %10 = vector.multi_reduction <add>, %9, %cst_6 [1] : vector<16x128xf32> to vector<16xf32>
    %11 = vector.shape_cast %10 : vector<16xf32> to vector<16x1xf32>
    %cst_7 = arith.constant 1.280000e+02 : f32
    %12 = vector.broadcast %cst_7 : f32 to vector<16x1xf32>
    %13 = arith.divf %11, %12 : vector<16x1xf32>
    %14 = vector.broadcast %6 : vector<16x1xf32> to vector<16x128xf32>
    %15 = arith.subf %0, %14 : vector<16x128xf32>
    %cst_8 = arith.constant 9.99999996E-13 : f32
    %16 = vector.broadcast %cst_8 : f32 to vector<16x1xf32>
    %17 = arith.addf %13, %16 : vector<16x1xf32>
    %18 = math.rsqrt %17 : vector<16x1xf32>
    %19 = vector.broadcast %18 : vector<16x1xf32> to vector<16x128xf32>
    %20 = arith.mulf %15, %19 : vector<16x128xf32>
    %21 = vector.broadcast %1 : vector<1x128xf32> to vector<16x128xf32>
    %22 = arith.mulf %20, %21 : vector<16x128xf32>
    %23 = vector.broadcast %2 : vector<1x128xf32> to vector<16x128xf32>
    %24 = arith.addf %22, %23 : vector<16x128xf32>
    %c0_9 = arith.constant 0 : index
    %c0_10 = arith.constant 0 : index
    %25 = vector.load %arg4[%c0_9, %c0_10] : memref<16x128xf32, #tpu.memory_space<vmem>>, vector<16x128xf32>
    tpu.vector_store %arg4[%c0_9, %c0_10], %24 {strides = array<i32>} : memref<16x128xf32, #tpu.memory_space<vmem>>, vector<16x128xf32>,
    return
  }
  func.func @transform_0(%arg0: i32) -> (i32, i32) {
    %c0_i32 = arith.constant 0 : i32
    %c0_i32_0 = arith.constant 0 : i32
    %c0_i32_1 = arith.constant 0 : i32
    return %c0_i32, %c0_i32_0 : i32, i32
  }
  func.func @transform_1(%arg0: i32) -> (i32, i32) {
    %c0_i32 = arith.constant 0 : i32
    %c0_i32_0 = arith.constant 0 : i32
    %c0_i32_1 = arith.constant 0 : i32
    return %c0_i32, %c0_i32_0 : i32, i32
  }
  func.func @transform_2(%arg0: i32) -> (i32, i32) {
    %c0_i32 = arith.constant 0 : i32
    %c0_i32_0 = arith.constant 0 : i32
    %c0_i32_1 = arith.constant 0 : i32
    return %c0_i32, %c0_i32_0 : i32, i32
  }
  func.func @transform_3(%arg0: i32) -> (i32, i32) {
    %c0_i32 = arith.constant 0 : i32
    %c0_i32_0 = arith.constant 0 : i32
    %c0_i32_1 = arith.constant 0 : i32
    return %c0_i32, %c0_i32_0 : i32, i32
  }
}

module attributes {stable_mosaic.version = 11 : i64} {
  func.func @_encoder_layer_kernel(%arg0: i32, %arg1: memref<1x8x128xf32, #tpu.memory_space<vmem>>, %arg2: memref<1x1x8xf32, #tpu.memory_space<vmem>>, %arg3: memref<128x384xf32, #tpu.memory_space<vmem>>, %arg4: memref<1x384xf32, #tpu.memory_space<vmem>>, %arg5: memref<128x128xf32, #tpu.memory_space<vmem>>, %arg6: memref<1x128xf32, #tpu.memory_space<vmem>>, %arg7: memref<1x128xf32, #tpu.memory_space<vmem>>, %arg8: memref<1x128xf32, #tpu.memory_space<vmem>>, %arg9: memref<128x256xf32, #tpu.memory_space<vmem>>, %arg10: memref<1x256xf32, #tpu.memory_space<vmem>>, %arg11: memref<256x128xf32, #tpu.memory_space<vmem>>, %arg12: memref<1x128xf32, #tpu.memory_space<vmem>>, %arg13: memref<1x128xf32, #tpu.memory_space<vmem>>, %arg14: memref<1x128xf32, #tpu.memory_space<vmem>>, %arg15: memref<1x8x128xf32, #tpu.memory_space<vmem>>) attributes {dimension_semantics = [#tpu.dimension_semantics<parallel>], iteration_bounds = array<i64: 2>, scalar_prefetch = 0 : i64, scratch_operands = 0 : i64, tpu.core_type = #tpu.core_type<tc>, window_params = [{transform_indices = @transform_0, window_bounds = array<i64: 1, 8, 128>}, {transform_indices = @transform_1, window_bounds = array<i64: 1, 1, 8>}, {pipeline_mode = #tpu.pipeline_mode<synchronous>, transform_indices = @transform_2, window_bounds = array<i64: 128, 384>}, {pipeline_mode = #tpu.pipeline_mode<synchronous>, transform_indices = @transform_3, window_bounds = array<i64: 1, 384>}, {pipeline_mode = #tpu.pipeline_mode<synchronous>, transform_indices = @transform_4, window_bounds = array<i64: 128, 128>}, {pipeline_mode = #tpu.pipeline_mode<synchronous>, transform_indices = @transform_5, window_bounds = array<i64: 1, 128>}, {pipeline_mode = #tpu.pipeline_mode<synchronous>, transform_indices = @transform_6, window_bounds = array<i64: 1, 128>}, {pipeline_mode = #tpu.pipeline_mode<synchronous>, transform_indices = @transform_7, window_bounds = array<i64: 1, 128>}, {pipeline_mode = #tpu.pipeline_mode<synchronous>, transform_indices = @transform_8, window_bounds = array<i64: 128, 256>}, {pipeline_mode = #tpu.pipeline_mode<synchronous>, transform_indices = @transform_9, window_bounds = array<i64: 1, 256>}, {pipeline_mode = #tpu.pipeline_mode<synchronous>, transform_indices = @transform_10, window_bounds = array<i64: 256, 128>}, {pipeline_mode = #tpu.pipeline_mode<synchronous>, transform_indices = @transform_11, window_bounds = array<i64: 1, 128>}, {pipeline_mode = #tpu.pipeline_mode<synchronous>, transform_indices = @transform_12, window_bounds = array<i64: 1, 128>}, {pipeline_mode = #tpu.pipeline_mode<synchronous>, transform_indices = @transform_13, window_bounds = array<i64: 1, 128>}, {transform_indices = @transform_14, window_bounds = array<i64: 1, 8, 128>}]} {
    %c0 = arith.constant 0 : index
    %c0_0 = arith.constant 0 : index
    %c0_1 = arith.constant 0 : index
    %0 = vector.load %arg1[%c0, %c0_0, %c0_1] : memref<1x8x128xf32, #tpu.memory_space<vmem>>, vector<1x8x128xf32>
    %1 = vector.shape_cast %0 : vector<1x8x128xf32> to vector<8x128xf32>
    %c0_2 = arith.constant 0 : index
    %c0_3 = arith.constant 0 : index
    %c0_4 = arith.constant 0 : index
    %2 = vector.load %arg2[%c0_2, %c0_3, %c0_4] : memref<1x1x8xf32, #tpu.memory_space<vmem>>, vector<1x1x8xf32>
    %3 = vector.shape_cast %2 : vector<1x1x8xf32> to vector<1x8xf32>
    %c0_5 = arith.constant 0 : index
    %c0_6 = arith.constant 0 : index
    %4 = vector.load %arg3[%c0_5, %c0_6] : memref<128x384xf32, #tpu.memory_space<vmem>>, vector<128x384xf32>
    %5 = arith.truncf %1 : vector<8x128xf32> to vector<8x128xbf16>
    %6 = arith.truncf %4 : vector<128x384xf32> to vector<128x384xbf16>
    %cst = arith.constant dense<0.000000e+00> : vector<8x384xf32>
    %7 = tpu.matmul %5, %6, %cst {dimension_numbers = #tpu.dot_dimension_numbers<[1], [0], [0], [1], [0, 0, 1, 1], [], []>} : vector<8x128xbf16>, vector<128x384xbf16>, vector<8x384xf32> -> vector<8x384xf32>
    %c0_7 = arith.constant 0 : index
    %c0_8 = arith.constant 0 : index
    %8 = vector.load %arg4[%c0_7, %c0_8] : memref<1x384xf32, #tpu.memory_space<vmem>>, vector<1x384xf32>
    %9 = vector.broadcast %8 : vector<1x384xf32> to vector<8x384xf32>
    %10 = arith.addf %7, %9 : vector<8x384xf32>
    %11 = vector.extract_strided_slice %10 {offsets = [0, 0], sizes = [8, 128], strides = [1, 1]} : vector<8x384xf32> to vector<8x128xf32>
    %12 = vector.extract_strided_slice %10 {offsets = [0, 128], sizes = [8, 128], strides = [1, 1]} : vector<8x384xf32> to vector<8x128xf32>
    %13 = vector.extract_strided_slice %10 {offsets = [0, 256], sizes = [8, 128], strides = [1, 1]} : vector<8x384xf32> to vector<8x128xf32>
    %14 = vector.extract_strided_slice %11 {offsets = [0, 0], sizes = [8, 64], strides = [1, 1]} : vector<8x128xf32> to vector<8x64xf32>
    %15 = vector.extract_strided_slice %12 {offsets = [0, 0], sizes = [8, 64], strides = [1, 1]} : vector<8x128xf32> to vector<8x64xf32>
    %16 = vector.extract_strided_slice %13 {offsets = [0, 0], sizes = [8, 64], strides = [1, 1]} : vector<8x128xf32> to vector<8x64xf32>
    %17 = arith.truncf %14 : vector<8x64xf32> to vector<8x64xbf16>
    %18 = arith.truncf %15 : vector<8x64xf32> to vector<8x64xbf16>
    "tpu.trace_start"() <{level = 10 : i32, message = "qd,kd->qk"}> : () -> ()
    %cst_9 = arith.constant dense<0.000000e+00> : vector<8x8xf32>
    %19 = tpu.matmul %17, %18, %cst_9 {dimension_numbers = #tpu.dot_dimension_numbers<[1], [1], [0], [0], [0, 0, 1, 0], [], []>} : vector<8x64xbf16>, vector<8x64xbf16>, vector<8x8xf32> -> vector<8x8xf32>
    "tpu.trace_stop"() : () -> ()
    %cst_10 = arith.constant 1.250000e-01 : f32
    %20 = vector.broadcast %cst_10 : f32 to vector<8x8xf32>
    %21 = arith.mulf %19, %20 : vector<8x8xf32>
    %22 = vector.broadcast %3 : vector<1x8xf32> to vector<8x8xf32>
    %23 = arith.addf %21, %22 : vector<8x8xf32>
    %cst_11 = arith.constant dense<0xFF800000> : vector<8xf32>
    %24 = vector.multi_reduction <maximumf>, %23, %cst_11 [1] : vector<8x8xf32> to vector<8xf32>
    %25 = vector.shape_cast %24 : vector<8xf32> to vector<8x1xf32>
    %26 = vector.broadcast %25 : vector<8x1xf32> to vector<8x8xf32>
    %27 = arith.subf %23, %26 : vector<8x8xf32>
    %28 = math.exp %27 : vector<8x8xf32>
    %cst_12 = arith.constant dense<0.000000e+00> : vector<8xf32>
    %29 = vector.multi_reduction <add>, %28, %cst_12 [1] : vector<8x8xf32> to vector<8xf32>
    %30 = vector.shape_cast %29 : vector<8xf32> to vector<8x1xf32>
    %31 = tpu.reciprocal %30 {approx = true} : vector<8x1xf32> -> vector<8x1xf32>
    %32 = vector.broadcast %31 : vector<8x1xf32> to vector<8x8xf32>
    %33 = arith.mulf %28, %32 : vector<8x8xf32>
    %34 = arith.truncf %33 : vector<8x8xf32> to vector<8x8xbf16>
    %35 = arith.truncf %16 : vector<8x64xf32> to vector<8x64xbf16>
    %cst_13 = arith.constant dense<0.000000e+00> : vector<8x64xf32>
    %36 = tpu.matmul %34, %35, %cst_13 {dimension_numbers = #tpu.dot_dimension_numbers<[1], [0], [0], [1], [0, 0, 1, 1], [], []>} : vector<8x8xbf16>, vector<8x64xbf16>, vector<8x64xf32> -> vector<8x64xf32>
    %37 = vector.extract_strided_slice %11 {offsets = [0, 64], sizes = [8, 64], strides = [1, 1]} : vector<8x128xf32> to vector<8x64xf32>
    %38 = vector.extract_strided_slice %12 {offsets = [0, 64], sizes = [8, 64], strides = [1, 1]} : vector<8x128xf32> to vector<8x64xf32>
    %39 = vector.extract_strided_slice %13 {offsets = [0, 64], sizes = [8, 64], strides = [1, 1]} : vector<8x128xf32> to vector<8x64xf32>
    %40 = arith.truncf %37 : vector<8x64xf32> to vector<8x64xbf16>
    %41 = arith.truncf %38 : vector<8x64xf32> to vector<8x64xbf16>
    "tpu.trace_start"() <{level = 10 : i32, message = "qd,kd->qk"}> : () -> ()
    %cst_14 = arith.constant dense<0.000000e+00> : vector<8x8xf32>
    %42 = tpu.matmul %40, %41, %cst_14 {dimension_numbers = #tpu.dot_dimension_numbers<[1], [1], [0], [0], [0, 0, 1, 0], [], []>} : vector<8x64xbf16>, vector<8x64xbf16>, vector<8x8xf32> -> vector<8x8xf32>
    "tpu.trace_stop"() : () -> ()
    %cst_15 = arith.constant 1.250000e-01 : f32
    %43 = vector.broadcast %cst_15 : f32 to vector<8x8xf32>
    %44 = arith.mulf %42, %43 : vector<8x8xf32>
    %45 = vector.broadcast %3 : vector<1x8xf32> to vector<8x8xf32>
    %46 = arith.addf %44, %45 : vector<8x8xf32>
    %cst_16 = arith.constant dense<0xFF800000> : vector<8xf32>
    %47 = vector.multi_reduction <maximumf>, %46, %cst_16 [1] : vector<8x8xf32> to vector<8xf32>
    %48 = vector.shape_cast %47 : vector<8xf32> to vector<8x1xf32>
    %49 = vector.broadcast %48 : vector<8x1xf32> to vector<8x8xf32>
    %50 = arith.subf %46, %49 : vector<8x8xf32>
    %51 = math.exp %50 : vector<8x8xf32>
    %cst_17 = arith.constant dense<0.000000e+00> : vector<8xf32>
    %52 = vector.multi_reduction <add>, %51, %cst_17 [1] : vector<8x8xf32> to vector<8xf32>
    %53 = vector.shape_cast %52 : vector<8xf32> to vector<8x1xf32>
    %54 = tpu.reciprocal %53 {approx = true} : vector<8x1xf32> -> vector<8x1xf32>
    %55 = vector.broadcast %54 : vector<8x1xf32> to vector<8x8xf32>
    %56 = arith.mulf %51, %55 : vector<8x8xf32>
    %57 = arith.truncf %56 : vector<8x8xf32> to vector<8x8xbf16>
    %58 = arith.truncf %39 : vector<8x64xf32> to vector<8x64xbf16>
    %cst_18 = arith.constant dense<0.000000e+00> : vector<8x64xf32>
    %59 = tpu.matmul %57, %58, %cst_18 {dimension_numbers = #tpu.dot_dimension_numbers<[1], [0], [0], [1], [0, 0, 1, 1], [], []>} : vector<8x8xbf16>, vector<8x64xbf16>, vector<8x64xf32> -> vector<8x64xf32>
    %60 = tpu.concatenate %36, %59 in 1 : vector<8x64xf32>, vector<8x64xf32> -> vector<8x128xf32>
    %c0_19 = arith.constant 0 : index
    %c0_20 = arith.constant 0 : index
    %61 = vector.load %arg5[%c0_19, %c0_20] : memref<128x128xf32, #tpu.memory_space<vmem>>, vector<128x128xf32>
    %62 = arith.truncf %60 : vector<8x128xf32> to vector<8x128xbf16>
    %63 = arith.truncf %61 : vector<128x128xf32> to vector<128x128xbf16>
    %cst_21 = arith.constant dense<0.000000e+00> : vector<8x128xf32>
    %64 = tpu.matmul %62, %63, %cst_21 {dimension_numbers = #tpu.dot_dimension_numbers<[1], [0], [0], [1], [0, 0, 1, 1], [], []>} : vector<8x128xbf16>, vector<128x128xbf16>, vector<8x128xf32> -> vector<8x128xf32>
    %c0_22 = arith.constant 0 : index
    %c0_23 = arith.constant 0 : index
    %65 = vector.load %arg6[%c0_22, %c0_23] : memref<1x128xf32, #tpu.memory_space<vmem>>, vector<1x128xf32>
    %66 = vector.broadcast %65 : vector<1x128xf32> to vector<8x128xf32>
    %67 = arith.addf %64, %66 : vector<8x128xf32>
    %68 = arith.addf %1, %67 : vector<8x128xf32>
    %c0_24 = arith.constant 0 : index
    %c0_25 = arith.constant 0 : index
    %69 = vector.load %arg7[%c0_24, %c0_25] : memref<1x128xf32, #tpu.memory_space<vmem>>, vector<1x128xf32>
    %c0_26 = arith.constant 0 : index
    %c0_27 = arith.constant 0 : index
    %70 = vector.load %arg8[%c0_26, %c0_27] : memref<1x128xf32, #tpu.memory_space<vmem>>, vector<1x128xf32>
    %cst_28 = arith.constant dense<0.000000e+00> : vector<8xf32>
    %71 = vector.multi_reduction <add>, %68, %cst_28 [1] : vector<8x128xf32> to vector<8xf32>
    %72 = vector.shape_cast %71 : vector<8xf32> to vector<8x1xf32>
    %cst_29 = arith.constant 1.280000e+02 : f32
    %73 = vector.broadcast %cst_29 : f32 to vector<8x1xf32>
    %74 = arith.divf %72, %73 : vector<8x1xf32>
    %75 = vector.broadcast %74 : vector<8x1xf32> to vector<8x128xf32>
    %76 = arith.subf %68, %75 : vector<8x128xf32>
    %77 = arith.mulf %76, %76 : vector<8x128xf32>
    %cst_30 = arith.constant dense<0.000000e+00> : vector<8xf32>
    %78 = vector.multi_reduction <add>, %77, %cst_30 [1] : vector<8x128xf32> to vector<8xf32>
    %79 = vector.shape_cast %78 : vector<8xf32> to vector<8x1xf32>
    %cst_31 = arith.constant 1.280000e+02 : f32
    %80 = vector.broadcast %cst_31 : f32 to vector<8x1xf32>
    %81 = arith.divf %79, %80 : vector<8x1xf32>
    %82 = vector.broadcast %74 : vector<8x1xf32> to vector<8x128xf32>
    %83 = arith.subf %68, %82 : vector<8x128xf32>
    %cst_32 = arith.constant 9.99999996E-13 : f32
    %84 = vector.broadcast %cst_32 : f32 to vector<8x1xf32>
    %85 = arith.addf %81, %84 : vector<8x1xf32>
    %86 = math.rsqrt %85 : vector<8x1xf32>
    %87 = vector.broadcast %86 : vector<8x1xf32> to vector<8x128xf32>
    %88 = arith.mulf %83, %87 : vector<8x128xf32>
    %89 = vector.broadcast %69 : vector<1x128xf32> to vector<8x128xf32>
    %90 = arith.mulf %88, %89 : vector<8x128xf32>
    %91 = vector.broadcast %70 : vector<1x128xf32> to vector<8x128xf32>
    %92 = arith.addf %90, %91 : vector<8x128xf32>
    %c0_33 = arith.constant 0 : index
    %c0_34 = arith.constant 0 : index
    %93 = vector.load %arg9[%c0_33, %c0_34] : memref<128x256xf32, #tpu.memory_space<vmem>>, vector<128x256xf32>
    %94 = arith.truncf %92 : vector<8x128xf32> to vector<8x128xbf16>
    %95 = arith.truncf %93 : vector<128x256xf32> to vector<128x256xbf16>
    %cst_35 = arith.constant dense<0.000000e+00> : vector<8x256xf32>
    %96 = tpu.matmul %94, %95, %cst_35 {dimension_numbers = #tpu.dot_dimension_numbers<[1], [0], [0], [1], [0, 0, 1, 1], [], []>} : vector<8x128xbf16>, vector<128x256xbf16>, vector<8x256xf32> -> vector<8x256xf32>
    %c0_36 = arith.constant 0 : index
    %c0_37 = arith.constant 0 : index
    %97 = vector.load %arg10[%c0_36, %c0_37] : memref<1x256xf32, #tpu.memory_space<vmem>>, vector<1x256xf32>
    %98 = vector.broadcast %97 : vector<1x256xf32> to vector<8x256xf32>
    %99 = arith.addf %96, %98 : vector<8x256xf32>
    %cst_38 = arith.constant 5.000000e-01 : f32
    %100 = vector.broadcast %cst_38 : f32 to vector<8x256xf32>
    %101 = arith.mulf %100, %99 : vector<8x256xf32>
    %cst_39 = arith.constant 4.471500e-02 : f32
    %102 = vector.broadcast %cst_39 : f32 to vector<8x256xf32>
    %103 = arith.mulf %102, %99 : vector<8x256xf32>
    %104 = arith.mulf %103, %99 : vector<8x256xf32>
    %105 = arith.mulf %104, %99 : vector<8x256xf32>
    %106 = arith.addf %99, %105 : vector<8x256xf32>
    %cst_40 = arith.constant 0.797884583 : f32
    %107 = vector.broadcast %cst_40 : f32 to vector<8x256xf32>
    %108 = arith.mulf %107, %106 : vector<8x256xf32>
    %109 = math.tanh %108 : vector<8x256xf32>
    %cst_41 = arith.constant 1.000000e+00 : f32
    %110 = vector.broadcast %cst_41 : f32 to vector<8x256xf32>
    %111 = arith.addf %110, %109 : vector<8x256xf32>
    %112 = arith.mulf %101, %111 : vector<8x256xf32>
    %c0_42 = arith.constant 0 : index
    %c0_43 = arith.constant 0 : index
    %113 = vector.load %arg11[%c0_42, %c0_43] : memref<256x128xf32, #tpu.memory_space<vmem>>, vector<256x128xf32>
    %114 = arith.truncf %112 : vector<8x256xf32> to vector<8x256xbf16>
    %115 = arith.truncf %113 : vector<256x128xf32> to vector<256x128xbf16>
    %cst_44 = arith.constant dense<0.000000e+00> : vector<8x128xf32>
    %116 = tpu.matmul %114, %115, %cst_44 {dimension_numbers = #tpu.dot_dimension_numbers<[1], [0], [0], [1], [0, 0, 1, 1], [], []>} : vector<8x256xbf16>, vector<256x128xbf16>, vector<8x128xf32> -> vector<8x128xf32>
    %c0_45 = arith.constant 0 : index
    %c0_46 = arith.constant 0 : index
    %117 = vector.load %arg12[%c0_45, %c0_46] : memref<1x128xf32, #tpu.memory_space<vmem>>, vector<1x128xf32>
    %118 = vector.broadcast %117 : vector<1x128xf32> to vector<8x128xf32>
    %119 = arith.addf %116, %118 : vector<8x128xf32>
    %120 = arith.addf %92, %119 : vector<8x128xf32>
    %c0_47 = arith.constant 0 : index
    %c0_48 = arith.constant 0 : index
    %121 = vector.load %arg13[%c0_47, %c0_48] : memref<1x128xf32, #tpu.memory_space<vmem>>, vector<1x128xf32>
    %c0_49 = arith.constant 0 : index
    %c0_50 = arith.constant 0 : index
    %122 = vector.load %arg14[%c0_49, %c0_50] : memref<1x128xf32, #tpu.memory_space<vmem>>, vector<1x128xf32>
    %cst_51 = arith.constant dense<0.000000e+00> : vector<8xf32>
    %123 = vector.multi_reduction <add>, %120, %cst_51 [1] : vector<8x128xf32> to vector<8xf32>
    %124 = vector.shape_cast %123 : vector<8xf32> to vector<8x1xf32>
    %cst_52 = arith.constant 1.280000e+02 : f32
    %125 = vector.broadcast %cst_52 : f32 to vector<8x1xf32>
    %126 = arith.divf %124, %125 : vector<8x1xf32>
    %127 = vector.broadcast %126 : vector<8x1xf32> to vector<8x128xf32>
    %128 = arith.subf %120, %127 : vector<8x128xf32>
    %129 = arith.mulf %128, %128 : vector<8x128xf32>
    %cst_53 = arith.constant dense<0.000000e+00> : vector<8xf32>
    %130 = vector.multi_reduction <add>, %129, %cst_53 [1] : vector<8x128xf32> to vector<8xf32>
    %131 = vector.shape_cast %130 : vector<8xf32> to vector<8x1xf32>
    %cst_54 = arith.constant 1.280000e+02 : f32
    %132 = vector.broadcast %cst_54 : f32 to vector<8x1xf32>
    %133 = arith.divf %131, %132 : vector<8x1xf32>
    %134 = vector.broadcast %126 : vector<8x1xf32> to vector<8x128xf32>
    %135 = arith.subf %120, %134 : vector<8x128xf32>
    %cst_55 = arith.constant 9.99999996E-13 : f32
    %136 = vector.broadcast %cst_55 : f32 to vector<8x1xf32>
    %137 = arith.addf %133, %136 : vector<8x1xf32>
    %138 = math.rsqrt %137 : vector<8x1xf32>
    %139 = vector.broadcast %138 : vector<8x1xf32> to vector<8x128xf32>
    %140 = arith.mulf %135, %139 : vector<8x128xf32>
    %141 = vector.broadcast %121 : vector<1x128xf32> to vector<8x128xf32>
    %142 = arith.mulf %140, %141 : vector<8x128xf32>
    %143 = vector.broadcast %122 : vector<1x128xf32> to vector<8x128xf32>
    %144 = arith.addf %142, %143 : vector<8x128xf32>
    %c0_56 = arith.constant 0 : index
    %c0_57 = arith.constant 0 : index
    %c0_58 = arith.constant 0 : index
    %145 = vector.load %arg15[%c0_56, %c0_57, %c0_58] : memref<1x8x128xf32, #tpu.memory_space<vmem>>, vector<1x8x128xf32>
    %146 = vector.shape_cast %145 : vector<1x8x128xf32> to vector<8x128xf32>
    %147 = vector.shape_cast %144 : vector<8x128xf32> to vector<1x8x128xf32>
    tpu.vector_store %arg15[%c0_56, %c0_57, %c0_58], %147 {strides = array<i32>} : memref<1x8x128xf32, #tpu.memory_space<vmem>>, vector<1x8x128xf32>,
    return
  }
  func.func @transform_0(%arg0: i32) -> (i32, i32, i32) {
    %c0_i32 = arith.constant 0 : i32
    %c0_i32_0 = arith.constant 0 : i32
    %c0_i32_1 = arith.constant 0 : i32
    return %arg0, %c0_i32, %c0_i32_0 : i32, i32, i32
  }
  func.func @transform_1(%arg0: i32) -> (i32, i32, i32) {
    %c0_i32 = arith.constant 0 : i32
    %c0_i32_0 = arith.constant 0 : i32
    %c0_i32_1 = arith.constant 0 : i32
    return %arg0, %c0_i32, %c0_i32_0 : i32, i32, i32
  }
  func.func @transform_2(%arg0: i32) -> (i32, i32) {
    %c0_i32 = arith.constant 0 : i32
    %c0_i32_0 = arith.constant 0 : i32
    %c0_i32_1 = arith.constant 0 : i32
    return %c0_i32, %c0_i32_0 : i32, i32
  }
  func.func @transform_3(%arg0: i32) -> (i32, i32) {
    %c0_i32 = arith.constant 0 : i32
    %c0_i32_0 = arith.constant 0 : i32
    %c0_i32_1 = arith.constant 0 : i32
    return %c0_i32, %c0_i32_0 : i32, i32
  }
  func.func @transform_4(%arg0: i32) -> (i32, i32) {
    %c0_i32 = arith.constant 0 : i32
    %c0_i32_0 = arith.constant 0 : i32
    %c0_i32_1 = arith.constant 0 : i32
    return %c0_i32, %c0_i32_0 : i32, i32
  }
  func.func @transform_5(%arg0: i32) -> (i32, i32) {
    %c0_i32 = arith.constant 0 : i32
    %c0_i32_0 = arith.constant 0 : i32
    %c0_i32_1 = arith.constant 0 : i32
    return %c0_i32, %c0_i32_0 : i32, i32
  }
  func.func @transform_6(%arg0: i32) -> (i32, i32) {
    %c0_i32 = arith.constant 0 : i32
    %c0_i32_0 = arith.constant 0 : i32
    %c0_i32_1 = arith.constant 0 : i32
    return %c0_i32, %c0_i32_0 : i32, i32
  }
  func.func @transform_7(%arg0: i32) -> (i32, i32) {
    %c0_i32 = arith.constant 0 : i32
    %c0_i32_0 = arith.constant 0 : i32
    %c0_i32_1 = arith.constant 0 : i32
    return %c0_i32, %c0_i32_0 : i32, i32
  }
  func.func @transform_8(%arg0: i32) -> (i32, i32) {
    %c0_i32 = arith.constant 0 : i32
    %c0_i32_0 = arith.constant 0 : i32
    %c0_i32_1 = arith.constant 0 : i32
    return %c0_i32, %c0_i32_0 : i32, i32
  }
  func.func @transform_9(%arg0: i32) -> (i32, i32) {
    %c0_i32 = arith.constant 0 : i32
    %c0_i32_0 = arith.constant 0 : i32
    %c0_i32_1 = arith.constant 0 : i32
    return %c0_i32, %c0_i32_0 : i32, i32
  }
  func.func @transform_10(%arg0: i32) -> (i32, i32) {
    %c0_i32 = arith.constant 0 : i32
    %c0_i32_0 = arith.constant 0 : i32
    %c0_i32_1 = arith.constant 0 : i32
    return %c0_i32, %c0_i32_0 : i32, i32
  }
  func.func @transform_11(%arg0: i32) -> (i32, i32) {
    %c0_i32 = arith.constant 0 : i32
    %c0_i32_0 = arith.constant 0 : i32
    %c0_i32_1 = arith.constant 0 : i32
    return %c0_i32, %c0_i32_0 : i32, i32
  }
  func.func @transform_12(%arg0: i32) -> (i32, i32) {
    %c0_i32 = arith.constant 0 : i32
    %c0_i32_0 = arith.constant 0 : i32
    %c0_i32_1 = arith.constant 0 : i32
    return %c0_i32, %c0_i32_0 : i32, i32
  }
  func.func @transform_13(%arg0: i32) -> (i32, i32) {
    %c0_i32 = arith.constant 0 : i32
    %c0_i32_0 = arith.constant 0 : i32
    %c0_i32_1 = arith.constant 0 : i32
    return %c0_i32, %c0_i32_0 : i32, i32
  }
  func.func @transform_14(%arg0: i32) -> (i32, i32, i32) {
    %c0_i32 = arith.constant 0 : i32
    %c0_i32_0 = arith.constant 0 : i32
    %c0_i32_1 = arith.constant 0 : i32
    return %arg0, %c0_i32, %c0_i32_0 : i32, i32, i32
  }
}

</mosaic_0001>

<bundles_post_ra>
// kernel: arbert_revdict_forward.7
= control target key start
LH: loop header
LB: loop body
LE: loop exit
PB: predicated region body
PF: predicated region fallthrough
CT: control target
= control target key end

     0   :  { %v272_v3 = vmov 0.0   ;;  %vm273_vm0 = vmmov 0   ;;  %s440_s0 = inlined_call_operand.vmem [shape: f32[2,128], index: 0, kind: input, shape index: {}]   ;;  %s441_s1 = inlined_call_operand.vmem [shape: f32[128,128], index: 1, kind: input, shape index: {}]   ;;  %s442_s2 = inlined_call_operand.vmem [shape: f32[1,128], index: 2, kind: input, shape index: {}]   ;;  %s443_s3 = inlined_call_operand.vmem [shape: f32[128,128], index: 3, kind: input, shape index: {}]   ;;  %s444_s4 = inlined_call_operand.vmem [shape: f32[1,128], index: 4, kind: input, shape index: {}]   ;;  %s445_s5 = inlined_call_operand.hbm [shape: f32[2,128], index: 5, kind: output, shape index: {}]  }
   0x1   :  { %v23_v0 = vld [vmem:[%s441_s1] sm:$0xff]  ;;  %v24_v1 = vld [vmem:[%s441_s1 + $0x8] sm:$0xff]  ;;  %v25_v2 = vld [vmem:[%s441_s1 + $0x10] sm:$0xff]  ;;  %203 = vmatprep.subr.bf16.mxu0 %v272_v3  ;;  %219 = vmatprep.mubr.msk.bf16.mxu0 %vm273_vm0, %v272_v3 }
   0x2   :  { %v40_v4 = vpack.c.bf16 %v24_v1, %v23_v0  ;;  %v26_v5 = vld [vmem:[%s441_s1 + $0x18] sm:$0xff]  ;;  %223 = vmatprep.subr.bf16.mxu1 %v272_v3  ;;  %239 = vmatprep.mubr.msk.bf16.mxu1 %vm273_vm0, %v272_v3  ;;  %v27_v7 = vld [vmem:[%s441_s1 + $0x20] sm:$0xff]  ;;  %v28_v8 = vld [vmem:[%s441_s1 + $0x28] sm:$0xff] }
   0x3   :  { %v41_v6 = vpack.c.bf16 %v26_v5, %v25_v2  ;;  %v96_v9 = vld [vmem:[%s443_s3] sm:$0xff]  ;;  %v97_v10 = vld [vmem:[%s443_s3 + $0x8] sm:$0xff]  ;;  %v98_v11 = vld [vmem:[%s443_s3 + $0x10] sm:$0xff]  ;;  %v42_v13 = vpack.c.bf16 %v28_v8, %v27_v7 }
   0x4   :  { %204 = vmatpush3.bf16.msra.mxu0 %v40_v4  ;;  %v99_v12 = vld [vmem:[%s443_s3 + $0x18] sm:$0xff]  ;;  %v113_v14 = vpack.c.bf16 %v97_v10, %v96_v9  ;;  %v29_v15 = vld [vmem:[%s441_s1 + $0x30] sm:$0xff] }
   0x5   :  { %205 = vmatprep.subr.bf16.mxu0 %v272_v3  ;;  %v30_v16 = vld [vmem:[%s441_s1 + $0x38] sm:$0xff] }
   0x8   :  { %206 = vmatpush3.bf16.msra.mxu0 %v41_v6 }
   0x9   :  { %207 = vmatprep.subr.bf16.mxu0 %v272_v3 }
   0xa   :  { %10 = vsyncpa [#allocation3], 0  ;;  %224 = vmatpush3.bf16.msra.mxu1 %v113_v14  ;;  %v114_v17 = vpack.c.bf16 %v99_v12, %v98_v11  ;;  %v100_v18 = vld [vmem:[%s443_s3 + $0x20] sm:$0xff]  ;;  %v101_v19 = vld [vmem:[%s443_s3 + $0x28] sm:$0xff]  ;;  %v43_v20 = vpack.c.bf16 %v30_v16, %v29_v15 }
   0xb   :  { %225 = vmatprep.subr.bf16.mxu1 %v272_v3  ;;  %v31_v21 = vld [vmem:[%s441_s1 + $0x40] sm:$0xff]  ;;  %v32_v22 = vld [vmem:[%s441_s1 + $0x48] sm:$0xff]  ;;  %v115_v23 = vpack.c.bf16 %v101_v19, %v100_v18  ;;  %v102_v24 = vld [vmem:[%s443_s3 + $0x30] sm:$0xff] }
   0xc   :  { %208 = vmatpush3.bf16.msra.mxu0 %v42_v13  ;;  %v103_v25 = vld [vmem:[%s443_s3 + $0x38] sm:$0xff]  ;;  %v44_v26 = vpack.c.bf16 %v32_v22, %v31_v21  ;;  %v33_v27 = vld [vmem:[%s441_s1 + $0x50] sm:$0xff]  ;;  %v35_v31 = vld [vmem:[%s441_s1 + $0x60] sm:$0xff] }
   0xd   :  { %209 = vmatprep.subr.bf16.mxu0 %v272_v3  ;;  %v34_v28 = vld [vmem:[%s441_s1 + $0x58] sm:$0xff]  ;;  %v116_v29 = vpack.c.bf16 %v103_v25, %v102_v24  ;;  %v36_v32 = vld [vmem:[%s441_s1 + $0x68] sm:$0xff]  ;;  %v37_v34 = vld [vmem:[%s441_s1 + $0x70] sm:$0xff] }
   0xe   :  { %226 = vmatpush3.bf16.msra.mxu1 %v114_v17  ;;  %v45_v30 = vpack.c.bf16 %v34_v28, %v33_v27  ;;  %v46_v33 = vpack.c.bf16 %v36_v32, %v35_v31  ;;  %v38_v35 = vld [vmem:[%s441_s1 + $0x78] sm:$0xff]  ;;  %v22_v37 = vld [vmem:[%s440_s0] sm:$0x3]  ;;  %v105_v40 = vld [vmem:[%s443_s3 + $0x48] sm:$0xff] }
   0xf   :  { %227 = vmatprep.subr.bf16.mxu1 %v272_v3  ;;  %v47_v36 = vpack.c.bf16 %v38_v35, %v37_v34  ;;  %v39_v38 = vpack.c.bf16 %v22_v37, %v22_v37  ;;  %v104_v39 = vld [vmem:[%s443_s3 + $0x40] sm:$0xff]  ;;  %v106_v42 = vld [vmem:[%s443_s3 + $0x50] sm:$0xff]  ;;  %v107_v43 = vld [vmem:[%s443_s3 + $0x58] sm:$0xff] }
  0x10   :  { %210 = vmatpush3.bf16.msra.mxu0 %v43_v20  ;;  %v117_v41 = vpack.c.bf16 %v105_v40, %v104_v39  ;;  %v118_v44 = vpack.c.bf16 %v107_v43, %v106_v42  ;;  %v108_v45 = vld [vmem:[%s443_s3 + $0x60] sm:$0xff]  ;;  %v109_v46 = vld [vmem:[%s443_s3 + $0x68] sm:$0xff]  ;;  %v110_v48 = vld [vmem:[%s443_s3 + $0x70] sm:$0xff] }
  0x11   :  { %211 = vmatprep.subr.bf16.mxu0 %v272_v3  ;;  %v119_v47 = vpack.c.bf16 %v109_v46, %v108_v45  ;;  %v111_v49 = vld [vmem:[%s443_s3 + $0x78] sm:$0xff]  ;;  %v183_v51 = vld [vmem:[%s442_s2] ss:$0 sm:$0xff]  ;;  %s274_s3 = smov [#allocation2]  }
  0x12   :  { %228 = vmatpush3.bf16.msra.mxu1 %v115_v23  ;;  %v120_v50 = vpack.c.bf16 %v111_v49, %v110_v48  ;;  %v184_v59 = vld [vmem:[%s444_s4] ss:$0 sm:$0xff]  ;;  %s175_s11 = sshll.u32 %s274_s3, 4  ;;  %s176_s11 = int_to_ptr.vmem [resolvable:$true] %s175_s11 }
  0x13   :  { %229 = vmatprep.subr.bf16.mxu1 %v272_v3  ;;  %s248_s2 = scalar_lea.vmem %s176_s11, 32  ;;  %p253_p1 = scmp.lt.s32.totalorder %s176_s11, %s176_s11 }
  0x14   :  { %212 = vmatpush3.bf16.msra.mxu0 %v44_v26  ;;  %p249_p0 = scmp.ne.s32.totalorder %s176_s11, %s248_s2  ;;  %p254_p2 = scmp.lt.s32.totalorder %s248_s2, %s248_s2 }
  0x15   :  { %213 = vmatprep.subr.bf16.mxu0 %v272_v3 }
  0x16   :  { %230 = vmatpush3.bf16.msra.mxu1 %v116_v29  ;;  %p255_p3 = por %p254_p2, %p253_p1 }
  0x17   :  { %231 = vmatprep.subr.bf16.mxu1 %v272_v3 }
  0x18   :  { %214 = vmatpush3.bf16.msra.mxu0 %v45_v30  ;;  %p256_p4 = pnand %p255_p3, %p249_p0 }
  0x19   :  { %215 = vmatprep.subr.bf16.mxu0 %v272_v3 }
  0x1a   :  { %232 = vmatpush3.bf16.msra.mxu1 %v117_v41 }
  0x1b   :  { %233 = vmatprep.subr.bf16.mxu1 %v272_v3 }
  0x1c   :  { %216 = vmatpush3.bf16.msra.mxu0 %v46_v33 }
  0x1d   :  { %217 = vmatprep.subr.bf16.mxu0 %v272_v3 }
  0x1e   :  { %234 = vmatpush3.bf16.msra.mxu1 %v118_v44 }
  0x1f   :  { %235 = vmatprep.subr.bf16.mxu1 %v272_v3 }
  0x20   :  { %218 = vmatpush3.bf16.msra.mxu0 %v47_v36 }
  0x22   :  { %236 = vmatpush3.bf16.msra.mxu1 %v119_v47 }
  0x23   :  { %220 = vmatmul.mubr.bf16.vlgmr.msra.gmra.mrb[0].mxu0 %v39_v38  ;;  %237 = vmatprep.subr.bf16.mxu1 %v272_v3 }
  0x26   :  { %238 = vmatpush3.bf16.msra.mxu1 %v120_v50 }
  0xf6   :  { %v89_v52 = vpop.f32.mrb[0].mxu0 }
  0xf7   :  { %v90_v53 = vadd.f32 %v183_v51, %v89_v52  ;;  %v221_v54 = vpop.f32.mrb[1].mxu0 }
  0xf8   :  { %v92_v55 = vpop.f32.mrb[2].mxu0 }
  0xf9   :  { %246 = vtanh.f32 %v90_v53  ;;  %v222_v56 = vpop.f32.mrb[3].mxu0 }
 0x103   :  { %v247_v57 = vpop.eup %246 }
 0x104   :  { %v112_v58 = vpack.c.bf16 %v247_v57, %v247_v57 }
 0x106   :  { %240 = vmatmul.mubr.bf16.vlgmr.msra.gmra.mrb[0].mxu1 %v112_v58 }
 0x1d9   :  { %v162_v60 = vpop.f32.mrb[0].mxu1 }
 0x1da   :  { %v163_v61 = vadd.f32 %v184_v59, %v162_v60  ;;  %v241_v62 = vpop.f32.mrb[1].mxu1 }
 0x1db   :  { %v165_v63 = vpop.f32.mrb[2].mxu1 }
 0x1dc   :  { %168 = vst [vmem:[#allocation2] sm:$0x3] %v163_v61  ;;  %v242_v0 = vpop.f32.mrb[3].mxu1 }
 0x1dd   :  { %259 = shalt.err (!%p256_p4)
}
 0x1de   :  { %s260_s4 = scalar_lea.hbm %s445_s5, 32 }
 0x1df   :  { %p261_p5 = scmp.ne.s32.totalorder %s445_s5, %s260_s4  ;;  %p264_p6 = scmp.lt.u32.totalorder %s260_s4, %s445_s5 }
 0x1e1   :  { %p266_p7 = pnand %p264_p6, %p261_p5 }
 0x1e3   :  { %269 = shalt.err (!%p266_p7)
}
 0x1e4   :  { %178 = dma.vmem_to_hbm [thread:$0]  %s176_s11, 32, %s445_s5, [#allocation3]  }
 0x1e5   :  { %270 = dma.done.wait [#allocation3], 32  }
 0x1e6   :  { %271 = vsyncadd [#allocation3], 4294967264 }
 0x1e7   :  { %182 = vsyncpa [#allocation3], 1 }

// kernel: arbert_revdict_forward.4
= control target key start
LH: loop header
LB: loop body
LE: loop exit
PB: predicated region body
PF: predicated region fallthrough
CT: control target
= control target key end

     0   :  { %s107_s0 = inlined_call_operand.vmem [shape: f32[16,128], index: 0, kind: input, shape index: {}]   ;;  %s108_s1 = inlined_call_operand.vmem [shape: f32[1,128], index: 1, kind: input, shape index: {}]   ;;  %s109_s2 = inlined_call_operand.vmem [shape: f32[1,128], index: 2, kind: input, shape index: {}]   ;;  %s110_s3 = inlined_call_operand.vmem [shape: f32[16,128], index: 3, kind: output, shape index: {}]  }
   0x1   :  { %v14_v0 = vld [vmem:[%s107_s0] sm:$0xff]  ;;  %v15_v1 = vld [vmem:[%s107_s0 + $0x8] sm:$0xff] }
   0x2   :  { %18 = vadd.xlane.f32.xlu0 %v14_v0  ;;  %v63_v17 = vld [vmem:[%s108_s1] ss:$0 sm:$0xff] }
   0x3   :  { %v64_v19 = vld [vmem:[%s109_s2] ss:$0 sm:$0xff] }
   0x6   :  { %20 = vadd.xlane.f32.xlu0 %v15_v1 }
  0x8f   :  { %v19_v2 = vpop.xlane.xlu0 %18 }
  0x90   :  { %v23_v3 = vmul.f32 0.0078125, %v19_v2 }
  0x92   :  { %v25_v4 = vsub.f32 %v14_v0, %v23_v3 }
  0x93   :  { %v21_v5 = vpop.xlane.xlu0 %20 }
  0x94   :  { %v24_v6 = vmul.f32 0.0078125, %v21_v5  ;;  %v27_v7 = vmul.f32 %v25_v4, %v25_v4 }
  0x96   :  { %v26_v8 = vsub.f32 %v15_v1, %v24_v6  ;;  %29 = vadd.xlane.f32.xlu1 %v27_v7 }
  0x98   :  { %v28_v9 = vmul.f32 %v26_v8, %v26_v8 }
  0x9a   :  { %31 = vadd.xlane.f32.xlu1 %v28_v9 }
 0x123   :  { %v30_v10 = vpop.xlane.xlu1 %29 }
 0x124   :  { %v33_v11 = vmul.f32 0.0078125, %v30_v10 }
 0x126   :  { %v35_v12 = vadd.f32 1e-12, %v33_v11 }
 0x127   :  { %v32_v13 = vpop.xlane.xlu1 %31 }
 0x128   :  { %65 = vrsqrt.f32 %v35_v12  ;;  %v34_v14 = vmul.f32 0.0078125, %v32_v13 }
 0x12a   :  { %v36_v15 = vadd.f32 1e-12, %v34_v14 }
 0x12c   :  { %67 = vrsqrt.f32 %v36_v15 }
 0x132   :  { %v66_v16 = vpop.eup %65 }
 0x133   :  { %v39_v18 = vmul.f32 %v66_v16, %v25_v4 }
 0x135   :  { %v47_v20 = vmul.f32 %v63_v17, %v39_v18 }
 0x136   :  { %v68_v21 = vpop.eup %67 }
 0x137   :  { %v55_v22 = vadd.f32 %v64_v19, %v47_v20  ;;  %v40_v23 = vmul.f32 %v68_v21, %v26_v8 }
 0x139   :  { %57 = vst [vmem:[%s110_s3] sm:$0xff] %v55_v22  ;;  %v48_v24 = vmul.f32 %v63_v17, %v40_v23 }
 0x13b   :  { %v56_v25 = vadd.f32 %v64_v19, %v48_v24 }
 0x13d   :  { %58 = vst [vmem:[%s110_s3 + $0x8] sm:$0xff] %v56_v25 }

// kernel: arbert_revdict_forward.5
= control target key start
LH: loop header
LB: loop body
LE: loop exit
PB: predicated region body
PF: predicated region fallthrough
CT: control target
= control target key end

     0   :  { %19 = vsyncpa [#allocation3], 0  ;;  %s2095_s0 = inlined_call_operand.vmem [shape: f32[2,8,128], index: 0, kind: input, shape index: {}]   ;;  %s2096_s1 = inlined_call_operand.vmem [shape: f32[2,1,8], index: 1, kind: input, shape index: {}]   ;;  %s2097_s2 = inlined_call_operand.vmem [shape: f32[128,384], index: 2, kind: input, shape index: {}]   ;;  %s2098_s3 = inlined_call_operand.vmem [shape: f32[1,384], index: 3, kind: input, shape index: {}]   ;;  %s2099_s4 = inlined_call_operand.vmem [shape: f32[128,128], index: 4, kind: input, shape index: {}]   ;;  %s2100_s5 = inlined_call_operand.vmem [shape: f32[1,128], index: 5, kind: input, shape index: {}]   ;;  %s2101_s6 = inlined_call_operand.vmem [shape: f32[1,128], index: 6, kind: input, shape index: {}]   ;;  %s2102_s7 = inlined_call_operand.vmem [shape: f32[1,128], index: 7, kind: input, shape index: {}]   ;;  %s2103_s8 = inlined_call_operand.hbm [shape: f32[128,256], index: 8, kind: input, shape index: {}]   ;;  %s2104_s9 = inlined_call_operand.vmem [shape: f32[1,256], index: 9, kind: input, shape index: {}]   ;;  %s2105_s10 = inlined_call_operand.hbm [shape: f32[256,128], index: 10, kind: input, shape index: {}]   ;;  %s2106_s11 = inlined_call_operand.vmem [shape: f32[1,128], index: 11, kind: input, shape index: {}]   ;;  %s2107_s12 = inlined_call_operand.vmem [shape: f32[1,128], index: 12, kind: input, shape index: {}]   ;;  %s2108_s13 = inlined_call_operand.vmem [shape: f32[1,128], index: 13, kind: input, shape index: {}]   ;;  %s2109_s14 = inlined_call_operand.vmem [shape: f32[2,8,128], index: 14, kind: output, shape index: {}]  }
   0x1   :  { %20 = vsyncpa [#allocation5], 0  ;;  %s1696_s29 = smov 0  }
   0x2 LB: > { %2113 = sst [smem:[#allocation8_spill]] %s1609_s29  ;;  %s1611_s30 = smov [#allocation2]   ;;  %s1609_s29 = sphi %s1696_s29, %s26_s29  }
   0x3   : > { %s391_s15 = sshll.u32 %s1611_s30, 4  ;;  %s1702_s16 = sadd.s32 4294967295, %s1609_s29   ;;  %s392_s15 = int_to_ptr.vmem [resolvable:$true] %s391_s15 }
   0x4   : > { %p1352_p0 = scmp.ge.s32.totalorder %s1609_s29, 1  ;;  %p361_p1 = scmp.lt.s32.totalorder %s1609_s29, 3 }
   0x5   : > { %p2110_p3 = scmp.eq.s32.totalorder %s1702_s16, 0  ;;  %s1612_s18 = smov [#allocation4]  }
   0x6   : > { %p1706_p2 = pnand %p1352_p0, %p361_p1  ;;  %s407_s19 = sshll.u32 %s1612_s18, 4  ;;  %s1719_s19 = int_to_ptr.vmem [resolvable:$true] %s407_s19 }
   0x7   : > { %s1539_s23 = scalar_lea.hbm %s2103_s8, 4096 }
   0x8   : > { %s2114_s17 = scalar_select %p1706_p2, 1, 0 }
   0x9   : > { %p1494_p4 = pneg %p1706_p2  ;;  %p1540_p6 = scmp.ne.s32.totalorder %s2103_s8, %s1539_s23 }
   0xa   : > { %p1546_p10 = scmp.lt.u32.totalorder %s1539_s23, %s2103_s8 }
   0xb   : > { %p1715_p5 = pnand %p2110_p3, %p1494_p4 }
   0xd   : > { %p1541_p7 = pneg %p1715_p5 }
   0xf   : > { %p1542_p8 = pnand %p1541_p7, %p1540_p6 }
  0x11   : > { %p1543_p9 = pneg %p1542_p8 }
  0x13   : > { %p1548_p11 = pnand %p1546_p10, %p1543_p9 }
  0x15   : > { %1551 = shalt.err (!%p1548_p11)
}
  0x16   : > { %s1552_s28 = scalar_lea.vmem %s392_s15, 4096  ;;  %p1560_p1 = scmp.lt.s32.totalorder %s392_s15, %s392_s15 }
  0x17   : > { %p1553_p12 = scmp.ne.s32.totalorder %s392_s15, %s1552_s28  ;;  %p1561_p4 = scmp.lt.s32.totalorder %s1552_s28, %s1552_s28 }
  0x19   : > { %p1555_p13 = pnand %p1553_p12, %p1541_p7  ;;  %p1562_p3 = por %p1561_p4, %p1560_p1 }
  0x1b   : > { %p1556_p0 = pneg %p1555_p13 }
  0x1d   : > { %p1563_p2 = pnand %p1562_p3, %p1556_p0 }
  0x1f   : > { %1566 = shalt.err (!%p1563_p2)
}
  0x20   : > { %s1613_s30 = smov 256   ;;  %s1614_s18 = smov 16  }
  0x21   : > { %1497 = dma.hbm_to_vmem [thread:$0]  (!%p1715_p5), %s2103_s8, 4096, %s392_s15, [#allocation3], %s1613_s30, %s1613_s30, %s1614_s18  }
  0x22   : > { %s1567_s25 = scalar_lea.hbm %s2105_s10, 4096 }
  0x23   : > { %p1568_p6 = scmp.ne.s32.totalorder %s2105_s10, %s1567_s25  ;;  %p1574_p8 = scmp.lt.u32.totalorder %s1567_s25, %s2105_s10 }
  0x25   : > { %p1570_p2 = pnand %p1568_p6, %p1541_p7 }
  0x27   : > { %p1571_p3 = pneg %p1570_p2 }
  0x29   : > { %p1576_p9 = pnand %p1574_p8, %p1571_p3 }
  0x2b   : > { %1579 = shalt.err (!%p1576_p9)
}
  0x2c   : > { %s1580_s15 = scalar_lea.vmem %s1719_s19, 4096  ;;  %p1588_p13 = scmp.lt.s32.totalorder %s1719_s19, %s1719_s19 }
  0x2d   : > { %p1581_p10 = scmp.ne.s32.totalorder %s1719_s19, %s1580_s15  ;;  %p1589_p0 = scmp.lt.s32.totalorder %s1580_s15, %s1580_s15 }
  0x2f   : > { %p1583_p11 = pnand %p1581_p10, %p1541_p7  ;;  %p1590_p1 = por %p1589_p0, %p1588_p13 }
  0x31   : > { %p1584_p12 = pneg %p1583_p11 }
  0x33   : > { %p1591_p4 = pnand %p1590_p1, %p1584_p12 }
  0x35   : > { %1594 = shalt.err (!%p1591_p4)
}
  0x36   : > { %s1615_s29 = smov 128   ;;  %s1616_s30 = smov 8  }
  0x37   : > { %1500 = dma.hbm_to_vmem [thread:$0]  (!%p1715_p5), %s2105_s10, 4096, %s1719_s19, [#allocation5], %s1615_s29, %s1615_s29, %s1616_s30  }
  0x38   : > { %p2116_p6 = scmp.ne.s32.totalorder %s2114_s17, 0 }
  0x39   : > { %p2117_p7 = scmp.eq.s32.totalorder (!%p2116_p6), %s1702_s16, 0 }
  0x3a   : > { %445 = sbr.rel (%p2116_p6) target bundleno = 3035 (0xbdb), region = 76 }
  0x41   : > { %1600 = dma.done.wait (%p2117_p7), [#allocation3], 4096   ;;  %p2118_p2 = pmov %p2117_p7 }
  0x43   : > { %1602 = vsyncadd (%p2118_p2), [#allocation3], 4294963200  ;;  %p2119_p3 = pmov %p2118_p2 }
  0x44   : > { %p2120_p8 = pmov %p2118_p2 }
  0x45   : > { %1604 = dma.done.wait (%p2119_p3), [#allocation5], 4096  }
  0x46   : > { %1606 = vsyncadd (%p2120_p8), [#allocation5], 4294963200  ;;  %v1617_v0 = vmov 0   ;;  %v1618_v1 = vmov 0.0   ;;  %v511_v2 = vld [vmem:[%s2097_s2 + $0x8] sm:$0xff]  ;;  %v514_v3 = vld [vmem:[%s2097_s2 + $0x20] sm:$0xff] }
  0x47   : > { %632 = vmatprep.mubr.bf16.mxu0 %v1617_v0  ;;  %1422 = vmatprep.subr.bf16.mxu1 %v1618_v1  ;;  %v510_v4 = vld [vmem:[%s2097_s2] sm:$0xff]  ;;  %v560_v5 = vpack.c.bf16 %v514_v3, %v511_v2  ;;  %v513_v6 = vld [vmem:[%s2097_s2 + $0x18] sm:$0xff]  ;;  %v520_v8 = vld [vmem:[%s2097_s2 + $0x50] sm:$0xff]  ;;  %p496_p5 = scmp.lt.s32.totalorder %s1702_s16, 1  ;;  %vm1619_vm0 = vmmov 0   ;;  %vm683_vm1 = vcmask 523264  }
  0x48   : > { %v517_v7 = vld [vmem:[%s2097_s2 + $0x38] sm:$0xff]  ;;  %v559_v9 = vpack.c.bf16 %v513_v6, %v510_v4  ;;  %v516_v11 = vld [vmem:[%s2097_s2 + $0x30] sm:$0xff]  ;;  %v519_v12 = vld [vmem:[%s2097_s2 + $0x48] sm:$0xff]  ;;  %1438 = vmatprep.mubr.msk.bf16.mxu1 %vm1619_vm0, %v1618_v1  ;;  %s1620_s18 = smov 64   ;;  %vm755_vm2 = vcmask 1043456   ;;  %vm738_vm3 = vcmask 64512  }
  0x49   : > { %v563_v10 = vpack.c.bf16 %v520_v8, %v517_v7  ;;  %v523_v13 = vld [vmem:[%s2097_s2 + $0x68] sm:$0xff]  ;;  %600 = vmatprep.subr.bf16.mxu0 %v560_v5  ;;  %v526_v14 = vld [vmem:[%s2097_s2 + $0x80] sm:$0xff]  ;;  %v562_v15 = vpack.c.bf16 %v519_v12, %v516_v11  ;;  %v525_v18 = vld [vmem:[%s2097_s2 + $0x78] sm:$0xff]  ;;  %s2123_s16 = smov (!%p496_p5, %s1702_s16), 1 }
  0x4a   : > { %601 = vmatpush1.bf16.msra.mxu0 %v559_v9  ;;  %v566_v16 = vpack.c.bf16 %v526_v14, %v523_v13  ;;  %v522_v17 = vld [vmem:[%s2097_s2 + $0x60] sm:$0xff]  ;;  %v529_v19 = vld [vmem:[%s2097_s2 + $0x98] sm:$0xff]  ;;  %v532_v20 = vld [vmem:[%s2097_s2 + $0xb0] sm:$0xff]  ;;  %s1359_s19 = sshll.u32 %s2123_s16, 3  ;;  %v585_v14 = vlaneseq  ;;  %s502_s20 = scalar_lea.vmem %s2096_s1, %s2123_s16 }
  0x4b   : > { %602 = vmatprep.subr.bf16.mxu0 %v563_v10  ;;  %v565_v21 = vpack.c.bf16 %v525_v18, %v522_v17  ;;  %v569_v22 = vpack.c.bf16 %v532_v20, %v529_v19  ;;  %v528_v23 = vld [vmem:[%s2097_s2 + $0x90] sm:$0xff]  ;;  %v531_v24 = vld [vmem:[%s2097_s2 + $0xa8] sm:$0xff]  ;;  %v538_v26 = vld [vmem:[%s2097_s2 + $0xe0] sm:$0xff]  ;;  %s499_s30 = scalar_lea.vmem %s2095_s0, %s1359_s19 }
  0x4c   : > { %v535_v25 = vld [vmem:[%s2097_s2 + $0xc8] sm:$0xff]  ;;  %v512_v27 = vld [vmem:[%s2097_s2 + $0x10] sm:$0xff]  ;;  %v518_v29 = vld [vmem:[%s2097_s2 + $0x40] sm:$0xff]  ;;  %v568_v30 = vpack.c.bf16 %v531_v24, %v528_v23 }
  0x4d   : > { %v515_v28 = vld [vmem:[%s2097_s2 + $0x28] sm:$0xff]  ;;  %v521_v32 = vld [vmem:[%s2097_s2 + $0x58] sm:$0xff]  ;;  %v572_v33 = vpack.c.bf16 %v538_v26, %v535_v25  ;;  %v534_v34 = vld [vmem:[%s2097_s2 + $0xc0] sm:$0xff] }
  0x4e   : > { %603 = vmatpush1.bf16.msra.mxu0 %v562_v15  ;;  %v561_v31 = vpack.c.bf16 %v515_v28, %v512_v27  ;;  %v537_v35 = vld [vmem:[%s2097_s2 + $0xd8] sm:$0xff]  ;;  %v544_v37 = vld [vmem:[%s2097_s2 + $0x110] sm:$0xff]  ;;  %v564_v38 = vpack.c.bf16 %v521_v32, %v518_v29  ;;  %v527_v40 = vld [vmem:[%s2097_s2 + $0x88] sm:$0xff]  ;;  %v1955_v15 = vshrl.u32 %v585_v14, 7 }
  0x4f   : > { %604 = vmatprep.subr.bf16.mxu0 %v566_v16  ;;  %v541_v36 = vld [vmem:[%s2097_s2 + $0xf8] sm:$0xff]  ;;  %v524_v39 = vld [vmem:[%s2097_s2 + $0x70] sm:$0xff]  ;;  %v571_v41 = vpack.c.bf16 %v537_v35, %v534_v34  ;;  %v543_v44 = vld [vmem:[%s2097_s2 + $0x108] sm:$0xff] }
  0x50   : > { %1423 = vmatpush3.bf16.msra.mxu1 %v561_v31  ;;  %v575_v42 = vpack.c.bf16 %v544_v37, %v541_v36  ;;  %v540_v43 = vld [vmem:[%s2097_s2 + $0xf0] sm:$0xff]  ;;  %v547_v45 = vld [vmem:[%s2097_s2 + $0x128] sm:$0xff]  ;;  %v550_v46 = vld [vmem:[%s2097_s2 + $0x140] sm:$0xff]  ;;  %v567_v47 = vpack.c.bf16 %v527_v40, %v524_v39  ;;  %v591_v16 = vsub.s32 1, %v1955_v15  ;;  %v587_v18 = vsub.s32 0, %v1955_v15 }
  0x51   : > { %1424 = vmatprep.subr.bf16.mxu1 %v1618_v1  ;;  %v530_v48 = vld [vmem:[%s2097_s2 + $0xa0] sm:$0xff]  ;;  %v533_v49 = vld [vmem:[%s2097_s2 + $0xb8] sm:$0xff]  ;;  %v574_v50 = vpack.c.bf16 %v543_v44, %v540_v43  ;;  %v578_v51 = vpack.c.bf16 %v550_v46, %v547_v45  ;;  %v556_v55 = vld [vmem:[%s2097_s2 + $0x170] sm:$0xff] }
  0x52   : > { %605 = vmatpush1.bf16.msra.mxu0 %v565_v21  ;;  %v546_v52 = vld [vmem:[%s2097_s2 + $0x120] sm:$0xff]  ;;  %v549_v53 = vld [vmem:[%s2097_s2 + $0x138] sm:$0xff]  ;;  %v570_v56 = vpack.c.bf16 %v533_v49, %v530_v48  ;;  %v536_v57 = vld [vmem:[%s2097_s2 + $0xd0] sm:$0xff] }
  0x53   : > { %606 = vmatprep.subr.bf16.mxu0 %v569_v22  ;;  %v553_v54 = vld [vmem:[%s2097_s2 + $0x158] sm:$0xff]  ;;  %v539_v58 = vld [vmem:[%s2097_s2 + $0xe8] sm:$0xff]  ;;  %v577_v59 = vpack.c.bf16 %v549_v53, %v546_v52  ;;  %v552_v61 = vld [vmem:[%s2097_s2 + $0x150] sm:$0xff] }
  0x54   : > { %1425 = vmatpush3.bf16.msra.mxu1 %v564_v38  ;;  %v581_v60 = vpack.c.bf16 %v556_v55, %v553_v54  ;;  %v555_v62 = vld [vmem:[%s2097_s2 + $0x168] sm:$0xff]  ;;  %v573_v63 = vpack.c.bf16 %v539_v58, %v536_v57  ;;  %v542_v2 = vld [vmem:[%s2097_s2 + $0x100] sm:$0xff]  ;;  %v545_v3 = vld [vmem:[%s2097_s2 + $0x118] sm:$0xff] }
  0x55   : > { %1426 = vmatprep.subr.bf16.mxu1 %v1618_v1  ;;  %v580_v4 = vpack.c.bf16 %v555_v62, %v552_v61  ;;  %v1928_v5 = vld [vmem:[%s499_s30] sm:$0xff]  ;;  %v576_v6 = vpack.c.bf16 %v545_v3, %v542_v2  ;;  %v548_v8 = vld [vmem:[%s2097_s2 + $0x130] sm:$0xff]  ;;  %v551_v9 = vld [vmem:[%s2097_s2 + $0x148] sm:$0xff] }
  0x56   : > { %607 = vmatpush1.bf16.msra.mxu0 %v568_v30  ;;  %v558_v7 = vpack.c.bf16 %v1928_v5, %v1928_v5  ;;  %v579_v10 = vpack.c.bf16 %v551_v9, %v548_v8  ;;  %v554_v11 = vld [vmem:[%s2097_s2 + $0x160] sm:$0xff]  ;;  %v557_v12 = vld [vmem:[%s2097_s2 + $0x178] sm:$0xff]  ;;  %v595_v30 = vsub.s32 2, %v1955_v15 }
  0x57   : > { %608 = vmatprep.subr.bf16.mxu0 %v572_v33  ;;  %v582_v13 = vpack.c.bf16 %v557_v12, %v554_v11  ;;  %v583_v17 = vld [vmem:[%s2098_s3] sm:$0x7] }
  0x58   : > { %1427 = vmatpush3.bf16.msra.mxu1 %v567_v47  ;;  %v592_v19 = vrot.slane %v583_v17, %v591_v16  ;;  %v588_v20 = vrot.slane %v583_v17, %v587_v18  ;;  %v596_v31 = vrot.slane %v583_v17, %v595_v30  ;;  %v1362_v40 = vld [vmem:[%s502_s20] ss:$0 sm:$0xff] }
  0x59   : > { %1428 = vmatprep.subr.bf16.mxu1 %v1618_v1 }
  0x5a   : > { %609 = vmatpush1.bf16.msra.mxu0 %v571_v41 }
  0x5b   : > { %610 = vmatprep.subr.bf16.mxu0 %v575_v42 }
  0x5c   : > { %1429 = vmatpush3.bf16.msra.mxu1 %v570_v56 }
  0x5d   : > { %1430 = vmatprep.subr.bf16.mxu1 %v1618_v1 }
  0x5e   : > { %611 = vmatpush1.bf16.msra.mxu0 %v574_v50 }
  0x5f   : > { %612 = vmatprep.subr.bf16.mxu0 %v578_v51 }
  0x60   : > { %1431 = vmatpush3.bf16.msra.mxu1 %v573_v63 }
  0x61   : > { %1432 = vmatprep.subr.bf16.mxu1 %v1618_v1 }
  0x62   : > { %613 = vmatpush1.bf16.msra.mxu0 %v577_v59 }
  0x63   : > { %614 = vmatprep.subr.bf16.mxu0 %v581_v60 }
  0x64   : > { %1433 = vmatpush3.bf16.msra.mxu1 %v576_v6 }
  0x65   : > { %1434 = vmatprep.subr.bf16.mxu1 %v1618_v1 }
  0x66   : > { %615 = vmatpush1.bf16.msra.mxu0 %v580_v4 }
  0x67   : > { %1466 = vmatprep.subr.bf16.mxu0 %v1618_v1 }
  0x68   : > { %1435 = vmatpush3.bf16.msra.mxu1 %v579_v10 }
  0x69   : > { %633 = vmatmul.mubr.bf16.vlgmr.msra.gmra.mrb[0].mxu0 %v558_v7  ;;  %1436 = vmatprep.subr.bf16.mxu1 %v1618_v1 }
  0x6a   : > { %1482 = vmatprep.mubr.msk.bf16.mxu0 %vm1619_vm0, %v1618_v1 }
  0x6c   : > { %1437 = vmatpush3.bf16.msra.mxu1 %v582_v13 }
  0x6d   : > { %1442 = vmatprep.subr.bf16.mxu1 %v1618_v1 }
  0x6f   : > { %1439 = vmatmul.mubr.bf16.vlgmr.msra.gmra.mrb[0].mxu1 %v558_v7 }
  0x70   : > { %1444 = vmatprep.mubr.msk.bf16.mxu1 %vm1619_vm0, %v1618_v1 }
 0x13c   : > { %v634_v21 = vpop.f32.mrb[0].mxu0 }
 0x13d   : > { %v636_v22 = vpop.f32.mrb[1].mxu0  ;;  %v635_v26 = vadd.f32 %v634_v21, %v588_v20 }
 0x13e   : > { %v637_v23 = vadd.f32 %v636_v22, %v592_v19  ;;  %v638_v24 = vpop.f32.mrb[2].mxu0 }
 0x13f   : > { %v639_v25 = vpop.f32.mrb[3].mxu0  ;;  %v681_v29 = vpack.c.bf16 %v635_v26, %v635_v26  ;;  %v920_v24 = vld [vmem:[%s2099_s4 + $0x8] sm:$0xff] }
 0x140   : > { %v682_v27 = vpack.c.bf16 %v637_v23, %v637_v23  ;;  %v919_v23 = vld [vmem:[%s2099_s4] sm:$0xff]  ;;  %v921_v25 = vld [vmem:[%s2099_s4 + $0x10] sm:$0xff] }
 0x141   : > { %v936_v26 = vpack.c.bf16 %v920_v24, %v919_v23  ;;  %v1035_v23 = vld [vmem:[#allocation2 + $0x78] sm:$0xff] }
 0x142   : > { %v688_v28 = vsel %vm683_vm1, %v682_v27, 0  ;;  %803 = vrot.lane.b32.xlu1 %v682_v27, %s1620_s18  ;;  %v675_v32 = vpop.f32.mrb[0].mxu1  ;;  %v922_v27 = vld [vmem:[%s2099_s4 + $0x18] sm:$0xff] }
 0x143   : > { %1443 = vmatpush3.bf16.xpose.msra.mxu1 %v688_v28  ;;  %v676_v33 = vadd.f32 %v675_v32, %v596_v31  ;;  %v1440_v34 = vpop.f32.mrb[1].mxu1  ;;  %1467 = vmatpush3.bf16.msra.mxu0 %v936_v26  ;;  %v937_v28 = vpack.c.bf16 %v922_v27, %v921_v25  ;;  %v925_v31 = vld [vmem:[%s2099_s4 + $0x30] sm:$0xff]  ;;  %v926_v32 = vld [vmem:[%s2099_s4 + $0x38] sm:$0xff]  ;;  %v1032_v25 = vld [vmem:[#allocation2 + $0x60] sm:$0xff] }
 0x144   : > { %1448 = vmatprep.subr.bf16.mxu1 %v1618_v1  ;;  %v678_v35 = vpop.f32.mrb[2].mxu1  ;;  %1468 = vmatprep.subr.bf16.mxu0 %v1618_v1  ;;  %v927_v34 = vld [vmem:[%s2099_s4 + $0x40] sm:$0xff]  ;;  %v1034_v26 = vld [vmem:[#allocation2 + $0x70] sm:$0xff] }
 0x145   : > { %v751_v36 = vpack.c.bf16 %v676_v33, %v676_v33  ;;  %v1441_v37 = vpop.f32.mrb[3].mxu1  ;;  %v939_v33 = vpack.c.bf16 %v926_v32, %v925_v31  ;;  %v928_v35 = vld [vmem:[%s2099_s4 + $0x48] sm:$0xff]  ;;  %v1059_v27 = vpack.c.bf16 %v1034_v26, %v1032_v25  ;;  %v1038_v31 = vld [vmem:[#allocation2 + $0x90] sm:$0xff] }
 0x146   : > { %800 = vrot.lane.b32.xlu1 %v681_v29, %s1620_s18  ;;  %v929_v37 = vld [vmem:[%s2099_s4 + $0x50] sm:$0xff]  ;;  %v1165_v25 = vld [vmem:[#allocation4 + $0xc8] sm:$0xff] }
 0x147   : > { %v757_v38 = vsel %vm755_vm2, %v751_v36, 0  ;;  %1469 = vmatpush3.bf16.msra.mxu0 %v937_v28  ;;  %v1037_v28 = vld [vmem:[#allocation2 + $0x88] sm:$0xff] }
 0x148   : > { %1470 = vmatprep.subr.bf16.mxu0 %v1618_v1 }
 0x14a   : > { %1445 = vmatmul.mubr.msk.bf16.vlgmr.msra.gmra.mrb[4].mxu1 %vm683_vm1, %v681_v29  ;;  %v924_v29 = vld [vmem:[%s2099_s4 + $0x28] sm:$0xff] }
 0x14b   : > { %1450 = vmatprep.mubr.msk.bf16.mxu1 %vm1619_vm0, %v1618_v1  ;;  %1449 = vmatpush3.bf16.msra.mxu1 %v757_v38  ;;  %v930_v38 = vld [vmem:[%s2099_s4 + $0x58] sm:$0xff] }
 0x14c   : > { %1454 = vmatprep.subr.bf16.mxu1 %v1618_v1 }
 0x1b4   : > { %v804_v55 = vpop.permute.xlu1 %803 }
 0x1b5   : > { %v809_v57 = vsel %vm683_vm1, %v804_v55, 0 }
 0x1b8   : > { %v801_v58 = vpop.permute.xlu1 %800 }
 0x21d   : > { %v724_v39 = vpop.f32.mrb[4].mxu1 }
 0x21e   : > { %v730_v41 = vmul.f32 0.125, %v724_v39  ;;  %v1446_v42 = vpop.f32.mrb[5].mxu1  ;;  %v941_v39 = vpack.c.bf16 %v930_v38, %v929_v37  ;;  %v1042_v37 = vld [vmem:[#allocation2 + $0xb0] sm:$0xff] }
 0x21f   : > { %v727_v43 = vpop.f32.mrb[6].mxu1 }
 0x220   : > { %v1447_v44 = vpop.f32.mrb[7].mxu1  ;;  %v737_v45 = vadd.f32 %v1362_v40, %v730_v41  ;;  %v932_v41 = vld [vmem:[%s2099_s4 + $0x68] sm:$0xff]  ;;  %v933_v43 = vld [vmem:[%s2099_s4 + $0x70] sm:$0xff] }
 0x221   : > { %v934_v44 = vld [vmem:[%s2099_s4 + $0x78] sm:$0xff] }
 0x222   : > { %v739_v46 = vsel %vm738_vm3, %v737_v45, -inf }
 0x223   : > { %740 = vmax.xlane.f32.xlu0 %v739_v46 }
 0x2b0   : > { %v741_v47 = vpop.xlane.xlu0 %740 }
 0x2b1   : > { %v742_v48 = vsub.f32 %v737_v45, %v741_v47  ;;  %v943_v45 = vpack.c.bf16 %v934_v44, %v933_v43  ;;  %v1046_v43 = vld [vmem:[#allocation2 + $0xd0] sm:$0xff] }
 0x2b3   : > { %v743_v49 = vmul.f32 1.442695, %v742_v48 }
 0x2b5   : > { %1523 = vpow2.f32 %v743_v49 }
 0x2bf   : > { %v1524_v50 = vpop.eup %1523 }
 0x2c0   : > { %v745_v51 = vsel %vm738_vm3, %v1524_v50, 0.0 }
 0x2c1   : > { %746 = vadd.xlane.f32.xlu0 %v745_v51 }
 0x34e   : > { %v747_v52 = vpop.xlane.xlu0 %746 }
 0x34f   : > { %1525 = vrcp.f32 %v747_v52  ;;  %v1366_v52 = vld [vmem:[%s2100_s5] ss:$0 sm:$0xff] }
 0x359   : > { %v1526_v53 = vpop.eup %1525 }
 0x35a   : > { %v749_v54 = vmul.f32 %v1526_v53, %v1524_v50 }
 0x35c   : > { %v750_v56 = vpack.c.bf16 %v749_v54, %v749_v54 }
 0x35e   : > { %1451 = vmatmul.mubr.msk.bf16.vlgmr.msra.gmra.mrb[8].mxu1 %vm738_vm3, %v750_v56 }
 0x35f   : > { %1455 = vmatpush3.bf16.xpose.msra.mxu1 %v809_v57  ;;  %1456 = vmatprep.mubr.msk.bf16.mxu1 %vm1619_vm0, %v1618_v1 }
 0x360   : > { %1460 = vmatprep.subr.bf16.mxu1 %v1618_v1 }
 0x366   : > { %1457 = vmatmul.mubr.msk.bf16.vlgmr.msra.gmra.mrb[12].mxu1 %vm683_vm1, %v801_v58 }
 0x367   : > { %1462 = vmatprep.mubr.msk.bf16.mxu1 %vm1619_vm0, %v1618_v1 }
 0x431   : > { %v1990_v59 = vpop.f32.mrb[8].mxu1 }
 0x432   : > { %v1452_v60 = vpop.f32.mrb[9].mxu1 }
 0x433   : > { %v796_v61 = vpop.f32.mrb[10].mxu1  ;;  %v1021_v60 = vld [vmem:[#allocation2 + $0x8] sm:$0xff] }
 0x434   : > { %v1453_v62 = vpop.f32.mrb[11].mxu1  ;;  %v1023_v61 = vld [vmem:[#allocation2 + $0x18] sm:$0xff] }
 0x435   : > { %v1020_v62 = vld [vmem:[#allocation2] sm:$0xff] }
 0x439   : > { %v845_v63 = vpop.f32.mrb[12].mxu1 }
 0x43a   : > { %v851_v2 = vmul.f32 0.125, %v845_v63  ;;  %v1458_v3 = vpop.f32.mrb[13].mxu1  ;;  %v1054_v63 = vpack.c.bf16 %v1023_v61, %v1021_v60  ;;  %v1156_v61 = vld [vmem:[#allocation4 + $0x80] sm:$0xff] }
 0x43b   : > { %v848_v4 = vpop.f32.mrb[14].mxu1  ;;  %v1027_v3 = vld [vmem:[#allocation2 + $0x38] sm:$0xff] }
 0x43c   : > { %v1459_v6 = vpop.f32.mrb[15].mxu1  ;;  %v852_v7 = vadd.f32 %v1362_v40, %v851_v2  ;;  %v931_v40 = vld [vmem:[%s2099_s4 + $0x60] sm:$0xff]  ;;  %v1022_v2 = vld [vmem:[#allocation2 + $0x10] sm:$0xff] }
 0x43d   : > { %v942_v42 = vpack.c.bf16 %v932_v41, %v931_v40  ;;  %v1053_v4 = vpack.c.bf16 %v1022_v2, %v1020_v62  ;;  %v1047_v40 = vld [vmem:[#allocation2 + $0xd8] sm:$0xff]  ;;  %v1157_v62 = vld [vmem:[#allocation4 + $0x88] sm:$0xff]  ;;  %v1140_v2 = vld [vmem:[#allocation4] sm:$0xff] }
 0x43e   : > { %v853_v8 = vsel %vm738_vm3, %v852_v7, -inf }
 0x43f   : > { %854 = vmax.xlane.f32.xlu0 %v853_v8  ;;  %v1026_v8 = vld [vmem:[#allocation2 + $0x30] sm:$0xff] }
 0x455   : > { %866 = vrot.lane.b32.xlu0 %v751_v36, %s1620_s18  ;;  %v940_v36 = vpack.c.bf16 %v928_v35, %v927_v34  ;;  %v1043_v34 = vld [vmem:[#allocation2 + $0xb8] sm:$0xff] }
 0x4cc   : > { %v855_v9 = vpop.xlane.xlu0 %854 }
 0x4cd   : > { %v856_v10 = vsub.f32 %v852_v7, %v855_v9  ;;  %v1024_v7 = vld [vmem:[#allocation2 + $0x20] sm:$0xff]  ;;  %v1029_v9 = vld [vmem:[#allocation2 + $0x48] sm:$0xff] }
 0x4cf   : > { %v857_v11 = vmul.f32 1.442695, %v856_v10  ;;  %v1031_v10 = vld [vmem:[#allocation2 + $0x58] sm:$0xff] }
 0x4d0   : > { %v867_v12 = vpop.permute.xlu0 %866 }
 0x4d1   : > { %1527 = vpow2.f32 %v857_v11  ;;  %v872_v13 = vsel %vm755_vm2, %v867_v12, 0  ;;  %v1055_v11 = vpack.c.bf16 %v1026_v8, %v1024_v7  ;;  %v1058_v12 = vpack.c.bf16 %v1031_v10, %v1029_v9  ;;  %v1142_v8 = vld [vmem:[#allocation4 + $0x10] sm:$0xff]  ;;  %v1143_v9 = vld [vmem:[#allocation4 + $0x18] sm:$0xff] }
 0x4d2   : > { %1461 = vmatpush3.bf16.msra.mxu1 %v872_v13  ;;  %v1175_v10 = vpack.c.bf16 %v1143_v9, %v1142_v8 }
 0x4d3   : > { %1081 = vmatprep.subr.bf16.mxu1 %v1054_v63  ;;  %v1182_v63 = vpack.c.bf16 %v1157_v62, %v1156_v61 }
 0x4db   : > { %v1528_v14 = vpop.eup %1527 }
 0x4dc   : > { %v859_v17 = vsel %vm738_vm3, %v1528_v14, 0.0 }
 0x4dd   : > { %860 = vadd.xlane.f32.xlu1 %v859_v17 }
 0x56a   : > { %v861_v19 = vpop.xlane.xlu1 %860 }
 0x56b   : > { %1529 = vrcp.f32 %v861_v19  ;;  %v1028_v19 = vld [vmem:[#allocation2 + $0x40] sm:$0xff] }
 0x575   : > { %v1530_v20 = vpop.eup %1529 }
 0x576   : > { %v863_v21 = vmul.f32 %v1530_v20, %v1528_v14  ;;  %v1030_v20 = vld [vmem:[#allocation2 + $0x50] sm:$0xff] }
 0x578   : > { %v864_v22 = vpack.c.bf16 %v863_v21, %v863_v21  ;;  %v1057_v21 = vpack.c.bf16 %v1030_v20, %v1028_v19  ;;  %v1162_v19 = vld [vmem:[#allocation4 + $0xb0] sm:$0xff]  ;;  %v1163_v20 = vld [vmem:[#allocation4 + $0xb8] sm:$0xff] }
 0x57a   : > { %1463 = vmatmul.mubr.msk.bf16.vlgmr.msra.gmra.mrb[16].mxu1 %vm738_vm3, %v864_v22  ;;  %v1033_v22 = vld [vmem:[#allocation2 + $0x68] sm:$0xff] }
 0x57b   : > { %1113 = vmatprep.mubr.bf16.mxu1 %v1617_v0  ;;  %v923_v0 = vld [vmem:[%s2099_s4 + $0x20] sm:$0xff]  ;;  %1082 = vmatpush1.bf16.msra.mxu1 %v1053_v4  ;;  %v1060_v24 = vpack.c.bf16 %v1035_v23, %v1033_v22  ;;  %v1158_v4 = vld [vmem:[#allocation4 + $0x90] sm:$0xff]  ;;  %v1185_v22 = vpack.c.bf16 %v1163_v20, %v1162_v19  ;;  %v1147_v23 = vld [vmem:[#allocation4 + $0x38] sm:$0xff] }
 0x57c   : > { %v938_v30 = vpack.c.bf16 %v924_v29, %v923_v0  ;;  %v1039_v0 = vld [vmem:[#allocation2 + $0x98] sm:$0xff] }
 0x57d   : > { %v1062_v29 = vpack.c.bf16 %v1039_v0, %v1037_v28  ;;  %v1148_v28 = vld [vmem:[#allocation4 + $0x40] sm:$0xff]  ;;  %v1149_v0 = vld [vmem:[#allocation4 + $0x48] sm:$0xff] }
 0x57e   : > { %1471 = vmatpush3.bf16.msra.mxu0 %v938_v30  ;;  %v1036_v30 = vld [vmem:[#allocation2 + $0x80] sm:$0xff] }
 0x57f   : > { %1472 = vmatprep.subr.bf16.mxu0 %v1618_v1  ;;  %v1061_v32 = vpack.c.bf16 %v1038_v31, %v1036_v30  ;;  %v1167_v30 = vld [vmem:[#allocation4 + $0xd8] sm:$0xff]  ;;  %v1178_v31 = vpack.c.bf16 %v1149_v0, %v1148_v28 }
 0x582   : > { %1473 = vmatpush3.bf16.msra.mxu0 %v939_v33  ;;  %v1041_v33 = vld [vmem:[#allocation2 + $0xa8] sm:$0xff] }
 0x583   : > { %1474 = vmatprep.subr.bf16.mxu0 %v1618_v1  ;;  %v1064_v35 = vpack.c.bf16 %v1043_v34, %v1041_v33  ;;  %v1150_v33 = vld [vmem:[#allocation4 + $0x50] sm:$0xff]  ;;  %v1151_v34 = vld [vmem:[#allocation4 + $0x58] sm:$0xff] }
 0x586   : > { %1475 = vmatpush3.bf16.msra.mxu0 %v940_v36  ;;  %v1040_v36 = vld [vmem:[#allocation2 + $0xa0] sm:$0xff] }
 0x587   : > { %1476 = vmatprep.subr.bf16.mxu0 %v1618_v1  ;;  %v1063_v38 = vpack.c.bf16 %v1042_v37, %v1040_v36  ;;  %v1169_v36 = vld [vmem:[#allocation4 + $0xe8] sm:$0xff]  ;;  %v1179_v37 = vpack.c.bf16 %v1151_v34, %v1150_v33 }
 0x58a   : > { %1477 = vmatpush3.bf16.msra.mxu0 %v941_v39  ;;  %v1045_v39 = vld [vmem:[#allocation2 + $0xc8] sm:$0xff] }
 0x58b   : > { %1478 = vmatprep.subr.bf16.mxu0 %v1618_v1  ;;  %v1066_v41 = vpack.c.bf16 %v1047_v40, %v1045_v39  ;;  %v1152_v39 = vld [vmem:[#allocation4 + $0x60] sm:$0xff]  ;;  %v1153_v40 = vld [vmem:[#allocation4 + $0x68] sm:$0xff] }
 0x58e   : > { %1479 = vmatpush3.bf16.msra.mxu0 %v942_v42  ;;  %v1044_v42 = vld [vmem:[#allocation2 + $0xc0] sm:$0xff] }
 0x58f   : > { %1480 = vmatprep.subr.bf16.mxu0 %v1618_v1  ;;  %v1065_v44 = vpack.c.bf16 %v1046_v43, %v1044_v42  ;;  %v1171_v42 = vld [vmem:[#allocation4 + $0xf8] sm:$0xff]  ;;  %v1180_v43 = vpack.c.bf16 %v1153_v40, %v1152_v39 }
 0x592   : > { %1481 = vmatpush3.bf16.msra.mxu0 %v943_v45  ;;  %v1049_v45 = vld [vmem:[#allocation2 + $0xe8] sm:$0xff] }
 0x593   : > { %1400 = vmatprep.subr.bf16.mxu0 %v1182_v63 }
 0x64d   : > { %v908_v46 = vpop.f32.mrb[16].mxu1 }
 0x64e   : > { %915 = vrot.lane.b32.xlu0 %v908_v46, %s1620_s18  ;;  %v1464_v47 = vpop.f32.mrb[17].mxu1  ;;  %v1051_v46 = vld [vmem:[#allocation2 + $0xf8] sm:$0xff]  ;;  %s506_s18 = scalar_lea.vmem %s2109_s14, %s1359_s19 }
 0x64f   : > { %v911_v48 = vpop.f32.mrb[18].mxu1  ;;  %v1048_v47 = vld [vmem:[#allocation2 + $0xe0] sm:$0xff] }
 0x650   : > { %v1465_v49 = vpop.f32.mrb[19].mxu1  ;;  %v1068_v48 = vpack.c.bf16 %v1051_v46, %v1049_v45  ;;  %v1154_v45 = vld [vmem:[#allocation4 + $0x70] sm:$0xff]  ;;  %v1155_v46 = vld [vmem:[#allocation4 + $0x78] sm:$0xff] }
 0x651   : > { %v1050_v49 = vld [vmem:[#allocation2 + $0xf0] sm:$0xff] }
 0x6c0   : > { %v916_v50 = vpop.permute.xlu0 %915 }
 0x6c1   : > { %v918_v1 = vsel %vm683_vm1, %v1990_v59, %v916_v50  ;;  %v1025_v59 = vld [vmem:[#allocation2 + $0x28] sm:$0xff]  ;;  %v1067_v50 = vpack.c.bf16 %v1050_v49, %v1048_v47  ;;  %v1181_v47 = vpack.c.bf16 %v1155_v46, %v1154_v45 }
 0x6c2   : > { %v935_v51 = vpack.c.bf16 %v918_v1, %v918_v1  ;;  %v1056_v6 = vpack.c.bf16 %v1027_v3, %v1025_v59  ;;  %v1141_v59 = vld [vmem:[#allocation4 + $0x8] sm:$0xff] }
 0x6c3   : > { %v1174_v3 = vpack.c.bf16 %v1141_v59, %v1140_v2 }
 0x6c4   : > { %1483 = vmatmul.mubr.bf16.vlgmr.msra.gmra.mrb[4].mxu0 %v935_v51  ;;  %1083 = vmatprep.subr.bf16.mxu1 %v1056_v6  ;;  %v1159_v6 = vld [vmem:[#allocation4 + $0x98] sm:$0xff] }
 0x6c5   : > { %1084 = vmatpush1.bf16.msra.mxu1 %v1055_v11  ;;  %1401 = vmatpush3.bf16.msra.mxu0 %v1174_v3  ;;  %v1183_v7 = vpack.c.bf16 %v1159_v6, %v1158_v4  ;;  %v1160_v11 = vld [vmem:[#allocation4 + $0xa0] sm:$0xff] }
 0x6c6   : > { %1085 = vmatprep.subr.bf16.mxu1 %v1058_v12  ;;  %v1161_v12 = vld [vmem:[#allocation4 + $0xa8] sm:$0xff] }
 0x6c7   : > { %1402 = vmatprep.subr.bf16.mxu0 %v1183_v7 }
 0x6c9   : > { %1086 = vmatpush1.bf16.msra.mxu1 %v1057_v21  ;;  %1403 = vmatpush3.bf16.msra.mxu0 %v1175_v10  ;;  %v1146_v21 = vld [vmem:[#allocation4 + $0x30] sm:$0xff] }
 0x6ca   : > { %1087 = vmatprep.subr.bf16.mxu1 %v1060_v24  ;;  %v1164_v24 = vld [vmem:[#allocation4 + $0xc0] sm:$0xff]  ;;  %v1177_v26 = vpack.c.bf16 %v1147_v23, %v1146_v21 }
 0x6cd   : > { %1088 = vmatpush1.bf16.msra.mxu1 %v1059_v27  ;;  %v1186_v27 = vpack.c.bf16 %v1165_v25, %v1164_v24 }
 0x6ce   : > { %1089 = vmatprep.subr.bf16.mxu1 %v1062_v29  ;;  %v1166_v29 = vld [vmem:[#allocation4 + $0xd0] sm:$0xff] }
 0x6d1   : > { %1090 = vmatpush1.bf16.msra.mxu1 %v1061_v32  ;;  %v1187_v32 = vpack.c.bf16 %v1167_v30, %v1166_v29  ;;  %v1370_v30 = vld [vmem:[%s2107_s12] ss:$0 sm:$0xff] }
 0x6d2   : > { %1091 = vmatprep.subr.bf16.mxu1 %v1064_v35  ;;  %v1168_v35 = vld [vmem:[#allocation4 + $0xe0] sm:$0xff] }
 0x6d5   : > { %1092 = vmatpush1.bf16.msra.mxu1 %v1063_v38  ;;  %v1188_v38 = vpack.c.bf16 %v1169_v36, %v1168_v35 }
 0x6d6   : > { %1093 = vmatprep.subr.bf16.mxu1 %v1066_v41  ;;  %v1170_v41 = vld [vmem:[#allocation4 + $0xf0] sm:$0xff] }
 0x6d9   : > { %1094 = vmatpush1.bf16.msra.mxu1 %v1065_v44  ;;  %v1189_v44 = vpack.c.bf16 %v1171_v42, %v1170_v41 }
 0x6da   : > { %1095 = vmatprep.subr.bf16.mxu1 %v1068_v48  ;;  %v1069_v48 = vld [vmem:[%s2104_s9] sm:$0x3] }
 0x6db   : > { %v1074_v49 = vrot.slane %v1069_v48, %v587_v18 }
 0x6dd   : > { %1096 = vmatpush1.bf16.msra.mxu1 %v1067_v50  ;;  %v1078_v50 = vrot.slane %v1069_v48, %v591_v16 }
 0x797   : > { %v985_v53 = vpop.f32.mrb[4].mxu0 }
 0x798   : > { %v986_v54 = vadd.f32 %v1366_v52, %v985_v53  ;;  %v1484_v55 = vpop.f32.mrb[5].mxu0 }
 0x799   : > { %v988_v56 = vpop.f32.mrb[6].mxu0 }
 0x79a   : > { %v1485_v57 = vpop.f32.mrb[7].mxu0  ;;  %v991_v58 = vadd.f32 %v986_v54, %v1928_v5  ;;  %v1367_v54 = vld [vmem:[%s2101_s6] ss:$0 sm:$0xff] }
 0x79b   : > { %v1368_v56 = vld [vmem:[%s2102_s7] ss:$0 sm:$0xff] }
 0x79c   : > { %994 = vadd.xlane.f32.xlu0 %v991_v58 }
 0x829   : > { %v995_v5 = vpop.xlane.xlu0 %994 }
 0x82a   : > { %v997_v13 = vmul.f32 0.0078125, %v995_v5  ;;  %v1184_v5 = vpack.c.bf16 %v1161_v12, %v1160_v11 }
 0x82c   : > { %v998_v14 = vsub.f32 %v991_v58, %v997_v13  ;;  %v1144_v13 = vld [vmem:[#allocation4 + $0x20] sm:$0xff]  ;;  %1404 = vmatprep.subr.bf16.mxu0 %v1184_v5 }
 0x82e   : > { %v999_v17 = vmul.f32 %v998_v14, %v998_v14 }
 0x830   : > { %1000 = vadd.xlane.f32.xlu1 %v999_v17 }
 0x8bd   : > { %v1001_v1 = vpop.xlane.xlu1 %1000 }
 0x8be   : > { %v1002_v51 = vmul.f32 0.0078125, %v1001_v1 }
 0x8c0   : > { %v1003_v52 = vadd.f32 1e-12, %v1002_v51 }
 0x8c2   : > { %1531 = vrsqrt.f32 %v1003_v52 }
 0x8cc   : > { %v1532_v53 = vpop.eup %1531 }
 0x8cd   : > { %v1005_v55 = vmul.f32 %v1532_v53, %v998_v14  ;;  %v1145_v14 = vld [vmem:[#allocation4 + $0x28] sm:$0xff] }
 0x8ce   : > { %v1176_v17 = vpack.c.bf16 %v1145_v14, %v1144_v13  ;;  %v1369_v13 = vld [vmem:[%s2106_s11] ss:$0 sm:$0xff] }
 0x8cf   : > { %v1012_v57 = vmul.f32 %v1367_v54, %v1005_v55 }
 0x8d0   : > { %1405 = vmatpush3.bf16.msra.mxu0 %v1176_v17 }
 0x8d1   : > { %v2066_v58 = vadd.f32 %v1368_v56, %v1012_v57  ;;  %1406 = vmatprep.subr.bf16.mxu0 %v1185_v22 }
 0x8d3   : > { %v1052_v60 = vpack.c.bf16 %v2066_v58, %v2066_v58 }
 0x8d4   : > { %1407 = vmatpush3.bf16.msra.mxu0 %v1177_v26 }
 0x8d5   : > { %1114 = vmatmul.mubr.bf16.vlgmr.msra.gmra.mrb[20].mxu1 %v1052_v60  ;;  %1408 = vmatprep.subr.bf16.mxu0 %v1186_v27 }
 0x8d8   : > { %1409 = vmatpush3.bf16.msra.mxu0 %v1178_v31 }
 0x8d9   : > { %1410 = vmatprep.subr.bf16.mxu0 %v1187_v32 }
 0x8dc   : > { %1411 = vmatpush3.bf16.msra.mxu0 %v1179_v37 }
 0x8dd   : > { %1412 = vmatprep.subr.bf16.mxu0 %v1188_v38 }
 0x8e0   : > { %1413 = vmatpush3.bf16.msra.mxu0 %v1180_v43 }
 0x8e1   : > { %1414 = vmatprep.subr.bf16.mxu0 %v1189_v44 }
 0x8e4   : > { %1415 = vmatpush3.bf16.msra.mxu0 %v1181_v47 }
 0x9a8   : > { %v1115_v1 = vpop.f32.mrb[20].mxu1 }
 0x9a9   : > { %v1116_v51 = vadd.f32 %v1115_v1, %v1074_v49  ;;  %v1117_v52 = vpop.f32.mrb[21].mxu1 }
 0x9aa   : > { %v1118_v53 = vadd.f32 %v1117_v52, %v1078_v50  ;;  %v1119_v54 = vpop.f32.mrb[22].mxu1 }
 0x9ab   : > { %v1124_v55 = vmul.f32 0.044715, %v1116_v51  ;;  %v1120_v56 = vpop.f32.mrb[23].mxu1  ;;  %v1122_v18 = vmul.f32 0.5, %v1116_v51 }
 0x9ac   : > { %v1125_v57 = vmul.f32 0.044715, %v1118_v53  ;;  %v1123_v7 = vmul.f32 0.5, %v1118_v53 }
 0x9ad   : > { %v1126_v60 = vmul.f32 %v1124_v55, %v1116_v51 }
 0x9ae   : > { %v1127_v61 = vmul.f32 %v1125_v57, %v1118_v53 }
 0x9af   : > { %v1128_v62 = vmul.f32 %v1126_v60, %v1116_v51 }
 0x9b0   : > { %v1129_v63 = vmul.f32 %v1127_v61, %v1118_v53 }
 0x9b1   : > { %v1130_v2 = vadd.f32 %v1128_v62, %v1116_v51 }
 0x9b2   : > { %v1131_v59 = vadd.f32 %v1129_v63, %v1118_v53 }
 0x9b3   : > { %v1132_v3 = vmul.f32 0.7978846, %v1130_v2 }
 0x9b4   : > { %v1133_v4 = vmul.f32 0.7978846, %v1131_v59 }
 0x9b5   : > { %1533 = vtanh.f32 %v1132_v3 }
 0x9b6   : > { %1535 = vtanh.f32 %v1133_v4 }
 0x9bf   : > { %v1534_v15 = vpop.eup %1533 }
 0x9c0   : > { %v1536_v16 = vpop.eup %1535  ;;  %v1136_v6 = vadd.f32 1.0, %v1534_v15 }
 0x9c1   : > { %v1137_v8 = vadd.f32 1.0, %v1536_v16 }
 0x9c2   : > { %v1138_v9 = vmul.f32 %v1136_v6, %v1122_v18 }
 0x9c3   : > { %v1139_v10 = vmul.f32 %v1137_v8, %v1123_v7 }
 0x9c4   : > { %v1172_v12 = vpack.c.bf16 %v1138_v9, %v1138_v9 }
 0x9c5   : > { %v1173_v11 = vpack.c.bf16 %v1139_v10, %v1139_v10 }
 0x9c7   : > { %1229 = vmatprep.mubr.bf16.mxu0 %v1173_v11 }
 0x9c8   : > { %1230 = vmatmul.mubr.bf16.vlgmr.msra.gmra.mrb[8].mxu0 %v1172_v12 }
 0xa9b   : > { %v1416_v5 = vpop.f32.mrb[8].mxu0 }
 0xa9c   : > { %v1417_v14 = vpop.f32.mrb[9].mxu0 }
 0xa9d   : > { %v1418_v17 = vadd.f32 %v1417_v14, %v1416_v5  ;;  %v1419_v19 = vpop.f32.mrb[10].mxu0 }
 0xa9e   : > { %v1420_v20 = vpop.f32.mrb[11].mxu0 }
 0xa9f   : > { %v1232_v21 = vadd.f32 %v1418_v17, %v1369_v13 }
 0xaa1   : > { %v1237_v22 = vadd.f32 %v1232_v21, %v2066_v58  ;;  %v1371_v58 = vld [vmem:[%s2108_s13] ss:$0 sm:$0xff] }
 0xaa3   : > { %1240 = vadd.xlane.f32.xlu1 %v1237_v22 }
 0xb30   : > { %v1241_v23 = vpop.xlane.xlu1 %1240 }
 0xb31   : > { %v1242_v24 = vmul.f32 0.0078125, %v1241_v23 }
 0xb33   : > { %v1243_v25 = vsub.f32 %v1237_v22, %v1242_v24 }
 0xb35   : > { %v1244_v26 = vmul.f32 %v1243_v25, %v1243_v25 }
 0xb37   : > { %1245 = vadd.xlane.f32.xlu1 %v1244_v26 }
 0xbc4   : > { %v1246_v27 = vpop.xlane.xlu1 %1245 }
 0xbc5   : > { %v1247_v28 = vmul.f32 0.0078125, %v1246_v27 }
 0xbc7   : > { %v1248_v0 = vadd.f32 1e-12, %v1247_v28 }
 0xbc9   : > { %1537 = vrsqrt.f32 %v1248_v0 }
 0xbd3   : > { %v1538_v29 = vpop.eup %1537 }
 0xbd4   : > { %v1250_v31 = vmul.f32 %v1538_v29, %v1243_v25 }
 0xbd6   : > { %v1257_v32 = vmul.f32 %v1370_v30, %v1250_v31 }
 0xbd8   : > { %v1264_v33 = vadd.f32 %v1371_v58, %v1257_v32 }
 0xbda   : > { %1265 = vst [vmem:[%s506_s18] sm:$0xff] %v1264_v33 }
 0xbdb PF: > { %s2121_s29 = sld [smem:[#allocation8_spill]] }
 0xbe1   : > { %s26_s29 = sadd.s32 1, %s2121_s29  }
 0xbe2   : > { %p23_p9 = scmp.ge.s32.totalorder %s26_s29, 4  }
 0xbe4   :  { %25 = sbr.rel (!%p23_p9) target bundleno = 2 (0x2), region = 118 }
 0xbeb   :  { %1285 = vsyncpa [#allocation3], 1 }
 0xbec   :  { %1287 = vsyncpa [#allocation3 + $0x1], 1 }
 0xbed   :  { %1288 = vsyncpa [#allocation5], 1 }

// kernel: arbert_revdict_forward.6
= control target key start
LH: loop header
LB: loop body
LE: loop exit
PB: predicated region body
PF: predicated region fallthrough
CT: control target
= control target key end

     0   :  { %s1545_s29 = smov 0   ;;  %s2068_s0 = inlined_call_operand.vmem [shape: f32[2,8,128], index: 0, kind: input, shape index: {}]   ;;  %s2069_s1 = inlined_call_operand.vmem [shape: f32[2,1,8], index: 1, kind: input, shape index: {}]   ;;  %s2070_s2 = inlined_call_operand.vmem [shape: f32[128,384], index: 2, kind: input, shape index: {}]   ;;  %s2071_s3 = inlined_call_operand.vmem [shape: f32[1,384], index: 3, kind: input, shape index: {}]   ;;  %s2072_s4 = inlined_call_operand.vmem [shape: f32[128,128], index: 4, kind: input, shape index: {}]   ;;  %s2073_s5 = inlined_call_operand.vmem [shape: f32[1,128], index: 5, kind: input, shape index: {}]   ;;  %s2074_s6 = inlined_call_operand.vmem [shape: f32[1,128], index: 6, kind: input, shape index: {}]   ;;  %s2075_s7 = inlined_call_operand.vmem [shape: f32[1,128], index: 7, kind: input, shape index: {}]   ;;  %s2076_s8 = inlined_call_operand.vmem [shape: f32[128,256], index: 8, kind: input, shape index: {}]   ;;  %s2077_s9 = inlined_call_operand.vmem [shape: f32[1,256], index: 9, kind: input, shape index: {}]   ;;  %s2078_s10 = inlined_call_operand.vmem [shape: f32[256,128], index: 10, kind: input, shape index: {}]   ;;  %s2079_s11 = inlined_call_operand.vmem [shape: f32[1,128], index: 11, kind: input, shape index: {}]   ;;  %s2080_s12 = inlined_call_operand.vmem [shape: f32[1,128], index: 12, kind: input, shape index: {}]   ;;  %s2081_s13 = inlined_call_operand.vmem [shape: f32[1,128], index: 13, kind: input, shape index: {}]   ;;  %s2082_s14 = inlined_call_operand.vmem [shape: f32[2,8,128], index: 14, kind: output, shape index: {}]  }
   0x1 LB: > { %s1298_s30 = sadd.s32 4294967295, %s1464_s29   ;;  %p1302_p0 = scmp.ge.s32.totalorder %s1464_s29, 1  ;;  %s1464_s29 = sphi %s1545_s29, %s24_s29  }
   0x2   : > { %p419_p1 = scmp.lt.s32.totalorder %s1464_s29, 3 }
   0x4   : > { %p420_p2 = pnand %p1302_p0, %p419_p1 }
   0x5   : > { %v481_v0 = vld [vmem:[%s2070_s2 + $0x8] sm:$0xff] (!%p420_p2)  ;;  %v484_v1 = vld [vmem:[%s2070_s2 + $0x20] sm:$0xff] (!%p420_p2)  ;;  %v483_v4 = vld [vmem:[%s2070_s2 + $0x18] sm:$0xff] (!%p420_p2)  ;;  %v1466_v7 = vmov (!%p420_p2), 0   ;;  %v1467_v8 = vmov (!%p420_p2), 0.0   ;;  %p1635_p3 = scmp.lt.s32.totalorder (!%p420_p2), %s1298_s30, 1 }
   0x6   : > { %423 = sbr.rel (%p420_p2) target bundleno = 2970 (0xb9a), region = 76  ;;  %v480_v2 = vld [vmem:[%s2070_s2] sm:$0xff] (!%p420_p2)  ;;  %v530_v3 = vpack.c.bf16 (!%p420_p2), %v484_v1, %v481_v0  ;;  %v487_v5 = vld [vmem:[%s2070_s2 + $0x38] sm:$0xff] (!%p420_p2)  ;;  %v490_v6 = vld [vmem:[%s2070_s2 + $0x50] sm:$0xff] (!%p420_p2)  ;;  %602 = vmatprep.mubr.bf16.mxu0 (!%p420_p2), %v1466_v7  ;;  %1366 = vmatprep.subr.bf16.mxu1 (!%p420_p2), %v1467_v8  ;;  %vm1468_vm0 = vmmov (!%p420_p2), 0   ;;  %vm653_vm1 = vcmask (!%p420_p2), 523264  }
   0x7   : > { %v529_v9 = vpack.c.bf16 (!%p420_p2), %v483_v4, %v480_v2  ;;  %v533_v10 = vpack.c.bf16 (!%p420_p2), %v490_v6, %v487_v5  ;;  %v486_v11 = vld [vmem:[%s2070_s2 + $0x30] sm:$0xff] (!%p420_p2)  ;;  %v489_v12 = vld [vmem:[%s2070_s2 + $0x48] sm:$0xff] (!%p420_p2)  ;;  %v496_v14 = vld [vmem:[%s2070_s2 + $0x80] sm:$0xff] (!%p420_p2)  ;;  %1382 = vmatprep.mubr.msk.bf16.mxu1 (!%p420_p2), %vm1468_vm0, %v1467_v8  ;;  %s1469_s21 = smov (!%p420_p2), 64   ;;  %vm725_vm2 = vcmask (!%p420_p2), 1043456   ;;  %vm708_vm3 = vcmask (!%p420_p2), 64512  }
   0x8   : > { %v493_v13 = vld [vmem:[%s2070_s2 + $0x68] sm:$0xff] (!%p420_p2)  ;;  %570 = vmatprep.subr.bf16.mxu0 (!%p420_p2), %v530_v3  ;;  %v532_v15 = vpack.c.bf16 (!%p420_p2), %v489_v12, %v486_v11  ;;  %v492_v17 = vld [vmem:[%s2070_s2 + $0x60] sm:$0xff] (!%p420_p2)  ;;  %v495_v18 = vld [vmem:[%s2070_s2 + $0x78] sm:$0xff] (!%p420_p2) }
   0x9   : > { %571 = vmatpush1.bf16.msra.mxu0 (!%p420_p2), %v529_v9  ;;  %v536_v16 = vpack.c.bf16 (!%p420_p2), %v496_v14, %v493_v13  ;;  %v499_v19 = vld [vmem:[%s2070_s2 + $0x98] sm:$0xff] (!%p420_p2)  ;;  %v502_v20 = vld [vmem:[%s2070_s2 + $0xb0] sm:$0xff] (!%p420_p2)  ;;  %v535_v21 = vpack.c.bf16 (!%p420_p2), %v495_v18, %v492_v17  ;;  %v501_v24 = vld [vmem:[%s2070_s2 + $0xa8] sm:$0xff] (!%p420_p2)  ;;  %v555_v14 = vlaneseq (!%p420_p2) }
   0xa   : > { %572 = vmatprep.subr.bf16.mxu0 (!%p420_p2), %v533_v10  ;;  %v539_v22 = vpack.c.bf16 (!%p420_p2), %v502_v20, %v499_v19  ;;  %v498_v23 = vld [vmem:[%s2070_s2 + $0x90] sm:$0xff] (!%p420_p2)  ;;  %v505_v25 = vld [vmem:[%s2070_s2 + $0xc8] sm:$0xff] (!%p420_p2)  ;;  %v508_v26 = vld [vmem:[%s2070_s2 + $0xe0] sm:$0xff] (!%p420_p2) }
   0xb   : > { %v482_v27 = vld [vmem:[%s2070_s2 + $0x10] sm:$0xff] (!%p420_p2)  ;;  %v485_v28 = vld [vmem:[%s2070_s2 + $0x28] sm:$0xff] (!%p420_p2)  ;;  %v488_v29 = vld [vmem:[%s2070_s2 + $0x40] sm:$0xff] (!%p420_p2)  ;;  %v538_v30 = vpack.c.bf16 (!%p420_p2), %v501_v24, %v498_v23  ;;  %v542_v33 = vpack.c.bf16 (!%p420_p2), %v508_v26, %v505_v25 }
   0xc   : > { %v531_v31 = vpack.c.bf16 (!%p420_p2), %v485_v28, %v482_v27  ;;  %v491_v32 = vld [vmem:[%s2070_s2 + $0x58] sm:$0xff] (!%p420_p2)  ;;  %v504_v34 = vld [vmem:[%s2070_s2 + $0xc0] sm:$0xff] (!%p420_p2)  ;;  %v514_v37 = vld [vmem:[%s2070_s2 + $0x110] sm:$0xff] (!%p420_p2) }
   0xd   : > { %573 = vmatpush1.bf16.msra.mxu0 %v532_v15  ;;  %v507_v35 = vld [vmem:[%s2070_s2 + $0xd8] sm:$0xff]  ;;  %v534_v38 = vpack.c.bf16 %v491_v32, %v488_v29  ;;  %v494_v39 = vld [vmem:[%s2070_s2 + $0x70] sm:$0xff]  ;;  %v497_v40 = vld [vmem:[%s2070_s2 + $0x88] sm:$0xff]  ;;  %s2085_s30 = smov (!%p1635_p3, %s1298_s30), 1  ;;  %v1736_v15 = vshrl.u32 %v555_v14, 7 }
   0xe   : > { %574 = vmatprep.subr.bf16.mxu0 %v536_v16  ;;  %v511_v36 = vld [vmem:[%s2070_s2 + $0xf8] sm:$0xff]  ;;  %1367 = vmatpush3.bf16.msra.mxu1 %v531_v31  ;;  %v541_v41 = vpack.c.bf16 %v507_v35, %v504_v34  ;;  %v510_v43 = vld [vmem:[%s2070_s2 + $0xf0] sm:$0xff]  ;;  %v513_v44 = vld [vmem:[%s2070_s2 + $0x108] sm:$0xff]  ;;  %v537_v47 = vpack.c.bf16 %v497_v40, %v494_v39  ;;  %s1303_s22 = sshll.u32 %s2085_s30, 3  ;;  %s472_s26 = scalar_lea.vmem %s2069_s1, %s2085_s30 }
   0xf   : > { %1368 = vmatprep.subr.bf16.mxu1 %v1467_v8  ;;  %v545_v42 = vpack.c.bf16 %v514_v37, %v511_v36  ;;  %v517_v45 = vld [vmem:[%s2070_s2 + $0x128] sm:$0xff]  ;;  %v520_v46 = vld [vmem:[%s2070_s2 + $0x140] sm:$0xff]  ;;  %v503_v49 = vld [vmem:[%s2070_s2 + $0xb8] sm:$0xff]  ;;  %v544_v50 = vpack.c.bf16 %v513_v44, %v510_v43  ;;  %s469_s19 = scalar_lea.vmem %s2068_s0, %s1303_s22  ;;  %v561_v16 = vsub.s32 1, %v1736_v15  ;;  %v557_v18 = vsub.s32 0, %v1736_v15  ;;  %s476_s23 = scalar_lea.vmem %s2082_s14, %s1303_s22 }
  0x10   : > { %v500_v48 = vld [vmem:[%s2070_s2 + $0xa0] sm:$0xff]  ;;  %v548_v51 = vpack.c.bf16 %v520_v46, %v517_v45  ;;  %v519_v53 = vld [vmem:[%s2070_s2 + $0x138] sm:$0xff]  ;;  %v526_v55 = vld [vmem:[%s2070_s2 + $0x170] sm:$0xff] }
  0x11   : > { %575 = vmatpush1.bf16.msra.mxu0 %v535_v21  ;;  %v516_v52 = vld [vmem:[%s2070_s2 + $0x120] sm:$0xff]  ;;  %v523_v54 = vld [vmem:[%s2070_s2 + $0x158] sm:$0xff]  ;;  %v540_v56 = vpack.c.bf16 %v503_v49, %v500_v48  ;;  %v506_v57 = vld [vmem:[%s2070_s2 + $0xd0] sm:$0xff] }
  0x12   : > { %576 = vmatprep.subr.bf16.mxu0 %v539_v22  ;;  %1369 = vmatpush3.bf16.msra.mxu1 %v534_v38  ;;  %v509_v58 = vld [vmem:[%s2070_s2 + $0xe8] sm:$0xff]  ;;  %v547_v59 = vpack.c.bf16 %v519_v53, %v516_v52  ;;  %v551_v60 = vpack.c.bf16 %v526_v55, %v523_v54  ;;  %v522_v61 = vld [vmem:[%s2070_s2 + $0x150] sm:$0xff]  ;;  %v512_v0 = vld [vmem:[%s2070_s2 + $0x100] sm:$0xff] }
  0x13   : > { %1370 = vmatprep.subr.bf16.mxu1 %v1467_v8  ;;  %v525_v62 = vld [vmem:[%s2070_s2 + $0x168] sm:$0xff]  ;;  %v543_v63 = vpack.c.bf16 %v509_v58, %v506_v57  ;;  %v515_v1 = vld [vmem:[%s2070_s2 + $0x118] sm:$0xff]  ;;  %v1709_v3 = vld [vmem:[%s469_s19] sm:$0xff] }
  0x14   : > { %v550_v2 = vpack.c.bf16 %v525_v62, %v522_v61  ;;  %v546_v4 = vpack.c.bf16 %v515_v1, %v512_v0  ;;  %v528_v5 = vpack.c.bf16 %v1709_v3, %v1709_v3  ;;  %v518_v6 = vld [vmem:[%s2070_s2 + $0x130] sm:$0xff]  ;;  %v521_v9 = vld [vmem:[%s2070_s2 + $0x148] sm:$0xff]  ;;  %v524_v11 = vld [vmem:[%s2070_s2 + $0x160] sm:$0xff] }
  0x15   : > { %577 = vmatpush1.bf16.msra.mxu0 %v538_v30  ;;  %v549_v10 = vpack.c.bf16 %v521_v9, %v518_v6  ;;  %v527_v12 = vld [vmem:[%s2070_s2 + $0x178] sm:$0xff]  ;;  %v553_v17 = vld [vmem:[%s2071_s3] sm:$0x7]  ;;  %v565_v30 = vsub.s32 2, %v1736_v15 }
  0x16   : > { %578 = vmatprep.subr.bf16.mxu0 %v542_v33  ;;  %1371 = vmatpush3.bf16.msra.mxu1 %v537_v47  ;;  %v552_v13 = vpack.c.bf16 %v527_v12, %v524_v11  ;;  %v562_v19 = vrot.slane %v553_v17, %v561_v16  ;;  %v558_v20 = vrot.slane %v553_v17, %v557_v18  ;;  %v1306_v40 = vld [vmem:[%s472_s26] ss:$0 sm:$0xff] }
  0x17   : > { %1372 = vmatprep.subr.bf16.mxu1 %v1467_v8  ;;  %v566_v31 = vrot.slane %v553_v17, %v565_v30 }
  0x19   : > { %579 = vmatpush1.bf16.msra.mxu0 %v541_v41 }
  0x1a   : > { %580 = vmatprep.subr.bf16.mxu0 %v545_v42  ;;  %1373 = vmatpush3.bf16.msra.mxu1 %v540_v56 }
  0x1b   : > { %1374 = vmatprep.subr.bf16.mxu1 %v1467_v8 }
  0x1d   : > { %581 = vmatpush1.bf16.msra.mxu0 %v544_v50 }
  0x1e   : > { %582 = vmatprep.subr.bf16.mxu0 %v548_v51  ;;  %1375 = vmatpush3.bf16.msra.mxu1 %v543_v63 }
  0x1f   : > { %1376 = vmatprep.subr.bf16.mxu1 %v1467_v8 }
  0x21   : > { %583 = vmatpush1.bf16.msra.mxu0 %v547_v59 }
  0x22   : > { %584 = vmatprep.subr.bf16.mxu0 %v551_v60  ;;  %1377 = vmatpush3.bf16.msra.mxu1 %v546_v4 }
  0x23   : > { %1378 = vmatprep.subr.bf16.mxu1 %v1467_v8 }
  0x25   : > { %585 = vmatpush1.bf16.msra.mxu0 %v550_v2 }
  0x26   : > { %1410 = vmatprep.subr.bf16.mxu0 %v1467_v8  ;;  %1379 = vmatpush3.bf16.msra.mxu1 %v549_v10 }
  0x27   : > { %1380 = vmatprep.subr.bf16.mxu1 %v1467_v8 }
  0x28   : > { %603 = vmatmul.mubr.bf16.vlgmr.msra.gmra.mrb[0].mxu0 %v528_v5 }
  0x29   : > { %1426 = vmatprep.mubr.msk.bf16.mxu0 %vm1468_vm0, %v1467_v8 }
  0x2a   : > { %1381 = vmatpush3.bf16.msra.mxu1 %v552_v13 }
  0x2b   : > { %1386 = vmatprep.subr.bf16.mxu1 %v1467_v8 }
  0x2d   : > { %1383 = vmatmul.mubr.bf16.vlgmr.msra.gmra.mrb[0].mxu1 %v528_v5 }
  0x2e   : > { %1388 = vmatprep.mubr.msk.bf16.mxu1 %vm1468_vm0, %v1467_v8 }
  0xfb   : > { %v604_v21 = vpop.f32.mrb[0].mxu0 }
  0xfc   : > { %v606_v22 = vpop.f32.mrb[1].mxu0  ;;  %v605_v26 = vadd.f32 %v604_v21, %v558_v20 }
  0xfd   : > { %v607_v23 = vadd.f32 %v606_v22, %v562_v19  ;;  %v608_v24 = vpop.f32.mrb[2].mxu0 }
  0xfe   : > { %v609_v25 = vpop.f32.mrb[3].mxu0  ;;  %v651_v29 = vpack.c.bf16 %v605_v26, %v605_v26  ;;  %v890_v24 = vld [vmem:[%s2072_s4 + $0x8] sm:$0xff] }
  0xff   : > { %v652_v27 = vpack.c.bf16 %v607_v23, %v607_v23  ;;  %v889_v23 = vld [vmem:[%s2072_s4] sm:$0xff]  ;;  %v891_v25 = vld [vmem:[%s2072_s4 + $0x10] sm:$0xff] }
 0x100   : > { %v645_v32 = vpop.f32.mrb[0].mxu1  ;;  %v906_v26 = vpack.c.bf16 %v890_v24, %v889_v23  ;;  %v1005_v23 = vld [vmem:[%s2076_s8 + $0x78] sm:$0xff] }
 0x101   : > { %v658_v28 = vsel %vm653_vm1, %v652_v27, 0  ;;  %773 = vrot.lane.b32.xlu1 %v652_v27, %s1469_s21  ;;  %v646_v33 = vadd.f32 %v645_v32, %v566_v31  ;;  %v1384_v34 = vpop.f32.mrb[1].mxu1  ;;  %v892_v27 = vld [vmem:[%s2072_s4 + $0x18] sm:$0xff]  ;;  %v895_v31 = vld [vmem:[%s2072_s4 + $0x30] sm:$0xff] }
 0x102   : > { %1387 = vmatpush3.bf16.xpose.msra.mxu1 %v658_v28  ;;  %v648_v35 = vpop.f32.mrb[2].mxu1  ;;  %1411 = vmatpush3.bf16.msra.mxu0 %v906_v26  ;;  %v907_v28 = vpack.c.bf16 %v892_v27, %v891_v25  ;;  %v896_v32 = vld [vmem:[%s2072_s4 + $0x38] sm:$0xff]  ;;  %v897_v34 = vld [vmem:[%s2072_s4 + $0x40] sm:$0xff]  ;;  %v1004_v26 = vld [vmem:[%s2076_s8 + $0x70] sm:$0xff] }
 0x103   : > { %1392 = vmatprep.subr.bf16.mxu1 %v1467_v8  ;;  %v721_v36 = vpack.c.bf16 %v646_v33, %v646_v33  ;;  %v1385_v37 = vpop.f32.mrb[3].mxu1  ;;  %1412 = vmatprep.subr.bf16.mxu0 %v1467_v8  ;;  %v909_v33 = vpack.c.bf16 %v896_v32, %v895_v31  ;;  %v898_v35 = vld [vmem:[%s2072_s4 + $0x48] sm:$0xff]  ;;  %v1002_v25 = vld [vmem:[%s2076_s8 + $0x60] sm:$0xff]  ;;  %v1008_v31 = vld [vmem:[%s2076_s8 + $0x90] sm:$0xff] }
 0x104   : > { %v899_v37 = vld [vmem:[%s2072_s4 + $0x50] sm:$0xff]  ;;  %v1029_v27 = vpack.c.bf16 %v1004_v26, %v1002_v25  ;;  %v1135_v25 = vld [vmem:[%s2078_s10 + $0xc8] sm:$0xff] }
 0x105   : > { %770 = vrot.lane.b32.xlu1 %v651_v29, %s1469_s21  ;;  %v727_v38 = vsel %vm725_vm2, %v721_v36, 0 }
 0x106   : > { %1413 = vmatpush3.bf16.msra.mxu0 %v907_v28  ;;  %v1007_v28 = vld [vmem:[%s2076_s8 + $0x88] sm:$0xff] }
 0x107   : > { %1414 = vmatprep.subr.bf16.mxu0 %v1467_v8 }
 0x109   : > { %1389 = vmatmul.mubr.msk.bf16.vlgmr.msra.gmra.mrb[4].mxu1 %vm653_vm1, %v651_v29  ;;  %v894_v29 = vld [vmem:[%s2072_s4 + $0x28] sm:$0xff] }
 0x10a   : > { %1394 = vmatprep.mubr.msk.bf16.mxu1 %vm1468_vm0, %v1467_v8  ;;  %1393 = vmatpush3.bf16.msra.mxu1 %v727_v38  ;;  %v900_v38 = vld [vmem:[%s2072_s4 + $0x58] sm:$0xff] }
 0x10b   : > { %1398 = vmatprep.subr.bf16.mxu1 %v1467_v8 }
 0x173   : > { %v774_v55 = vpop.permute.xlu1 %773 }
 0x174   : > { %v779_v57 = vsel %vm653_vm1, %v774_v55, 0 }
 0x177   : > { %v771_v58 = vpop.permute.xlu1 %770 }
 0x1dc   : > { %v694_v39 = vpop.f32.mrb[4].mxu1 }
 0x1dd   : > { %v700_v41 = vmul.f32 0.125, %v694_v39  ;;  %v1390_v42 = vpop.f32.mrb[5].mxu1  ;;  %v911_v39 = vpack.c.bf16 %v900_v38, %v899_v37  ;;  %v1012_v37 = vld [vmem:[%s2076_s8 + $0xb0] sm:$0xff] }
 0x1de   : > { %v697_v43 = vpop.f32.mrb[6].mxu1 }
 0x1df   : > { %v1391_v44 = vpop.f32.mrb[7].mxu1  ;;  %v707_v45 = vadd.f32 %v1306_v40, %v700_v41  ;;  %v902_v41 = vld [vmem:[%s2072_s4 + $0x68] sm:$0xff]  ;;  %v903_v43 = vld [vmem:[%s2072_s4 + $0x70] sm:$0xff] }
 0x1e0   : > { %v904_v44 = vld [vmem:[%s2072_s4 + $0x78] sm:$0xff] }
 0x1e1   : > { %v709_v46 = vsel %vm708_vm3, %v707_v45, -inf }
 0x1e2   : > { %710 = vmax.xlane.f32.xlu0 %v709_v46 }
 0x26f   : > { %v711_v47 = vpop.xlane.xlu0 %710 }
 0x270   : > { %v712_v48 = vsub.f32 %v707_v45, %v711_v47  ;;  %v913_v45 = vpack.c.bf16 %v904_v44, %v903_v43  ;;  %v1016_v43 = vld [vmem:[%s2076_s8 + $0xd0] sm:$0xff] }
 0x272   : > { %v713_v49 = vmul.f32 1.442695, %v712_v48 }
 0x274   : > { %1442 = vpow2.f32 %v713_v49 }
 0x27e   : > { %v1443_v50 = vpop.eup %1442 }
 0x27f   : > { %v715_v51 = vsel %vm708_vm3, %v1443_v50, 0.0 }
 0x280   : > { %716 = vadd.xlane.f32.xlu0 %v715_v51 }
 0x30d   : > { %v717_v52 = vpop.xlane.xlu0 %716 }
 0x30e   : > { %1444 = vrcp.f32 %v717_v52  ;;  %v1310_v52 = vld [vmem:[%s2073_s5] ss:$0 sm:$0xff] }
 0x318   : > { %v1445_v53 = vpop.eup %1444 }
 0x319   : > { %v719_v54 = vmul.f32 %v1445_v53, %v1443_v50 }
 0x31b   : > { %v720_v56 = vpack.c.bf16 %v719_v54, %v719_v54 }
 0x31d   : > { %1395 = vmatmul.mubr.msk.bf16.vlgmr.msra.gmra.mrb[8].mxu1 %vm708_vm3, %v720_v56 }
 0x31e   : > { %1399 = vmatpush3.bf16.xpose.msra.mxu1 %v779_v57  ;;  %1400 = vmatprep.mubr.msk.bf16.mxu1 %vm1468_vm0, %v1467_v8 }
 0x31f   : > { %1404 = vmatprep.subr.bf16.mxu1 %v1467_v8 }
 0x325   : > { %1401 = vmatmul.mubr.msk.bf16.vlgmr.msra.gmra.mrb[12].mxu1 %vm653_vm1, %v771_v58 }
 0x326   : > { %1406 = vmatprep.mubr.msk.bf16.mxu1 %vm1468_vm0, %v1467_v8 }
 0x3f0   : > { %v1771_v59 = vpop.f32.mrb[8].mxu1 }
 0x3f1   : > { %v1396_v60 = vpop.f32.mrb[9].mxu1 }
 0x3f2   : > { %v766_v61 = vpop.f32.mrb[10].mxu1  ;;  %v991_v60 = vld [vmem:[%s2076_s8 + $0x8] sm:$0xff] }
 0x3f3   : > { %v1397_v62 = vpop.f32.mrb[11].mxu1  ;;  %v990_v61 = vld [vmem:[%s2076_s8] sm:$0xff] }
 0x3f8   : > { %v815_v63 = vpop.f32.mrb[12].mxu1 }
 0x3f9   : > { %v821_v0 = vmul.f32 0.125, %v815_v63  ;;  %v1402_v1 = vpop.f32.mrb[13].mxu1  ;;  %v992_v63 = vld [vmem:[%s2076_s8 + $0x10] sm:$0xff] }
 0x3fa   : > { %v818_v2 = vpop.f32.mrb[14].mxu1  ;;  %v1023_v1 = vpack.c.bf16 %v992_v63, %v990_v61  ;;  %v1127_v61 = vld [vmem:[%s2078_s10 + $0x88] sm:$0xff]  ;;  %v1110_v63 = vld [vmem:[%s2078_s10] sm:$0xff] }
 0x3fb   : > { %v1403_v4 = vpop.f32.mrb[15].mxu1  ;;  %v822_v5 = vadd.f32 %v1306_v40, %v821_v0  ;;  %v901_v40 = vld [vmem:[%s2072_s4 + $0x60] sm:$0xff]  ;;  %v997_v0 = vld [vmem:[%s2076_s8 + $0x38] sm:$0xff] }
 0x3fc   : > { %v912_v42 = vpack.c.bf16 %v902_v41, %v901_v40  ;;  %v994_v4 = vld [vmem:[%s2076_s8 + $0x20] sm:$0xff]  ;;  %v1017_v40 = vld [vmem:[%s2076_s8 + $0xd8] sm:$0xff] }
 0x3fd   : > { %v823_v6 = vsel %vm708_vm3, %v822_v5, -inf }
 0x3fe   : > { %824 = vmax.xlane.f32.xlu0 %v823_v6  ;;  %v999_v6 = vld [vmem:[%s2076_s8 + $0x48] sm:$0xff] }
 0x414   : > { %836 = vrot.lane.b32.xlu0 %v721_v36, %s1469_s21  ;;  %v910_v36 = vpack.c.bf16 %v898_v35, %v897_v34  ;;  %v1013_v34 = vld [vmem:[%s2076_s8 + $0xb8] sm:$0xff] }
 0x48b   : > { %v825_v9 = vpop.xlane.xlu0 %824 }
 0x48c   : > { %v826_v10 = vsub.f32 %v822_v5, %v825_v9  ;;  %v996_v5 = vld [vmem:[%s2076_s8 + $0x30] sm:$0xff]  ;;  %v1001_v9 = vld [vmem:[%s2076_s8 + $0x58] sm:$0xff] }
 0x48e   : > { %v827_v11 = vmul.f32 1.442695, %v826_v10  ;;  %v1025_v10 = vpack.c.bf16 %v996_v5, %v994_v4  ;;  %v1112_v5 = vld [vmem:[%s2078_s10 + $0x10] sm:$0xff] }
 0x48f   : > { %v837_v12 = vpop.permute.xlu0 %836 }
 0x490   : > { %1446 = vpow2.f32 %v827_v11  ;;  %v842_v13 = vsel %vm725_vm2, %v837_v12, 0  ;;  %v1028_v11 = vpack.c.bf16 %v1001_v9, %v999_v6  ;;  %v1113_v6 = vld [vmem:[%s2078_s10 + $0x18] sm:$0xff] }
 0x491   : > { %1405 = vmatpush3.bf16.msra.mxu1 %v842_v13  ;;  %v1145_v9 = vpack.c.bf16 %v1113_v6, %v1112_v5 }
 0x49a   : > { %v1447_v14 = vpop.eup %1446 }
 0x49b   : > { %v829_v17 = vsel %vm708_vm3, %v1447_v14, 0.0 }
 0x49c   : > { %830 = vadd.xlane.f32.xlu1 %v829_v17 }
 0x529   : > { %v831_v19 = vpop.xlane.xlu1 %830 }
 0x52a   : > { %1448 = vrcp.f32 %v831_v19  ;;  %v998_v19 = vld [vmem:[%s2076_s8 + $0x40] sm:$0xff] }
 0x534   : > { %v1449_v20 = vpop.eup %1448 }
 0x535   : > { %v833_v21 = vmul.f32 %v1449_v20, %v1447_v14  ;;  %v1000_v20 = vld [vmem:[%s2076_s8 + $0x50] sm:$0xff] }
 0x537   : > { %v834_v22 = vpack.c.bf16 %v833_v21, %v833_v21  ;;  %v1027_v21 = vpack.c.bf16 %v1000_v20, %v998_v19  ;;  %v1132_v19 = vld [vmem:[%s2078_s10 + $0xb0] sm:$0xff]  ;;  %v1133_v20 = vld [vmem:[%s2078_s10 + $0xb8] sm:$0xff] }
 0x539   : > { %1407 = vmatmul.mubr.msk.bf16.vlgmr.msra.gmra.mrb[16].mxu1 %vm708_vm3, %v834_v22  ;;  %v1003_v22 = vld [vmem:[%s2076_s8 + $0x68] sm:$0xff] }
 0x53a   : > { %1083 = vmatprep.mubr.bf16.mxu1 %v1466_v7  ;;  %v893_v7 = vld [vmem:[%s2072_s4 + $0x20] sm:$0xff]  ;;  %v1030_v24 = vpack.c.bf16 %v1005_v23, %v1003_v22  ;;  %v1155_v22 = vpack.c.bf16 %v1133_v20, %v1132_v19  ;;  %v1117_v23 = vld [vmem:[%s2078_s10 + $0x38] sm:$0xff] }
 0x53b   : > { %v908_v30 = vpack.c.bf16 %v894_v29, %v893_v7  ;;  %v1009_v7 = vld [vmem:[%s2076_s8 + $0x98] sm:$0xff] }
 0x53c   : > { %v1032_v29 = vpack.c.bf16 %v1009_v7, %v1007_v28  ;;  %v1118_v28 = vld [vmem:[%s2078_s10 + $0x40] sm:$0xff]  ;;  %v1119_v7 = vld [vmem:[%s2078_s10 + $0x48] sm:$0xff] }
 0x53d   : > { %1415 = vmatpush3.bf16.msra.mxu0 %v908_v30  ;;  %v1006_v30 = vld [vmem:[%s2076_s8 + $0x80] sm:$0xff] }
 0x53e   : > { %1416 = vmatprep.subr.bf16.mxu0 %v1467_v8  ;;  %v1031_v32 = vpack.c.bf16 %v1008_v31, %v1006_v30  ;;  %v1137_v30 = vld [vmem:[%s2078_s10 + $0xd8] sm:$0xff]  ;;  %v1148_v31 = vpack.c.bf16 %v1119_v7, %v1118_v28 }
 0x541   : > { %1417 = vmatpush3.bf16.msra.mxu0 %v909_v33  ;;  %v1011_v33 = vld [vmem:[%s2076_s8 + $0xa8] sm:$0xff] }
 0x542   : > { %1418 = vmatprep.subr.bf16.mxu0 %v1467_v8  ;;  %v1034_v35 = vpack.c.bf16 %v1013_v34, %v1011_v33  ;;  %v1120_v33 = vld [vmem:[%s2078_s10 + $0x50] sm:$0xff]  ;;  %v1121_v34 = vld [vmem:[%s2078_s10 + $0x58] sm:$0xff] }
 0x545   : > { %1419 = vmatpush3.bf16.msra.mxu0 %v910_v36  ;;  %v1010_v36 = vld [vmem:[%s2076_s8 + $0xa0] sm:$0xff] }
 0x546   : > { %1420 = vmatprep.subr.bf16.mxu0 %v1467_v8  ;;  %v1033_v38 = vpack.c.bf16 %v1012_v37, %v1010_v36  ;;  %v1139_v36 = vld [vmem:[%s2078_s10 + $0xe8] sm:$0xff]  ;;  %v1149_v37 = vpack.c.bf16 %v1121_v34, %v1120_v33 }
 0x549   : > { %1421 = vmatpush3.bf16.msra.mxu0 %v911_v39  ;;  %v1015_v39 = vld [vmem:[%s2076_s8 + $0xc8] sm:$0xff] }
 0x54a   : > { %1422 = vmatprep.subr.bf16.mxu0 %v1467_v8  ;;  %v1036_v41 = vpack.c.bf16 %v1017_v40, %v1015_v39  ;;  %v1122_v39 = vld [vmem:[%s2078_s10 + $0x60] sm:$0xff]  ;;  %v1123_v40 = vld [vmem:[%s2078_s10 + $0x68] sm:$0xff] }
 0x54d   : > { %1423 = vmatpush3.bf16.msra.mxu0 %v912_v42  ;;  %v1014_v42 = vld [vmem:[%s2076_s8 + $0xc0] sm:$0xff] }
 0x54e   : > { %1424 = vmatprep.subr.bf16.mxu0 %v1467_v8  ;;  %v1035_v44 = vpack.c.bf16 %v1016_v43, %v1014_v42  ;;  %v1141_v42 = vld [vmem:[%s2078_s10 + $0xf8] sm:$0xff]  ;;  %v1150_v43 = vpack.c.bf16 %v1123_v40, %v1122_v39 }
 0x551   : > { %1425 = vmatpush3.bf16.msra.mxu0 %v913_v45  ;;  %v1019_v45 = vld [vmem:[%s2076_s8 + $0xe8] sm:$0xff] }
 0x60c   : > { %v878_v46 = vpop.f32.mrb[16].mxu1 }
 0x60d   : > { %885 = vrot.lane.b32.xlu0 %v878_v46, %s1469_s21  ;;  %v1408_v47 = vpop.f32.mrb[17].mxu1  ;;  %v1021_v46 = vld [vmem:[%s2076_s8 + $0xf8] sm:$0xff] }
 0x60e   : > { %v881_v48 = vpop.f32.mrb[18].mxu1  ;;  %v1018_v47 = vld [vmem:[%s2076_s8 + $0xe0] sm:$0xff] }
 0x60f   : > { %v1409_v49 = vpop.f32.mrb[19].mxu1  ;;  %v1038_v48 = vpack.c.bf16 %v1021_v46, %v1019_v45  ;;  %v1124_v45 = vld [vmem:[%s2078_s10 + $0x70] sm:$0xff]  ;;  %v1125_v46 = vld [vmem:[%s2078_s10 + $0x78] sm:$0xff] }
 0x610   : > { %v1020_v49 = vld [vmem:[%s2076_s8 + $0xf0] sm:$0xff] }
 0x67f   : > { %v886_v50 = vpop.permute.xlu0 %885 }
 0x680   : > { %v888_v8 = vsel %vm653_vm1, %v1771_v59, %v886_v50  ;;  %v993_v59 = vld [vmem:[%s2076_s8 + $0x18] sm:$0xff]  ;;  %v1037_v50 = vpack.c.bf16 %v1020_v49, %v1018_v47  ;;  %v1151_v47 = vpack.c.bf16 %v1125_v46, %v1124_v45 }
 0x681   : > { %v905_v51 = vpack.c.bf16 %v888_v8, %v888_v8  ;;  %v1024_v62 = vpack.c.bf16 %v993_v59, %v991_v60  ;;  %v1126_v59 = vld [vmem:[%s2078_s10 + $0x80] sm:$0xff] }
 0x683   : > { %1427 = vmatmul.mubr.bf16.vlgmr.msra.gmra.mrb[4].mxu0 %v905_v51  ;;  %1051 = vmatprep.subr.bf16.mxu1 %v1024_v62  ;;  %v1152_v62 = vpack.c.bf16 %v1127_v61, %v1126_v59 }
 0x684   : > { %1052 = vmatpush1.bf16.msra.mxu1 %v1023_v1  ;;  %v1128_v1 = vld [vmem:[%s2078_s10 + $0x90] sm:$0xff] }
 0x685   : > { %1344 = vmatprep.subr.bf16.mxu0 %v1152_v62 }
 0x756   : > { %v955_v53 = vpop.f32.mrb[4].mxu0 }
 0x757   : > { %v956_v54 = vadd.f32 %v1310_v52, %v955_v53  ;;  %v1428_v55 = vpop.f32.mrb[5].mxu0 }
 0x758   : > { %v958_v56 = vpop.f32.mrb[6].mxu0 }
 0x759   : > { %v1429_v57 = vpop.f32.mrb[7].mxu0  ;;  %v961_v58 = vadd.f32 %v956_v54, %v1709_v3  ;;  %v995_v3 = vld [vmem:[%s2076_s8 + $0x28] sm:$0xff]  ;;  %v1311_v54 = vld [vmem:[%s2074_s6] ss:$0 sm:$0xff] }
 0x75a   : > { %v1026_v2 = vpack.c.bf16 %v997_v0, %v995_v3  ;;  %v1312_v56 = vld [vmem:[%s2075_s7] ss:$0 sm:$0xff]  ;;  %v1111_v3 = vld [vmem:[%s2078_s10 + $0x8] sm:$0xff] }
 0x75b   : > { %964 = vadd.xlane.f32.xlu0 %v961_v58  ;;  %v1144_v0 = vpack.c.bf16 %v1111_v3, %v1110_v63 }
 0x75c   : > { %1053 = vmatprep.subr.bf16.mxu1 %v1026_v2  ;;  %v1129_v2 = vld [vmem:[%s2078_s10 + $0x98] sm:$0xff] }
 0x75d   : > { %1054 = vmatpush1.bf16.msra.mxu1 %v1025_v10  ;;  %1345 = vmatpush3.bf16.msra.mxu0 %v1144_v0  ;;  %v1153_v4 = vpack.c.bf16 %v1129_v2, %v1128_v1  ;;  %v1130_v10 = vld [vmem:[%s2078_s10 + $0xa0] sm:$0xff] }
 0x75e   : > { %1055 = vmatprep.subr.bf16.mxu1 %v1028_v11  ;;  %v1131_v11 = vld [vmem:[%s2078_s10 + $0xa8] sm:$0xff] }
 0x75f   : > { %1346 = vmatprep.subr.bf16.mxu0 %v1153_v4 }
 0x761   : > { %1056 = vmatpush1.bf16.msra.mxu1 %v1027_v21  ;;  %1347 = vmatpush3.bf16.msra.mxu0 %v1145_v9  ;;  %v1116_v21 = vld [vmem:[%s2078_s10 + $0x30] sm:$0xff] }
 0x762   : > { %1057 = vmatprep.subr.bf16.mxu1 %v1030_v24  ;;  %v1134_v24 = vld [vmem:[%s2078_s10 + $0xc0] sm:$0xff]  ;;  %v1147_v26 = vpack.c.bf16 %v1117_v23, %v1116_v21 }
 0x765   : > { %1058 = vmatpush1.bf16.msra.mxu1 %v1029_v27  ;;  %v1156_v27 = vpack.c.bf16 %v1135_v25, %v1134_v24 }
 0x766   : > { %1059 = vmatprep.subr.bf16.mxu1 %v1032_v29  ;;  %v1136_v29 = vld [vmem:[%s2078_s10 + $0xd0] sm:$0xff] }
 0x769   : > { %1060 = vmatpush1.bf16.msra.mxu1 %v1031_v32  ;;  %v1157_v32 = vpack.c.bf16 %v1137_v30, %v1136_v29  ;;  %v1314_v30 = vld [vmem:[%s2080_s12] ss:$0 sm:$0xff] }
 0x76a   : > { %1061 = vmatprep.subr.bf16.mxu1 %v1034_v35  ;;  %v1138_v35 = vld [vmem:[%s2078_s10 + $0xe0] sm:$0xff] }
 0x76d   : > { %1062 = vmatpush1.bf16.msra.mxu1 %v1033_v38  ;;  %v1158_v38 = vpack.c.bf16 %v1139_v36, %v1138_v35 }
 0x76e   : > { %1063 = vmatprep.subr.bf16.mxu1 %v1036_v41  ;;  %v1140_v41 = vld [vmem:[%s2078_s10 + $0xf0] sm:$0xff] }
 0x771   : > { %1064 = vmatpush1.bf16.msra.mxu1 %v1035_v44  ;;  %v1159_v44 = vpack.c.bf16 %v1141_v42, %v1140_v41 }
 0x772   : > { %1065 = vmatprep.subr.bf16.mxu1 %v1038_v48  ;;  %v1039_v48 = vld [vmem:[%s2077_s9] sm:$0x3] }
 0x773   : > { %v1044_v49 = vrot.slane %v1039_v48, %v557_v18 }
 0x775   : > { %1066 = vmatpush1.bf16.msra.mxu1 %v1037_v50  ;;  %v1048_v50 = vrot.slane %v1039_v48, %v561_v16 }
 0x7e8   : > { %v965_v12 = vpop.xlane.xlu0 %964 }
 0x7e9   : > { %v967_v13 = vmul.f32 0.0078125, %v965_v12  ;;  %v1154_v12 = vpack.c.bf16 %v1131_v11, %v1130_v10 }
 0x7eb   : > { %v968_v14 = vsub.f32 %v961_v58, %v967_v13  ;;  %v1114_v13 = vld [vmem:[%s2078_s10 + $0x20] sm:$0xff]  ;;  %1348 = vmatprep.subr.bf16.mxu0 %v1154_v12 }
 0x7ed   : > { %v969_v17 = vmul.f32 %v968_v14, %v968_v14 }
 0x7ef   : > { %970 = vadd.xlane.f32.xlu1 %v969_v17 }
 0x87c   : > { %v971_v8 = vpop.xlane.xlu1 %970 }
 0x87d   : > { %v972_v51 = vmul.f32 0.0078125, %v971_v8 }
 0x87f   : > { %v973_v52 = vadd.f32 1e-12, %v972_v51 }
 0x881   : > { %1450 = vrsqrt.f32 %v973_v52 }
 0x88b   : > { %v1451_v53 = vpop.eup %1450 }
 0x88c   : > { %v975_v55 = vmul.f32 %v1451_v53, %v968_v14  ;;  %v1115_v14 = vld [vmem:[%s2078_s10 + $0x28] sm:$0xff] }
 0x88d   : > { %v1146_v17 = vpack.c.bf16 %v1115_v14, %v1114_v13  ;;  %v1313_v13 = vld [vmem:[%s2079_s11] ss:$0 sm:$0xff] }
 0x88e   : > { %v982_v57 = vmul.f32 %v1311_v54, %v975_v55 }
 0x88f   : > { %1349 = vmatpush3.bf16.msra.mxu0 %v1146_v17 }
 0x890   : > { %v1943_v58 = vadd.f32 %v1312_v56, %v982_v57  ;;  %1350 = vmatprep.subr.bf16.mxu0 %v1155_v22 }
 0x892   : > { %v1022_v60 = vpack.c.bf16 %v1943_v58, %v1943_v58 }
 0x893   : > { %1351 = vmatpush3.bf16.msra.mxu0 %v1147_v26 }
 0x894   : > { %1084 = vmatmul.mubr.bf16.vlgmr.msra.gmra.mrb[20].mxu1 %v1022_v60  ;;  %1352 = vmatprep.subr.bf16.mxu0 %v1156_v27 }
 0x897   : > { %1353 = vmatpush3.bf16.msra.mxu0 %v1148_v31 }
 0x898   : > { %1354 = vmatprep.subr.bf16.mxu0 %v1157_v32 }
 0x89b   : > { %1355 = vmatpush3.bf16.msra.mxu0 %v1149_v37 }
 0x89c   : > { %1356 = vmatprep.subr.bf16.mxu0 %v1158_v38 }
 0x89f   : > { %1357 = vmatpush3.bf16.msra.mxu0 %v1150_v43 }
 0x8a0   : > { %1358 = vmatprep.subr.bf16.mxu0 %v1159_v44 }
 0x8a3   : > { %1359 = vmatpush3.bf16.msra.mxu0 %v1151_v47 }
 0x967   : > { %v1085_v8 = vpop.f32.mrb[20].mxu1 }
 0x968   : > { %v1086_v51 = vadd.f32 %v1085_v8, %v1044_v49  ;;  %v1087_v52 = vpop.f32.mrb[21].mxu1 }
 0x969   : > { %v1088_v53 = vadd.f32 %v1087_v52, %v1048_v50  ;;  %v1089_v54 = vpop.f32.mrb[22].mxu1 }
 0x96a   : > { %v1094_v55 = vmul.f32 0.044715, %v1086_v51  ;;  %v1090_v56 = vpop.f32.mrb[23].mxu1  ;;  %v1092_v18 = vmul.f32 0.5, %v1086_v51 }
 0x96b   : > { %v1095_v57 = vmul.f32 0.044715, %v1088_v53  ;;  %v1093_v4 = vmul.f32 0.5, %v1088_v53 }
 0x96c   : > { %v1096_v60 = vmul.f32 %v1094_v55, %v1086_v51 }
 0x96d   : > { %v1097_v59 = vmul.f32 %v1095_v57, %v1088_v53 }
 0x96e   : > { %v1098_v61 = vmul.f32 %v1096_v60, %v1086_v51 }
 0x96f   : > { %v1099_v62 = vmul.f32 %v1097_v59, %v1088_v53 }
 0x970   : > { %v1100_v63 = vadd.f32 %v1098_v61, %v1086_v51 }
 0x971   : > { %v1101_v3 = vadd.f32 %v1099_v62, %v1088_v53 }
 0x972   : > { %v1102_v0 = vmul.f32 0.7978846, %v1100_v63 }
 0x973   : > { %v1103_v1 = vmul.f32 0.7978846, %v1101_v3 }
 0x974   : > { %1452 = vtanh.f32 %v1102_v0 }
 0x975   : > { %1454 = vtanh.f32 %v1103_v1 }
 0x97e   : > { %v1453_v15 = vpop.eup %1452 }
 0x97f   : > { %v1455_v16 = vpop.eup %1454  ;;  %v1106_v2 = vadd.f32 1.0, %v1453_v15 }
 0x980   : > { %v1107_v5 = vadd.f32 1.0, %v1455_v16 }
 0x981   : > { %v1108_v6 = vmul.f32 %v1106_v2, %v1092_v18 }
 0x982   : > { %v1109_v9 = vmul.f32 %v1107_v5, %v1093_v4 }
 0x983   : > { %v1142_v11 = vpack.c.bf16 %v1108_v6, %v1108_v6 }
 0x984   : > { %v1143_v10 = vpack.c.bf16 %v1109_v9, %v1109_v9 }
 0x986   : > { %1199 = vmatprep.mubr.bf16.mxu0 %v1143_v10 }
 0x987   : > { %1200 = vmatmul.mubr.bf16.vlgmr.msra.gmra.mrb[8].mxu0 %v1142_v11 }
 0xa5a   : > { %v1360_v12 = vpop.f32.mrb[8].mxu0 }
 0xa5b   : > { %v1361_v14 = vpop.f32.mrb[9].mxu0 }
 0xa5c   : > { %v1362_v17 = vadd.f32 %v1361_v14, %v1360_v12  ;;  %v1363_v19 = vpop.f32.mrb[10].mxu0 }
 0xa5d   : > { %v1364_v20 = vpop.f32.mrb[11].mxu0 }
 0xa5e   : > { %v1202_v21 = vadd.f32 %v1362_v17, %v1313_v13 }
 0xa60   : > { %v1207_v22 = vadd.f32 %v1202_v21, %v1943_v58  ;;  %v1315_v58 = vld [vmem:[%s2081_s13] ss:$0 sm:$0xff] }
 0xa62   : > { %1210 = vadd.xlane.f32.xlu1 %v1207_v22 }
 0xaef   : > { %v1211_v23 = vpop.xlane.xlu1 %1210 }
 0xaf0   : > { %v1212_v24 = vmul.f32 0.0078125, %v1211_v23 }
 0xaf2   : > { %v1213_v25 = vsub.f32 %v1207_v22, %v1212_v24 }
 0xaf4   : > { %v1214_v26 = vmul.f32 %v1213_v25, %v1213_v25 }
 0xaf6   : > { %1215 = vadd.xlane.f32.xlu1 %v1214_v26 }
 0xb83   : > { %v1216_v27 = vpop.xlane.xlu1 %1215 }
 0xb84   : > { %v1217_v28 = vmul.f32 0.0078125, %v1216_v27 }
 0xb86   : > { %v1218_v7 = vadd.f32 1e-12, %v1217_v28 }
 0xb88   : > { %1456 = vrsqrt.f32 %v1218_v7 }
 0xb92   : > { %v1457_v29 = vpop.eup %1456 }
 0xb93   : > { %v1220_v31 = vmul.f32 %v1457_v29, %v1213_v25 }
 0xb95   : > { %v1227_v32 = vmul.f32 %v1314_v30, %v1220_v31 }
 0xb97   : > { %v1234_v33 = vadd.f32 %v1315_v58, %v1227_v32 }
 0xb99   : > { %1235 = vst [vmem:[%s476_s23] sm:$0xff] %v1234_v33 }
 0xb9a PF: > { %s24_s29 = sadd.s32 1, %s1464_s29  }
 0xb9b   : > { %p21_p4 = scmp.ge.s32.totalorder %s24_s29, 4  }
 0xb9d   :  { %23 = sbr.rel (!%p21_p4) target bundleno = 1 (0x1), region = 109 }

</bundles_post_ra>
